<compile_context>
chip_gen: v7x
topology: tpu7x:2x2x1
jax: 0.10.0
libtpu: 0.0.40
codegen_flags: <defaults>
</compile_context>

<pallas_src>
import functools

import jax
import jax.numpy as jnp
from jax.experimental import pallas as pl
from jax.experimental.pallas import tpu as pltpu

VMEM_SPEC = pl.BlockSpec(memory_space=pltpu.MemorySpace.VMEM)
EPS = 1e-5  # match PyTorch nn.LayerNorm default


def _ln(x, g, b, eps=EPS):
    mu = jnp.mean(x, axis=-1, keepdims=True)
    var = jnp.mean((x - mu) ** 2, axis=-1, keepdims=True)
    return (x - mu) * jax.lax.rsqrt(var + eps) * g + b


# ----------------------------- patch embedding ------------------------------ #

def _patch_embed_kernel(x_ref, w_ref, b_ref, g_ref, beta_ref, o_ref):
    y = jnp.dot(x_ref[...].astype(jnp.bfloat16), w_ref[...],
                preferred_element_type=jnp.float32) + b_ref[...]
    o_ref[...] = _ln(y, g_ref[...], beta_ref[...]).astype(o_ref.dtype)


def patch_embed(patches, w, b, g, beta):
    m = patches.shape[0]
    c = w.shape[1]
    return pl.pallas_call(
        _patch_embed_kernel,
        out_shape=jax.ShapeDtypeStruct((m, c), jnp.float32),
        in_specs=[VMEM_SPEC] * 5,
        out_specs=VMEM_SPEC,
    )(patches, w, b, g, beta)


# --------------------------- fused transformer block ------------------------ #

def _block_kernel(tok_ref, tsr_ref,
                  ln1_g, ln1_b, wq, bq,
                  sr_w, sr_b, srln_g, srln_b,
                  kv1_w, kv1_b, kv2_w, kv2_b,
                  proj_w, proj_b, ln2_g, ln2_b,
                  fc1_w, fc1_b, fc2_w, fc2_b,
                  out_ref, *, r2, dh, scale):
    C = tok_ref.shape[-1]
    tok = tok_ref[0].astype(jnp.float32)                      # (N, C)

    # ---- shunted self-attention ----
    xn = _ln(tok, ln1_g[...], ln1_b[...])
    xn_b = xn.astype(jnp.bfloat16)

    # fused per-head queries: one lane-dense (C -> C) matmul, sliced per head
    # (head 0 -> spatially-reduced keys, head 1 -> full resolution)
    q = jnp.dot(xn_b, wq[...], preferred_element_type=jnp.float32) + bq[...]
    q1 = q[:, :dh]
    q2 = q[:, dh:]

    # full-resolution K/V (head group 1): fused (C -> 2*dh) matmul
    kv2 = jnp.dot(xn_b, kv2_w[...], preferred_element_type=jnp.float32) + kv2_b[...]
    k2 = kv2[:, :dh]
    v2 = kv2[:, dh:]

    # spatial-reduction path (head group 0): conv(k=sr, s=sr) expressed as a
    # sum over the r*r in-block offsets; tokens are stored super-block-major,
    # so each offset is a 128-aligned lane slice of the reshaped token slab.
    tsr = tsr_ref[0].astype(jnp.float32)                      # (M1, r2*C)
    m1 = tsr.shape[0]
    xr = jnp.zeros((m1, C), dtype=jnp.float32)
    for p in range(r2):
        ch = _ln(tsr[:, p * C:(p + 1) * C], ln1_g[...], ln1_b[...])
        xr = xr + jnp.dot(ch.astype(jnp.bfloat16),
                          sr_w[p * C:(p + 1) * C, :],
                          preferred_element_type=jnp.float32)
    xr = _ln(xr + sr_b[...], srln_g[...], srln_b[...])
    kv1 = jnp.dot(xr.astype(jnp.bfloat16), kv1_w[...],
                  preferred_element_type=jnp.float32) + kv1_b[...]
    k1 = kv1[:, :dh]
    v1 = kv1[:, dh:]
    # TODO(synk): original SSA adds a depthwise local_conv on V; omitted
    # (reference forward() is a stub).

    def attn(qh, kh, vh):
        s = jax.lax.dot_general(
            qh.astype(jnp.bfloat16), kh.astype(jnp.bfloat16),
            (((1,), (1,)), ((), ())),
            preferred_element_type=jnp.float32) * scale
        s = s - jnp.max(s, axis=-1, keepdims=True)
        p_ = jnp.exp(s)
        denom = jnp.sum(p_, axis=-1, keepdims=True)
        o = jnp.dot(p_.astype(jnp.bfloat16), vh.astype(jnp.bfloat16),
                    preferred_element_type=jnp.float32)
        return o * pl.reciprocal(denom, approx=True)

    o1 = attn(q1, k1, v1)                                     # (N, dh)
    o2 = attn(q2, k2, v2)                                     # (N, dh)

    # head concat (lane-dense, 128 wide) + single 128-deep output projection
    attn_cat = jnp.concatenate([o1, o2], axis=-1).astype(jnp.bfloat16)
    attn_out = (jnp.dot(attn_cat, proj_w[...],
                        preferred_element_type=jnp.float32) + proj_b[...])
    tok = tok + attn_out

    # ---- MLP ----
    xn2 = _ln(tok, ln2_g[...], ln2_b[...])
    h = jnp.dot(xn2.astype(jnp.bfloat16), fc1_w[...],
                preferred_element_type=jnp.float32) + fc1_b[...]
    # TODO(synk): original SSA MLP has a 3x3 DWConv between fc1 and the
    # activation; omitted (reference forward() is a stub).
    h = jax.nn.gelu(h, approximate=True)
    mlp = jnp.dot(h.astype(jnp.bfloat16), fc2_w[...],
                  preferred_element_type=jnp.float32) + fc2_b[...]

    out_ref[0] = (tok + mlp).astype(out_ref.dtype)


def _shunted_block(tok, blk, *, r2, dh, scale):
    B, N, C = tok.shape
    m1 = N // r2
    # tokens are super-block-major, so this reshape is free (no data movement)
    tsr = tok.reshape(B, m1, r2 * C)

    weights = [
        blk["ln1_g"], blk["ln1_b"], blk["wq"], blk["bq"],
        blk["sr_w"], blk["sr_b"], blk["srln_g"], blk["srln_b"],
        blk["kv1_w"], blk["kv1_b"], blk["kv2_w"], blk["kv2_b"],
        blk["proj_w"], blk["proj_b"], blk["ln2_g"], blk["ln2_b"],
        blk["fc1_w"], blk["fc1_b"], blk["fc2_w"], blk["fc2_b"],
    ]

    def full_spec(a):
        nd = a.ndim
        return pl.BlockSpec(a.shape, lambda b, _nd=nd: (0,) * _nd)

    in_specs = ([pl.BlockSpec((1, N, C), lambda b: (b, 0, 0)),
                 pl.BlockSpec((1, m1, r2 * C), lambda b: (b, 0, 0))]
                + [full_spec(a) for a in weights])

    return pl.pallas_call(
        functools.partial(_block_kernel, r2=r2, dh=dh, scale=scale),
        out_shape=jax.ShapeDtypeStruct((B, N, C), tok.dtype),
        grid=(B,),
        in_specs=in_specs,
        out_specs=pl.BlockSpec((1, N, C), lambda b: (b, 0, 0)),
        compiler_params=pltpu.CompilerParams(
            dimension_semantics=("parallel",)),
    )(tok, tsr, *weights)


# ----------------------------- classification head -------------------------- #

def _head_kernel(tok_ref, pool_ref, g_ref, b_ref, w_ref, hb_ref, o_ref):
    x = _ln(tok_ref[...].astype(jnp.float32), g_ref[...], b_ref[...])
    pooled = jnp.dot(pool_ref[...], x, preferred_element_type=jnp.float32)
    o_ref[...] = (jnp.dot(pooled, w_ref[...],
                          preferred_element_type=jnp.float32)
                  + hb_ref[...]).astype(o_ref.dtype)


def head(tok2d, pool_mat, g, b, w, hb):
    B = pool_mat.shape[0]
    ncls = w.shape[1]
    return pl.pallas_call(
        _head_kernel,
        out_shape=jax.ShapeDtypeStruct((B, ncls), jnp.float32),
        in_specs=[VMEM_SPEC] * 6,
        out_specs=VMEM_SPEC,
    )(tok2d, pool_mat, g, b, w, hb)


# ------------------------------ parameter setup ----------------------------- #

def init_params(key, *, in_chans, embed_dim, num_heads, patch, mlp_ratio,
                num_classes, depth, sr_ratio):
    dh = embed_dim // num_heads
    hidden = embed_dim * mlp_ratio

    def nrm(k, shape):
        return jax.random.normal(k, shape, dtype=jnp.float32) * 0.02

    keys = iter(jax.random.split(key, 64 + 32 * depth))
    p = {
        "patch_w": nrm(next(keys), (patch * patch * in_chans, embed_dim)),
        "patch_b": jnp.zeros((embed_dim,), jnp.float32),
        "patch_ln_g": jnp.ones((embed_dim,), jnp.float32),
        "patch_ln_b": jnp.zeros((embed_dim,), jnp.float32),
        "ln_g": jnp.ones((embed_dim,), jnp.float32),
        "ln_b": jnp.zeros((embed_dim,), jnp.float32),
        "head_w": nrm(next(keys), (embed_dim, num_classes)),
        "head_b": jnp.zeros((num_classes,), jnp.float32),
        "blocks": [],
    }
    for _ in range(depth):
        blk = {
            "ln1_g": jnp.ones((embed_dim,), jnp.float32),
            "ln1_b": jnp.zeros((embed_dim,), jnp.float32),
            "wq": nrm(next(keys), (embed_dim, embed_dim)),
            "bq": jnp.zeros((embed_dim,), jnp.float32),
            # spatial-reduction conv (kernel=sr, stride=sr) as patch matmul
            "sr_w": nrm(next(keys), (sr_ratio * sr_ratio * embed_dim, embed_dim)),
            "sr_b": jnp.zeros((embed_dim,), jnp.float32),
            "sr_ln_g": jnp.ones((embed_dim,), jnp.float32),
            "sr_ln_b": jnp.zeros((embed_dim,), jnp.float32),
            "kv1_w": nrm(next(keys), (embed_dim, 2 * dh)),
            "kv1_b": jnp.zeros((2 * dh,), jnp.float32),
            "kv2_w": nrm(next(keys), (embed_dim, 2 * dh)),
            "kv2_b": jnp.zeros((2 * dh,), jnp.float32),
            "proj_w": nrm(next(keys), (embed_dim, embed_dim)),
            "proj_b": jnp.zeros((embed_dim,), jnp.float32),
            "ln2_g": jnp.ones((embed_dim,), jnp.float32),
            "ln2_b": jnp.zeros((embed_dim,), jnp.float32),
            "fc1_w": nrm(next(keys), (embed_dim, hidden)),
            "fc1_b": jnp.zeros((hidden,), jnp.float32),
            "fc2_w": nrm(next(keys), (hidden, embed_dim)),
            "fc2_b": jnp.zeros((embed_dim,), jnp.float32),
        }
        p["blocks"].append(blk)
    return p


def prepare_params(params):
    """One-time: bf16-cast MXU weights and broadcast biases into kernel-ready
    lane-dense slabs (done outside the jitted forward)."""
    bf = jnp.bfloat16
    C = params["patch_w"].shape[1]
    ncls = params["head_w"].shape[1]
    out = {
        "patch_w": params["patch_w"].astype(bf),
        "patch_b": params["patch_b"].reshape(1, C),
        "patch_ln_g": params["patch_ln_g"].reshape(1, C),
        "patch_ln_b": params["patch_ln_b"].reshape(1, C),
        "ln_g": params["ln_g"].reshape(1, C),
        "ln_b": params["ln_b"].reshape(1, C),
        "head_w": params["head_w"],
        "head_b": params["head_b"].reshape(1, ncls),
        "blocks": [],
    }
    for blk in params["blocks"]:
        hidden = blk["fc1_w"].shape[1]
        out["blocks"].append({
            "ln1_g": blk["ln1_g"].reshape(1, C),
            "ln1_b": blk["ln1_b"].reshape(1, C),
            "wq": blk["wq"].astype(bf),
            "bq": blk["bq"].reshape(1, C),
            "sr_w": blk["sr_w"].astype(bf),
            "sr_b": blk["sr_b"].reshape(1, C),
            "srln_g": blk["sr_ln_g"].reshape(1, C),
            "srln_b": blk["sr_ln_b"].reshape(1, C),
            "kv1_w": blk["kv1_w"].astype(bf),
            "kv1_b": blk["kv1_b"].reshape(1, -1),
            "kv2_w": blk["kv2_w"].astype(bf),
            "kv2_b": blk["kv2_b"].reshape(1, -1),
            "proj_w": blk["proj_w"].astype(bf),
            "proj_b": blk["proj_b"].reshape(1, C),
            "ln2_g": blk["ln2_g"].reshape(1, C),
            "ln2_b": blk["ln2_b"].reshape(1, C),
            "fc1_w": blk["fc1_w"].astype(bf),
            "fc1_b": blk["fc1_b"].reshape(1, hidden),
            "fc2_w": blk["fc2_w"].astype(bf),
            "fc2_b": blk["fc2_b"].reshape(1, C),
        })
    return out


# -------------------------------- forward pass ------------------------------ #

def shunted_transformer_forward(params, x_nchw, *, patch, num_heads, sr_ratio):
    assert num_heads == 2, "simplified SSA models 2 head groups (SR + full-res)"
    B, Cin, H, W = x_nchw.shape
    r = sr_ratio
    Hp, Wp = H // patch, W // patch
    Gh, Gw = Hp // r, Wp // r
    N, r2 = Hp * Wp, r * r

    # NCHW -> NHWC, extract non-overlapping patches in super-block-major token
    # order so the per-block SR reshape inside the fused kernel is free.
    x = jnp.transpose(x_nchw, (0, 2, 3, 1))
    x8 = x.reshape(B, Gh, r, patch, Gw, r, patch, Cin)
    patches = (x8.transpose(0, 1, 4, 2, 5, 3, 6, 7)
                 .reshape(B * N, patch * patch * Cin))
    # TODO(synk): at real image sizes this patch extraction should be a gridded
    # BlockSpec index_map reading straight from the NHWC image; negligible at 16x16.

    tok = patch_embed(patches, params["patch_w"], params["patch_b"],
                      params["patch_ln_g"], params["patch_ln_b"])
    C = tok.shape[-1]
    dh = C // num_heads
    scale = dh ** -0.5
    tok = tok.reshape(B, N, C)

    for blk in params["blocks"]:
        tok = _shunted_block(tok, blk, r2=r2, dh=dh, scale=scale)

    # mean-pool over tokens expressed as a matmul (constant-folded under jit)
    pool_mat = jnp.kron(jnp.eye(B, dtype=jnp.float32),
                        jnp.full((1, N), 1.0 / N, dtype=jnp.float32))
    logits = head(tok.reshape(B * N, C), pool_mat,
                  params["ln_g"], params["ln_b"],
                  params["head_w"], params["head_b"])
    return logits


# ------------------------------------ main ---------------------------------- #

if __name__ == "__main__":
    num_classes = 10
    depths = (2,)          # single stage with depths[0] blocks
    # TODO(synk): the full ShuntedTransformer has 4 downsampling stages;
    # reference forward() is a stub, so one stage is modeled.

    patch = 4
    in_chans = 4
    embed_dim = 128        # lane-dense channels (multiple of 128)
    num_heads = 2
    mlp_ratio = 2          # hidden = 256, lane-dense
    sr_ratio = 2

    key = jax.random.PRNGKey(0)
    k_param, k_x = jax.random.split(key)
    raw_params = init_params(k_param, in_chans=in_chans, embed_dim=embed_dim,
                             num_heads=num_heads, patch=patch,
                             mlp_ratio=mlp_ratio, num_classes=num_classes,
                             depth=depths[0], sr_ratio=sr_ratio)
    params = prepare_params(raw_params)   # kernel-ready slabs, built once

    x = jax.random.normal(k_x, (2, in_chans, 16, 16), dtype=jnp.float32)  # NCHW

    fwd = jax.jit(functools.partial(shunted_transformer_forward,
                                    patch=patch, num_heads=num_heads,
                                    sr_ratio=sr_ratio))
    out = fwd(params, x)
    jax.block_until_ready(out)
    assert out.shape == (2, num_classes), out.shape
    print("KERNEL_OK")
</pallas_src>

<mosaic_0001>
module attributes {stable_mosaic.version = 11 : i64} {
  func.func @_patch_embed_kernel(%arg0: memref<32x64xf32, #tpu.memory_space<vmem>>, %arg1: memref<64x128xbf16, #tpu.memory_space<vmem>>, %arg2: memref<1x128xf32, #tpu.memory_space<vmem>>, %arg3: memref<1x128xf32, #tpu.memory_space<vmem>>, %arg4: memref<1x128xf32, #tpu.memory_space<vmem>>, %arg5: memref<32x128xf32, #tpu.memory_space<vmem>>) attributes {dimension_semantics = [], scalar_prefetch = 0 : i64, scratch_operands = 0 : i64, tpu.core_type = #tpu.core_type<tc>} {
    %c0 = arith.constant 0 : index
    %c0_0 = arith.constant 0 : index
    %0 = vector.load %arg0[%c0, %c0_0] : memref<32x64xf32, #tpu.memory_space<vmem>>, vector<32x64xf32>
    %1 = arith.truncf %0 : vector<32x64xf32> to vector<32x64xbf16>
    %c0_1 = arith.constant 0 : index
    %c0_2 = arith.constant 0 : index
    %2 = vector.load %arg1[%c0_1, %c0_2] : memref<64x128xbf16, #tpu.memory_space<vmem>>, vector<64x128xbf16>
    %cst = arith.constant dense<0.000000e+00> : vector<32x128xf32>
    %3 = tpu.matmul %1, %2, %cst {dimension_numbers = #tpu.dot_dimension_numbers<[1], [0], [0], [1], [0, 0, 1, 1], [], []>} : vector<32x64xbf16>, vector<64x128xbf16>, vector<32x128xf32> -> vector<32x128xf32>
    %c0_3 = arith.constant 0 : index
    %c0_4 = arith.constant 0 : index
    %4 = vector.load %arg2[%c0_3, %c0_4] : memref<1x128xf32, #tpu.memory_space<vmem>>, vector<1x128xf32>
    %5 = vector.broadcast %4 : vector<1x128xf32> to vector<32x128xf32>
    %6 = arith.addf %3, %5 : vector<32x128xf32>
    %c0_5 = arith.constant 0 : index
    %c0_6 = arith.constant 0 : index
    %7 = vector.load %arg3[%c0_5, %c0_6] : memref<1x128xf32, #tpu.memory_space<vmem>>, vector<1x128xf32>
    %c0_7 = arith.constant 0 : index
    %c0_8 = arith.constant 0 : index
    %8 = vector.load %arg4[%c0_7, %c0_8] : memref<1x128xf32, #tpu.memory_space<vmem>>, vector<1x128xf32>
    %cst_9 = arith.constant dense<0.000000e+00> : vector<32xf32>
    %9 = vector.multi_reduction <add>, %6, %cst_9 [1] : vector<32x128xf32> to vector<32xf32>
    %10 = vector.shape_cast %9 : vector<32xf32> to vector<32x1xf32>
    %cst_10 = arith.constant 1.280000e+02 : f32
    %11 = vector.broadcast %cst_10 : f32 to vector<32x1xf32>
    %12 = arith.divf %10, %11 : vector<32x1xf32>
    %13 = vector.broadcast %12 : vector<32x1xf32> to vector<32x128xf32>
    %14 = arith.subf %6, %13 : vector<32x128xf32>
    %15 = arith.mulf %14, %14 : vector<32x128xf32>
    %cst_11 = arith.constant dense<0.000000e+00> : vector<32xf32>
    %16 = vector.multi_reduction <add>, %15, %cst_11 [1] : vector<32x128xf32> to vector<32xf32>
    %17 = vector.shape_cast %16 : vector<32xf32> to vector<32x1xf32>
    %cst_12 = arith.constant 1.280000e+02 : f32
    %18 = vector.broadcast %cst_12 : f32 to vector<32x1xf32>
    %19 = arith.divf %17, %18 : vector<32x1xf32>
    %20 = vector.broadcast %12 : vector<32x1xf32> to vector<32x128xf32>
    %21 = arith.subf %6, %20 : vector<32x128xf32>
    %cst_13 = arith.constant 9.99999974E-6 : f32
    %22 = vector.broadcast %cst_13 : f32 to vector<32x1xf32>
    %23 = arith.addf %19, %22 : vector<32x1xf32>
    %24 = math.rsqrt %23 : vector<32x1xf32>
    %25 = vector.broadcast %24 : vector<32x1xf32> to vector<32x128xf32>
    %26 = arith.mulf %21, %25 : vector<32x128xf32>
    %27 = vector.broadcast %7 : vector<1x128xf32> to vector<32x128xf32>
    %28 = arith.mulf %26, %27 : vector<32x128xf32>
    %29 = vector.broadcast %8 : vector<1x128xf32> to vector<32x128xf32>
    %30 = arith.addf %28, %29 : vector<32x128xf32>
    %c0_14 = arith.constant 0 : index
    %c0_15 = arith.constant 0 : index
    %31 = vector.load %arg5[%c0_14, %c0_15] : memref<32x128xf32, #tpu.memory_space<vmem>>, vector<32x128xf32>
    tpu.vector_store %arg5[%c0_14, %c0_15], %30 {strides = array<i32>} : memref<32x128xf32, #tpu.memory_space<vmem>>, vector<32x128xf32>,
    return
  }
}

module attributes {stable_mosaic.version = 11 : i64} {
  func.func @_block_kernel(%arg0: i32, %arg1: memref<1x16x128xf32, #tpu.memory_space<vmem>>, %arg2: memref<1x4x512xf32, #tpu.memory_space<vmem>>, %arg3: memref<1x128xf32, #tpu.memory_space<vmem>>, %arg4: memref<1x128xf32, #tpu.memory_space<vmem>>, %arg5: memref<128x128xbf16, #tpu.memory_space<vmem>>, %arg6: memref<1x128xf32, #tpu.memory_space<vmem>>, %arg7: memref<512x128xbf16, #tpu.memory_space<vmem>>, %arg8: memref<1x128xf32, #tpu.memory_space<vmem>>, %arg9: memref<1x128xf32, #tpu.memory_space<vmem>>, %arg10: memref<1x128xf32, #tpu.memory_space<vmem>>, %arg11: memref<128x128xbf16, #tpu.memory_space<vmem>>, %arg12: memref<1x128xf32, #tpu.memory_space<vmem>>, %arg13: memref<128x128xbf16, #tpu.memory_space<vmem>>, %arg14: memref<1x128xf32, #tpu.memory_space<vmem>>, %arg15: memref<128x128xbf16, #tpu.memory_space<vmem>>, %arg16: memref<1x128xf32, #tpu.memory_space<vmem>>, %arg17: memref<1x128xf32, #tpu.memory_space<vmem>>, %arg18: memref<1x128xf32, #tpu.memory_space<vmem>>, %arg19: memref<128x256xbf16, #tpu.memory_space<vmem>>, %arg20: memref<1x256xf32, #tpu.memory_space<vmem>>, %arg21: memref<256x128xbf16, #tpu.memory_space<vmem>>, %arg22: memref<1x128xf32, #tpu.memory_space<vmem>>, %arg23: memref<1x16x128xf32, #tpu.memory_space<vmem>>) attributes {dimension_semantics = [#tpu.dimension_semantics<parallel>], iteration_bounds = array<i64: 2>, scalar_prefetch = 0 : i64, scratch_operands = 0 : i64, tpu.core_type = #tpu.core_type<tc>, window_params = [{transform_indices = @transform_0, window_bounds = array<i64: 1, 16, 128>}, {transform_indices = @transform_1, window_bounds = array<i64: 1, 4, 512>}, {pipeline_mode = #tpu.pipeline_mode<synchronous>, transform_indices = @transform_2, window_bounds = array<i64: 1, 128>}, {pipeline_mode = #tpu.pipeline_mode<synchronous>, transform_indices = @transform_3, window_bounds = array<i64: 1, 128>}, {pipeline_mode = #tpu.pipeline_mode<synchronous>, transform_indices = @transform_4, window_bounds = array<i64: 128, 128>}, {pipeline_mode = #tpu.pipeline_mode<synchronous>, transform_indices = @transform_5, window_bounds = array<i64: 1, 128>}, {pipeline_mode = #tpu.pipeline_mode<synchronous>, transform_indices = @transform_6, window_bounds = array<i64: 512, 128>}, {pipeline_mode = #tpu.pipeline_mode<synchronous>, transform_indices = @transform_7, window_bounds = array<i64: 1, 128>}, {pipeline_mode = #tpu.pipeline_mode<synchronous>, transform_indices = @transform_8, window_bounds = array<i64: 1, 128>}, {pipeline_mode = #tpu.pipeline_mode<synchronous>, transform_indices = @transform_9, window_bounds = array<i64: 1, 128>}, {pipeline_mode = #tpu.pipeline_mode<synchronous>, transform_indices = @transform_10, window_bounds = array<i64: 128, 128>}, {pipeline_mode = #tpu.pipeline_mode<synchronous>, transform_indices = @transform_11, window_bounds = array<i64: 1, 128>}, {pipeline_mode = #tpu.pipeline_mode<synchronous>, transform_indices = @transform_12, window_bounds = array<i64: 128, 128>}, {pipeline_mode = #tpu.pipeline_mode<synchronous>, transform_indices = @transform_13, window_bounds = array<i64: 1, 128>}, {pipeline_mode = #tpu.pipeline_mode<synchronous>, transform_indices = @transform_14, window_bounds = array<i64: 128, 128>}, {pipeline_mode = #tpu.pipeline_mode<synchronous>, transform_indices = @transform_15, window_bounds = array<i64: 1, 128>}, {pipeline_mode = #tpu.pipeline_mode<synchronous>, transform_indices = @transform_16, window_bounds = array<i64: 1, 128>}, {pipeline_mode = #tpu.pipeline_mode<synchronous>, transform_indices = @transform_17, window_bounds = array<i64: 1, 128>}, {pipeline_mode = #tpu.pipeline_mode<synchronous>, transform_indices = @transform_18, window_bounds = array<i64: 128, 256>}, {pipeline_mode = #tpu.pipeline_mode<synchronous>, transform_indices = @transform_19, window_bounds = array<i64: 1, 256>}, {pipeline_mode = #tpu.pipeline_mode<synchronous>, transform_indices = @transform_20, window_bounds = array<i64: 256, 128>}, {pipeline_mode = #tpu.pipeline_mode<synchronous>, transform_indices = @transform_21, window_bounds = array<i64: 1, 128>}, {transform_indices = @transform_22, window_bounds = array<i64: 1, 16, 128>}]} {
    %c0 = arith.constant 0 : index
    %c0_0 = arith.constant 0 : index
    %c0_1 = arith.constant 0 : index
    %0 = vector.load %arg1[%c0, %c0_0, %c0_1] : memref<1x16x128xf32, #tpu.memory_space<vmem>>, vector<1x16x128xf32>
    %1 = vector.shape_cast %0 : vector<1x16x128xf32> to vector<16x128xf32>
    %c0_2 = arith.constant 0 : index
    %c0_3 = arith.constant 0 : index
    %2 = vector.load %arg3[%c0_2, %c0_3] : memref<1x128xf32, #tpu.memory_space<vmem>>, vector<1x128xf32>
    %c0_4 = arith.constant 0 : index
    %c0_5 = arith.constant 0 : index
    %3 = vector.load %arg4[%c0_4, %c0_5] : memref<1x128xf32, #tpu.memory_space<vmem>>, vector<1x128xf32>
    %cst = arith.constant dense<0.000000e+00> : vector<16xf32>
    %4 = vector.multi_reduction <add>, %1, %cst [1] : vector<16x128xf32> to vector<16xf32>
    %5 = vector.shape_cast %4 : vector<16xf32> to vector<16x1xf32>
    %cst_6 = arith.constant 1.280000e+02 : f32
    %6 = vector.broadcast %cst_6 : f32 to vector<16x1xf32>
    %7 = arith.divf %5, %6 : vector<16x1xf32>
    %8 = vector.broadcast %7 : vector<16x1xf32> to vector<16x128xf32>
    %9 = arith.subf %1, %8 : vector<16x128xf32>
    %10 = arith.mulf %9, %9 : vector<16x128xf32>
    %cst_7 = arith.constant dense<0.000000e+00> : vector<16xf32>
    %11 = vector.multi_reduction <add>, %10, %cst_7 [1] : vector<16x128xf32> to vector<16xf32>
    %12 = vector.shape_cast %11 : vector<16xf32> to vector<16x1xf32>
    %cst_8 = arith.constant 1.280000e+02 : f32
    %13 = vector.broadcast %cst_8 : f32 to vector<16x1xf32>
    %14 = arith.divf %12, %13 : vector<16x1xf32>
    %15 = vector.broadcast %7 : vector<16x1xf32> to vector<16x128xf32>
    %16 = arith.subf %1, %15 : vector<16x128xf32>
    %cst_9 = arith.constant 9.99999974E-6 : f32
    %17 = vector.broadcast %cst_9 : f32 to vector<16x1xf32>
    %18 = arith.addf %14, %17 : vector<16x1xf32>
    %19 = math.rsqrt %18 : vector<16x1xf32>
    %20 = vector.broadcast %19 : vector<16x1xf32> to vector<16x128xf32>
    %21 = arith.mulf %16, %20 : vector<16x128xf32>
    %22 = vector.broadcast %2 : vector<1x128xf32> to vector<16x128xf32>
    %23 = arith.mulf %21, %22 : vector<16x128xf32>
    %24 = vector.broadcast %3 : vector<1x128xf32> to vector<16x128xf32>
    %25 = arith.addf %23, %24 : vector<16x128xf32>
    %26 = arith.truncf %25 : vector<16x128xf32> to vector<16x128xbf16>
    %c0_10 = arith.constant 0 : index
    %c0_11 = arith.constant 0 : index
    %27 = vector.load %arg5[%c0_10, %c0_11] : memref<128x128xbf16, #tpu.memory_space<vmem>>, vector<128x128xbf16>
    %cst_12 = arith.constant dense<0.000000e+00> : vector<16x128xf32>
    %28 = tpu.matmul %26, %27, %cst_12 {dimension_numbers = #tpu.dot_dimension_numbers<[1], [0], [0], [1], [0, 0, 1, 1], [], []>} : vector<16x128xbf16>, vector<128x128xbf16>, vector<16x128xf32> -> vector<16x128xf32>
    %c0_13 = arith.constant 0 : index
    %c0_14 = arith.constant 0 : index
    %29 = vector.load %arg6[%c0_13, %c0_14] : memref<1x128xf32, #tpu.memory_space<vmem>>, vector<1x128xf32>
    %30 = vector.broadcast %29 : vector<1x128xf32> to vector<16x128xf32>
    %31 = arith.addf %28, %30 : vector<16x128xf32>
    %32 = vector.extract_strided_slice %31 {offsets = [0, 0], sizes = [16, 64], strides = [1, 1]} : vector<16x128xf32> to vector<16x64xf32>
    %33 = vector.extract_strided_slice %31 {offsets = [0, 64], sizes = [16, 64], strides = [1, 1]} : vector<16x128xf32> to vector<16x64xf32>
    %c0_15 = arith.constant 0 : index
    %c0_16 = arith.constant 0 : index
    %34 = vector.load %arg13[%c0_15, %c0_16] : memref<128x128xbf16, #tpu.memory_space<vmem>>, vector<128x128xbf16>
    %cst_17 = arith.constant dense<0.000000e+00> : vector<16x128xf32>
    %35 = tpu.matmul %26, %34, %cst_17 {dimension_numbers = #tpu.dot_dimension_numbers<[1], [0], [0], [1], [0, 0, 1, 1], [], []>} : vector<16x128xbf16>, vector<128x128xbf16>, vector<16x128xf32> -> vector<16x128xf32>
    %c0_18 = arith.constant 0 : index
    %c0_19 = arith.constant 0 : index
    %36 = vector.load %arg14[%c0_18, %c0_19] : memref<1x128xf32, #tpu.memory_space<vmem>>, vector<1x128xf32>
    %37 = vector.broadcast %36 : vector<1x128xf32> to vector<16x128xf32>
    %38 = arith.addf %35, %37 : vector<16x128xf32>
    %39 = vector.extract_strided_slice %38 {offsets = [0, 0], sizes = [16, 64], strides = [1, 1]} : vector<16x128xf32> to vector<16x64xf32>
    %40 = vector.extract_strided_slice %38 {offsets = [0, 64], sizes = [16, 64], strides = [1, 1]} : vector<16x128xf32> to vector<16x64xf32>
    %c0_20 = arith.constant 0 : index
    %c0_21 = arith.constant 0 : index
    %c0_22 = arith.constant 0 : index
    %41 = vector.load %arg2[%c0_20, %c0_21, %c0_22] : memref<1x4x512xf32, #tpu.memory_space<vmem>>, vector<1x4x512xf32>
    %42 = vector.shape_cast %41 : vector<1x4x512xf32> to vector<4x512xf32>
    %cst_23 = arith.constant 0.000000e+00 : f32
    %43 = vector.broadcast %cst_23 : f32 to vector<4x128xf32>
    %44 = vector.extract_strided_slice %42 {offsets = [0, 0], sizes = [4, 128], strides = [1, 1]} : vector<4x512xf32> to vector<4x128xf32>
    %c0_24 = arith.constant 0 : index
    %c0_25 = arith.constant 0 : index
    %45 = vector.load %arg3[%c0_24, %c0_25] : memref<1x128xf32, #tpu.memory_space<vmem>>, vector<1x128xf32>
    %c0_26 = arith.constant 0 : index
    %c0_27 = arith.constant 0 : index
    %46 = vector.load %arg4[%c0_26, %c0_27] : memref<1x128xf32, #tpu.memory_space<vmem>>, vector<1x128xf32>
    %cst_28 = arith.constant dense<0.000000e+00> : vector<4xf32>
    %47 = vector.multi_reduction <add>, %44, %cst_28 [1] : vector<4x128xf32> to vector<4xf32>
    %48 = vector.shape_cast %47 : vector<4xf32> to vector<4x1xf32>
    %cst_29 = arith.constant 1.280000e+02 : f32
    %49 = vector.broadcast %cst_29 : f32 to vector<4x1xf32>
    %50 = arith.divf %48, %49 : vector<4x1xf32>
    %51 = vector.broadcast %50 : vector<4x1xf32> to vector<4x128xf32>
    %52 = arith.subf %44, %51 : vector<4x128xf32>
    %53 = arith.mulf %52, %52 : vector<4x128xf32>
    %cst_30 = arith.constant dense<0.000000e+00> : vector<4xf32>
    %54 = vector.multi_reduction <add>, %53, %cst_30 [1] : vector<4x128xf32> to vector<4xf32>
    %55 = vector.shape_cast %54 : vector<4xf32> to vector<4x1xf32>
    %cst_31 = arith.constant 1.280000e+02 : f32
    %56 = vector.broadcast %cst_31 : f32 to vector<4x1xf32>
    %57 = arith.divf %55, %56 : vector<4x1xf32>
    %58 = vector.broadcast %50 : vector<4x1xf32> to vector<4x128xf32>
    %59 = arith.subf %44, %58 : vector<4x128xf32>
    %cst_32 = arith.constant 9.99999974E-6 : f32
    %60 = vector.broadcast %cst_32 : f32 to vector<4x1xf32>
    %61 = arith.addf %57, %60 : vector<4x1xf32>
    %62 = math.rsqrt %61 : vector<4x1xf32>
    %63 = vector.broadcast %62 : vector<4x1xf32> to vector<4x128xf32>
    %64 = arith.mulf %59, %63 : vector<4x128xf32>
    %65 = vector.broadcast %45 : vector<1x128xf32> to vector<4x128xf32>
    %66 = arith.mulf %64, %65 : vector<4x128xf32>
    %67 = vector.broadcast %46 : vector<1x128xf32> to vector<4x128xf32>
    %68 = arith.addf %66, %67 : vector<4x128xf32>
    %69 = arith.truncf %68 : vector<4x128xf32> to vector<4x128xbf16>
    %c0_33 = arith.constant 0 : index
    %c0_34 = arith.constant 0 : index
    %70 = vector.load %arg7[%c0_33, %c0_34] : memref<512x128xbf16, #tpu.memory_space<vmem>>, vector<128x128xbf16>
    %cst_35 = arith.constant dense<0.000000e+00> : vector<4x128xf32>
    %71 = tpu.matmul %69, %70, %cst_35 {dimension_numbers = #tpu.dot_dimension_numbers<[1], [0], [0], [1], [0, 0, 1, 1], [], []>} : vector<4x128xbf16>, vector<128x128xbf16>, vector<4x128xf32> -> vector<4x128xf32>
    %72 = arith.addf %43, %71 : vector<4x128xf32>
    %73 = vector.extract_strided_slice %42 {offsets = [0, 128], sizes = [4, 128], strides = [1, 1]} : vector<4x512xf32> to vector<4x128xf32>
    %c0_36 = arith.constant 0 : index
    %c0_37 = arith.constant 0 : index
    %74 = vector.load %arg3[%c0_36, %c0_37] : memref<1x128xf32, #tpu.memory_space<vmem>>, vector<1x128xf32>
    %c0_38 = arith.constant 0 : index
    %c0_39 = arith.constant 0 : index
    %75 = vector.load %arg4[%c0_38, %c0_39] : memref<1x128xf32, #tpu.memory_space<vmem>>, vector<1x128xf32>
    %cst_40 = arith.constant dense<0.000000e+00> : vector<4xf32>
    %76 = vector.multi_reduction <add>, %73, %cst_40 [1] : vector<4x128xf32> to vector<4xf32>
    %77 = vector.shape_cast %76 : vector<4xf32> to vector<4x1xf32>
    %cst_41 = arith.constant 1.280000e+02 : f32
    %78 = vector.broadcast %cst_41 : f32 to vector<4x1xf32>
    %79 = arith.divf %77, %78 : vector<4x1xf32>
    %80 = vector.broadcast %79 : vector<4x1xf32> to vector<4x128xf32>
    %81 = arith.subf %73, %80 : vector<4x128xf32>
    %82 = arith.mulf %81, %81 : vector<4x128xf32>
    %cst_42 = arith.constant dense<0.000000e+00> : vector<4xf32>
    %83 = vector.multi_reduction <add>, %82, %cst_42 [1] : vector<4x128xf32> to vector<4xf32>
    %84 = vector.shape_cast %83 : vector<4xf32> to vector<4x1xf32>
    %cst_43 = arith.constant 1.280000e+02 : f32
    %85 = vector.broadcast %cst_43 : f32 to vector<4x1xf32>
    %86 = arith.divf %84, %85 : vector<4x1xf32>
    %87 = vector.broadcast %79 : vector<4x1xf32> to vector<4x128xf32>
    %88 = arith.subf %73, %87 : vector<4x128xf32>
    %cst_44 = arith.constant 9.99999974E-6 : f32
    %89 = vector.broadcast %cst_44 : f32 to vector<4x1xf32>
    %90 = arith.addf %86, %89 : vector<4x1xf32>
    %91 = math.rsqrt %90 : vector<4x1xf32>
    %92 = vector.broadcast %91 : vector<4x1xf32> to vector<4x128xf32>
    %93 = arith.mulf %88, %92 : vector<4x128xf32>
    %94 = vector.broadcast %74 : vector<1x128xf32> to vector<4x128xf32>
    %95 = arith.mulf %93, %94 : vector<4x128xf32>
    %96 = vector.broadcast %75 : vector<1x128xf32> to vector<4x128xf32>
    %97 = arith.addf %95, %96 : vector<4x128xf32>
    %98 = arith.truncf %97 : vector<4x128xf32> to vector<4x128xbf16>
    %c128 = arith.constant 128 : index
    %c0_45 = arith.constant 0 : index
    %99 = vector.load %arg7[%c128, %c0_45] : memref<512x128xbf16, #tpu.memory_space<vmem>>, vector<128x128xbf16>
    %cst_46 = arith.constant dense<0.000000e+00> : vector<4x128xf32>
    %100 = tpu.matmul %98, %99, %cst_46 {dimension_numbers = #tpu.dot_dimension_numbers<[1], [0], [0], [1], [0, 0, 1, 1], [], []>} : vector<4x128xbf16>, vector<128x128xbf16>, vector<4x128xf32> -> vector<4x128xf32>
    %101 = arith.addf %72, %100 : vector<4x128xf32>
    %102 = vector.extract_strided_slice %42 {offsets = [0, 256], sizes = [4, 128], strides = [1, 1]} : vector<4x512xf32> to vector<4x128xf32>
    %c0_47 = arith.constant 0 : index
    %c0_48 = arith.constant 0 : index
    %103 = vector.load %arg3[%c0_47, %c0_48] : memref<1x128xf32, #tpu.memory_space<vmem>>, vector<1x128xf32>
    %c0_49 = arith.constant 0 : index
    %c0_50 = arith.constant 0 : index
    %104 = vector.load %arg4[%c0_49, %c0_50] : memref<1x128xf32, #tpu.memory_space<vmem>>, vector<1x128xf32>
    %cst_51 = arith.constant dense<0.000000e+00> : vector<4xf32>
    %105 = vector.multi_reduction <add>, %102, %cst_51 [1] : vector<4x128xf32> to vector<4xf32>
    %106 = vector.shape_cast %105 : vector<4xf32> to vector<4x1xf32>
    %cst_52 = arith.constant 1.280000e+02 : f32
    %107 = vector.broadcast %cst_52 : f32 to vector<4x1xf32>
    %108 = arith.divf %106, %107 : vector<4x1xf32>
    %109 = vector.broadcast %108 : vector<4x1xf32> to vector<4x128xf32>
    %110 = arith.subf %102, %109 : vector<4x128xf32>
    %111 = arith.mulf %110, %110 : vector<4x128xf32>
    %cst_53 = arith.constant dense<0.000000e+00> : vector<4xf32>
    %112 = vector.multi_reduction <add>, %111, %cst_53 [1] : vector<4x128xf32> to vector<4xf32>
    %113 = vector.shape_cast %112 : vector<4xf32> to vector<4x1xf32>
    %cst_54 = arith.constant 1.280000e+02 : f32
    %114 = vector.broadcast %cst_54 : f32 to vector<4x1xf32>
    %115 = arith.divf %113, %114 : vector<4x1xf32>
    %116 = vector.broadcast %108 : vector<4x1xf32> to vector<4x128xf32>
    %117 = arith.subf %102, %116 : vector<4x128xf32>
    %cst_55 = arith.constant 9.99999974E-6 : f32
    %118 = vector.broadcast %cst_55 : f32 to vector<4x1xf32>
    %119 = arith.addf %115, %118 : vector<4x1xf32>
    %120 = math.rsqrt %119 : vector<4x1xf32>
    %121 = vector.broadcast %120 : vector<4x1xf32> to vector<4x128xf32>
    %122 = arith.mulf %117, %121 : vector<4x128xf32>
    %123 = vector.broadcast %103 : vector<1x128xf32> to vector<4x128xf32>
    %124 = arith.mulf %122, %123 : vector<4x128xf32>
    %125 = vector.broadcast %104 : vector<1x128xf32> to vector<4x128xf32>
    %126 = arith.addf %124, %125 : vector<4x128xf32>
    %127 = arith.truncf %126 : vector<4x128xf32> to vector<4x128xbf16>
    %c256 = arith.constant 256 : index
    %c0_56 = arith.constant 0 : index
    %128 = vector.load %arg7[%c256, %c0_56] : memref<512x128xbf16, #tpu.memory_space<vmem>>, vector<128x128xbf16>
    %cst_57 = arith.constant dense<0.000000e+00> : vector<4x128xf32>
    %129 = tpu.matmul %127, %128, %cst_57 {dimension_numbers = #tpu.dot_dimension_numbers<[1], [0], [0], [1], [0, 0, 1, 1], [], []>} : vector<4x128xbf16>, vector<128x128xbf16>, vector<4x128xf32> -> vector<4x128xf32>
    %130 = arith.addf %101, %129 : vector<4x128xf32>
    %131 = vector.extract_strided_slice %42 {offsets = [0, 384], sizes = [4, 128], strides = [1, 1]} : vector<4x512xf32> to vector<4x128xf32>
    %c0_58 = arith.constant 0 : index
    %c0_59 = arith.constant 0 : index
    %132 = vector.load %arg3[%c0_58, %c0_59] : memref<1x128xf32, #tpu.memory_space<vmem>>, vector<1x128xf32>
    %c0_60 = arith.constant 0 : index
    %c0_61 = arith.constant 0 : index
    %133 = vector.load %arg4[%c0_60, %c0_61] : memref<1x128xf32, #tpu.memory_space<vmem>>, vector<1x128xf32>
    %cst_62 = arith.constant dense<0.000000e+00> : vector<4xf32>
    %134 = vector.multi_reduction <add>, %131, %cst_62 [1] : vector<4x128xf32> to vector<4xf32>
    %135 = vector.shape_cast %134 : vector<4xf32> to vector<4x1xf32>
    %cst_63 = arith.constant 1.280000e+02 : f32
    %136 = vector.broadcast %cst_63 : f32 to vector<4x1xf32>
    %137 = arith.divf %135, %136 : vector<4x1xf32>
    %138 = vector.broadcast %137 : vector<4x1xf32> to vector<4x128xf32>
    %139 = arith.subf %131, %138 : vector<4x128xf32>
    %140 = arith.mulf %139, %139 : vector<4x128xf32>
    %cst_64 = arith.constant dense<0.000000e+00> : vector<4xf32>
    %141 = vector.multi_reduction <add>, %140, %cst_64 [1] : vector<4x128xf32> to vector<4xf32>
    %142 = vector.shape_cast %141 : vector<4xf32> to vector<4x1xf32>
    %cst_65 = arith.constant 1.280000e+02 : f32
    %143 = vector.broadcast %cst_65 : f32 to vector<4x1xf32>
    %144 = arith.divf %142, %143 : vector<4x1xf32>
    %145 = vector.broadcast %137 : vector<4x1xf32> to vector<4x128xf32>
    %146 = arith.subf %131, %145 : vector<4x128xf32>
    %cst_66 = arith.constant 9.99999974E-6 : f32
    %147 = vector.broadcast %cst_66 : f32 to vector<4x1xf32>
    %148 = arith.addf %144, %147 : vector<4x1xf32>
    %149 = math.rsqrt %148 : vector<4x1xf32>
    %150 = vector.broadcast %149 : vector<4x1xf32> to vector<4x128xf32>
    %151 = arith.mulf %146, %150 : vector<4x128xf32>
    %152 = vector.broadcast %132 : vector<1x128xf32> to vector<4x128xf32>
    %153 = arith.mulf %151, %152 : vector<4x128xf32>
    %154 = vector.broadcast %133 : vector<1x128xf32> to vector<4x128xf32>
    %155 = arith.addf %153, %154 : vector<4x128xf32>
    %156 = arith.truncf %155 : vector<4x128xf32> to vector<4x128xbf16>
    %c384 = arith.constant 384 : index
    %c0_67 = arith.constant 0 : index
    %157 = vector.load %arg7[%c384, %c0_67] : memref<512x128xbf16, #tpu.memory_space<vmem>>, vector<128x128xbf16>
    %cst_68 = arith.constant dense<0.000000e+00> : vector<4x128xf32>
    %158 = tpu.matmul %156, %157, %cst_68 {dimension_numbers = #tpu.dot_dimension_numbers<[1], [0], [0], [1], [0, 0, 1, 1], [], []>} : vector<4x128xbf16>, vector<128x128xbf16>, vector<4x128xf32> -> vector<4x128xf32>
    %159 = arith.addf %130, %158 : vector<4x128xf32>
    %c0_69 = arith.constant 0 : index
    %c0_70 = arith.constant 0 : index
    %160 = vector.load %arg8[%c0_69, %c0_70] : memref<1x128xf32, #tpu.memory_space<vmem>>, vector<1x128xf32>
    %161 = vector.broadcast %160 : vector<1x128xf32> to vector<4x128xf32>
    %162 = arith.addf %159, %161 : vector<4x128xf32>
    %c0_71 = arith.constant 0 : index
    %c0_72 = arith.constant 0 : index
    %163 = vector.load %arg9[%c0_71, %c0_72] : memref<1x128xf32, #tpu.memory_space<vmem>>, vector<1x128xf32>
    %c0_73 = arith.constant 0 : index
    %c0_74 = arith.constant 0 : index
    %164 = vector.load %arg10[%c0_73, %c0_74] : memref<1x128xf32, #tpu.memory_space<vmem>>, vector<1x128xf32>
    %cst_75 = arith.constant dense<0.000000e+00> : vector<4xf32>
    %165 = vector.multi_reduction <add>, %162, %cst_75 [1] : vector<4x128xf32> to vector<4xf32>
    %166 = vector.shape_cast %165 : vector<4xf32> to vector<4x1xf32>
    %cst_76 = arith.constant 1.280000e+02 : f32
    %167 = vector.broadcast %cst_76 : f32 to vector<4x1xf32>
    %168 = arith.divf %166, %167 : vector<4x1xf32>
    %169 = vector.broadcast %168 : vector<4x1xf32> to vector<4x128xf32>
    %170 = arith.subf %162, %169 : vector<4x128xf32>
    %171 = arith.mulf %170, %170 : vector<4x128xf32>
    %cst_77 = arith.constant dense<0.000000e+00> : vector<4xf32>
    %172 = vector.multi_reduction <add>, %171, %cst_77 [1] : vector<4x128xf32> to vector<4xf32>
    %173 = vector.shape_cast %172 : vector<4xf32> to vector<4x1xf32>
    %cst_78 = arith.constant 1.280000e+02 : f32
    %174 = vector.broadcast %cst_78 : f32 to vector<4x1xf32>
    %175 = arith.divf %173, %174 : vector<4x1xf32>
    %176 = vector.broadcast %168 : vector<4x1xf32> to vector<4x128xf32>
    %177 = arith.subf %162, %176 : vector<4x128xf32>
    %cst_79 = arith.constant 9.99999974E-6 : f32
    %178 = vector.broadcast %cst_79 : f32 to vector<4x1xf32>
    %179 = arith.addf %175, %178 : vector<4x1xf32>
    %180 = math.rsqrt %179 : vector<4x1xf32>
    %181 = vector.broadcast %180 : vector<4x1xf32> to vector<4x128xf32>
    %182 = arith.mulf %177, %181 : vector<4x128xf32>
    %183 = vector.broadcast %163 : vector<1x128xf32> to vector<4x128xf32>
    %184 = arith.mulf %182, %183 : vector<4x128xf32>
    %185 = vector.broadcast %164 : vector<1x128xf32> to vector<4x128xf32>
    %186 = arith.addf %184, %185 : vector<4x128xf32>
    %187 = arith.truncf %186 : vector<4x128xf32> to vector<4x128xbf16>
    %c0_80 = arith.constant 0 : index
    %c0_81 = arith.constant 0 : index
    %188 = vector.load %arg11[%c0_80, %c0_81] : memref<128x128xbf16, #tpu.memory_space<vmem>>, vector<128x128xbf16>
    %cst_82 = arith.constant dense<0.000000e+00> : vector<4x128xf32>
    %189 = tpu.matmul %187, %188, %cst_82 {dimension_numbers = #tpu.dot_dimension_numbers<[1], [0], [0], [1], [0, 0, 1, 1], [], []>} : vector<4x128xbf16>, vector<128x128xbf16>, vector<4x128xf32> -> vector<4x128xf32>
    %c0_83 = arith.constant 0 : index
    %c0_84 = arith.constant 0 : index
    %190 = vector.load %arg12[%c0_83, %c0_84] : memref<1x128xf32, #tpu.memory_space<vmem>>, vector<1x128xf32>
    %191 = vector.broadcast %190 : vector<1x128xf32> to vector<4x128xf32>
    %192 = arith.addf %189, %191 : vector<4x128xf32>
    %193 = vector.extract_strided_slice %192 {offsets = [0, 0], sizes = [4, 64], strides = [1, 1]} : vector<4x128xf32> to vector<4x64xf32>
    %194 = vector.extract_strided_slice %192 {offsets = [0, 64], sizes = [4, 64], strides = [1, 1]} : vector<4x128xf32> to vector<4x64xf32>
    %195 = arith.truncf %32 : vector<16x64xf32> to vector<16x64xbf16>
    %196 = arith.truncf %193 : vector<4x64xf32> to vector<4x64xbf16>
    %cst_85 = arith.constant dense<0.000000e+00> : vector<16x4xf32>
    %197 = tpu.matmul %195, %196, %cst_85 {dimension_numbers = #tpu.dot_dimension_numbers<[1], [1], [0], [0], [0, 0, 1, 0], [], []>} : vector<16x64xbf16>, vector<4x64xbf16>, vector<16x4xf32> -> vector<16x4xf32>
    %cst_86 = arith.constant 1.250000e-01 : f32
    %198 = vector.broadcast %cst_86 : f32 to vector<16x4xf32>
    %199 = arith.mulf %197, %198 : vector<16x4xf32>
    %cst_87 = arith.constant dense<0xFF800000> : vector<16xf32>
    %200 = vector.multi_reduction <maximumf>, %199, %cst_87 [1] : vector<16x4xf32> to vector<16xf32>
    %201 = vector.shape_cast %200 : vector<16xf32> to vector<16x1xf32>
    %202 = vector.broadcast %201 : vector<16x1xf32> to vector<16x4xf32>
    %203 = arith.subf %199, %202 : vector<16x4xf32>
    %204 = math.exp %203 : vector<16x4xf32>
    %cst_88 = arith.constant dense<0.000000e+00> : vector<16xf32>
    %205 = vector.multi_reduction <add>, %204, %cst_88 [1] : vector<16x4xf32> to vector<16xf32>
    %206 = vector.shape_cast %205 : vector<16xf32> to vector<16x1xf32>
    %207 = arith.truncf %204 : vector<16x4xf32> to vector<16x4xbf16>
    %208 = arith.truncf %194 : vector<4x64xf32> to vector<4x64xbf16>
    %cst_89 = arith.constant dense<0.000000e+00> : vector<16x64xf32>
    %209 = tpu.matmul %207, %208, %cst_89 {dimension_numbers = #tpu.dot_dimension_numbers<[1], [0], [0], [1], [0, 0, 1, 1], [], []>} : vector<16x4xbf16>, vector<4x64xbf16>, vector<16x64xf32> -> vector<16x64xf32>
    %210 = tpu.reciprocal %206 {approx = true} : vector<16x1xf32> -> vector<16x1xf32>
    %211 = vector.broadcast %210 : vector<16x1xf32> to vector<16x64xf32>
    %212 = arith.mulf %209, %211 : vector<16x64xf32>
    %213 = arith.truncf %33 : vector<16x64xf32> to vector<16x64xbf16>
    %214 = arith.truncf %39 : vector<16x64xf32> to vector<16x64xbf16>
    %cst_90 = arith.constant dense<0.000000e+00> : vector<16x16xf32>
    %215 = tpu.matmul %213, %214, %cst_90 {dimension_numbers = #tpu.dot_dimension_numbers<[1], [1], [0], [0], [0, 0, 1, 0], [], []>} : vector<16x64xbf16>, vector<16x64xbf16>, vector<16x16xf32> -> vector<16x16xf32>
    %cst_91 = arith.constant 1.250000e-01 : f32
    %216 = vector.broadcast %cst_91 : f32 to vector<16x16xf32>
    %217 = arith.mulf %215, %216 : vector<16x16xf32>
    %cst_92 = arith.constant dense<0xFF800000> : vector<16xf32>
    %218 = vector.multi_reduction <maximumf>, %217, %cst_92 [1] : vector<16x16xf32> to vector<16xf32>
    %219 = vector.shape_cast %218 : vector<16xf32> to vector<16x1xf32>
    %220 = vector.broadcast %219 : vector<16x1xf32> to vector<16x16xf32>
    %221 = arith.subf %217, %220 : vector<16x16xf32>
    %222 = math.exp %221 : vector<16x16xf32>
    %cst_93 = arith.constant dense<0.000000e+00> : vector<16xf32>
    %223 = vector.multi_reduction <add>, %222, %cst_93 [1] : vector<16x16xf32> to vector<16xf32>
    %224 = vector.shape_cast %223 : vector<16xf32> to vector<16x1xf32>
    %225 = arith.truncf %222 : vector<16x16xf32> to vector<16x16xbf16>
    %226 = arith.truncf %40 : vector<16x64xf32> to vector<16x64xbf16>
    %cst_94 = arith.constant dense<0.000000e+00> : vector<16x64xf32>
    %227 = tpu.matmul %225, %226, %cst_94 {dimension_numbers = #tpu.dot_dimension_numbers<[1], [0], [0], [1], [0, 0, 1, 1], [], []>} : vector<16x16xbf16>, vector<16x64xbf16>, vector<16x64xf32> -> vector<16x64xf32>
    %228 = tpu.reciprocal %224 {approx = true} : vector<16x1xf32> -> vector<16x1xf32>
    %229 = vector.broadcast %228 : vector<16x1xf32> to vector<16x64xf32>
    %230 = arith.mulf %227, %229 : vector<16x64xf32>
    %231 = tpu.concatenate %212, %230 in 1 : vector<16x64xf32>, vector<16x64xf32> -> vector<16x128xf32>
    %232 = arith.truncf %231 : vector<16x128xf32> to vector<16x128xbf16>
    %c0_95 = arith.constant 0 : index
    %c0_96 = arith.constant 0 : index
    %233 = vector.load %arg15[%c0_95, %c0_96] : memref<128x128xbf16, #tpu.memory_space<vmem>>, vector<128x128xbf16>
    %cst_97 = arith.constant dense<0.000000e+00> : vector<16x128xf32>
    %234 = tpu.matmul %232, %233, %cst_97 {dimension_numbers = #tpu.dot_dimension_numbers<[1], [0], [0], [1], [0, 0, 1, 1], [], []>} : vector<16x128xbf16>, vector<128x128xbf16>, vector<16x128xf32> -> vector<16x128xf32>
    %c0_98 = arith.constant 0 : index
    %c0_99 = arith.constant 0 : index
    %235 = vector.load %arg16[%c0_98, %c0_99] : memref<1x128xf32, #tpu.memory_space<vmem>>, vector<1x128xf32>
    %236 = vector.broadcast %235 : vector<1x128xf32> to vector<16x128xf32>
    %237 = arith.addf %234, %236 : vector<16x128xf32>
    %238 = arith.addf %1, %237 : vector<16x128xf32>
    %c0_100 = arith.constant 0 : index
    %c0_101 = arith.constant 0 : index
    %239 = vector.load %arg17[%c0_100, %c0_101] : memref<1x128xf32, #tpu.memory_space<vmem>>, vector<1x128xf32>
    %c0_102 = arith.constant 0 : index
    %c0_103 = arith.constant 0 : index
    %240 = vector.load %arg18[%c0_102, %c0_103] : memref<1x128xf32, #tpu.memory_space<vmem>>, vector<1x128xf32>
    %cst_104 = arith.constant dense<0.000000e+00> : vector<16xf32>
    %241 = vector.multi_reduction <add>, %238, %cst_104 [1] : vector<16x128xf32> to vector<16xf32>
    %242 = vector.shape_cast %241 : vector<16xf32> to vector<16x1xf32>
    %cst_105 = arith.constant 1.280000e+02 : f32
    %243 = vector.broadcast %cst_105 : f32 to vector<16x1xf32>
    %244 = arith.divf %242, %243 : vector<16x1xf32>
    %245 = vector.broadcast %244 : vector<16x1xf32> to vector<16x128xf32>
    %246 = arith.subf %238, %245 : vector<16x128xf32>
    %247 = arith.mulf %246, %246 : vector<16x128xf32>
    %cst_106 = arith.constant dense<0.000000e+00> : vector<16xf32>
    %248 = vector.multi_reduction <add>, %247, %cst_106 [1] : vector<16x128xf32> to vector<16xf32>
    %249 = vector.shape_cast %248 : vector<16xf32> to vector<16x1xf32>
    %cst_107 = arith.constant 1.280000e+02 : f32
    %250 = vector.broadcast %cst_107 : f32 to vector<16x1xf32>
    %251 = arith.divf %249, %250 : vector<16x1xf32>
    %252 = vector.broadcast %244 : vector<16x1xf32> to vector<16x128xf32>
    %253 = arith.subf %238, %252 : vector<16x128xf32>
    %cst_108 = arith.constant 9.99999974E-6 : f32
    %254 = vector.broadcast %cst_108 : f32 to vector<16x1xf32>
    %255 = arith.addf %251, %254 : vector<16x1xf32>
    %256 = math.rsqrt %255 : vector<16x1xf32>
    %257 = vector.broadcast %256 : vector<16x1xf32> to vector<16x128xf32>
    %258 = arith.mulf %253, %257 : vector<16x128xf32>
    %259 = vector.broadcast %239 : vector<1x128xf32> to vector<16x128xf32>
    %260 = arith.mulf %258, %259 : vector<16x128xf32>
    %261 = vector.broadcast %240 : vector<1x128xf32> to vector<16x128xf32>
    %262 = arith.addf %260, %261 : vector<16x128xf32>
    %263 = arith.truncf %262 : vector<16x128xf32> to vector<16x128xbf16>
    %c0_109 = arith.constant 0 : index
    %c0_110 = arith.constant 0 : index
    %264 = vector.load %arg19[%c0_109, %c0_110] : memref<128x256xbf16, #tpu.memory_space<vmem>>, vector<128x256xbf16>
    %cst_111 = arith.constant dense<0.000000e+00> : vector<16x256xf32>
    %265 = tpu.matmul %263, %264, %cst_111 {dimension_numbers = #tpu.dot_dimension_numbers<[1], [0], [0], [1], [0, 0, 1, 1], [], []>} : vector<16x128xbf16>, vector<128x256xbf16>, vector<16x256xf32> -> vector<16x256xf32>
    %c0_112 = arith.constant 0 : index
    %c0_113 = arith.constant 0 : index
    %266 = vector.load %arg20[%c0_112, %c0_113] : memref<1x256xf32, #tpu.memory_space<vmem>>, vector<1x256xf32>
    %267 = vector.broadcast %266 : vector<1x256xf32> to vector<16x256xf32>
    %268 = arith.addf %265, %267 : vector<16x256xf32>
    %269 = arith.mulf %268, %268 : vector<16x256xf32>
    %270 = arith.mulf %268, %269 : vector<16x256xf32>
    %cst_114 = arith.constant 4.471500e-02 : f32
    %271 = vector.broadcast %cst_114 : f32 to vector<16x256xf32>
    %272 = arith.mulf %271, %270 : vector<16x256xf32>
    %273 = arith.addf %268, %272 : vector<16x256xf32>
    %cst_115 = arith.constant 0.797884583 : f32
    %274 = vector.broadcast %cst_115 : f32 to vector<16x256xf32>
    %275 = arith.mulf %274, %273 : vector<16x256xf32>
    %276 = math.tanh %275 : vector<16x256xf32>
    %cst_116 = arith.constant 1.000000e+00 : f32
    %277 = vector.broadcast %cst_116 : f32 to vector<16x256xf32>
    %278 = arith.addf %277, %276 : vector<16x256xf32>
    %cst_117 = arith.constant 5.000000e-01 : f32
    %279 = vector.broadcast %cst_117 : f32 to vector<16x256xf32>
    %280 = arith.mulf %279, %278 : vector<16x256xf32>
    %281 = arith.mulf %268, %280 : vector<16x256xf32>
    %282 = arith.truncf %281 : vector<16x256xf32> to vector<16x256xbf16>
    %c0_118 = arith.constant 0 : index
    %c0_119 = arith.constant 0 : index
    %283 = vector.load %arg21[%c0_118, %c0_119] : memref<256x128xbf16, #tpu.memory_space<vmem>>, vector<256x128xbf16>
    %cst_120 = arith.constant dense<0.000000e+00> : vector<16x128xf32>
    %284 = tpu.matmul %282, %283, %cst_120 {dimension_numbers = #tpu.dot_dimension_numbers<[1], [0], [0], [1], [0, 0, 1, 1], [], []>} : vector<16x256xbf16>, vector<256x128xbf16>, vector<16x128xf32> -> vector<16x128xf32>
    %c0_121 = arith.constant 0 : index
    %c0_122 = arith.constant 0 : index
    %285 = vector.load %arg22[%c0_121, %c0_122] : memref<1x128xf32, #tpu.memory_space<vmem>>, vector<1x128xf32>
    %286 = vector.broadcast %285 : vector<1x128xf32> to vector<16x128xf32>
    %287 = arith.addf %284, %286 : vector<16x128xf32>
    %288 = arith.addf %238, %287 : vector<16x128xf32>
    %c0_123 = arith.constant 0 : index
    %c0_124 = arith.constant 0 : index
    %c0_125 = arith.constant 0 : index
    %289 = vector.load %arg23[%c0_123, %c0_124, %c0_125] : memref<1x16x128xf32, #tpu.memory_space<vmem>>, vector<1x16x128xf32>
    %290 = vector.shape_cast %289 : vector<1x16x128xf32> to vector<16x128xf32>
    %291 = vector.shape_cast %288 : vector<16x128xf32> to vector<1x16x128xf32>
    tpu.vector_store %arg23[%c0_123, %c0_124, %c0_125], %291 {strides = array<i32>} : memref<1x16x128xf32, #tpu.memory_space<vmem>>, vector<1x16x128xf32>,
    return
  }
  func.func @transform_0(%arg0: i32) -> (i32, i32, i32) {
    %c0_i32 = arith.constant 0 : i32
    %c0_i32_0 = arith.constant 0 : i32
    %c0_i32_1 = arith.constant 0 : i32
    return %arg0, %c0_i32, %c0_i32_0 : i32, i32, i32
  }
  func.func @transform_1(%arg0: i32) -> (i32, i32, i32) {
    %c0_i32 = arith.constant 0 : i32
    %c0_i32_0 = arith.constant 0 : i32
    %c0_i32_1 = arith.constant 0 : i32
    return %arg0, %c0_i32, %c0_i32_0 : i32, i32, i32
  }
  func.func @transform_2(%arg0: i32) -> (i32, i32) {
    %c0_i32 = arith.constant 0 : i32
    %c0_i32_0 = arith.constant 0 : i32
    %c0_i32_1 = arith.constant 0 : i32
    return %c0_i32, %c0_i32_0 : i32, i32
  }
  func.func @transform_3(%arg0: i32) -> (i32, i32) {
    %c0_i32 = arith.constant 0 : i32
    %c0_i32_0 = arith.constant 0 : i32
    %c0_i32_1 = arith.constant 0 : i32
    return %c0_i32, %c0_i32_0 : i32, i32
  }
  func.func @transform_4(%arg0: i32) -> (i32, i32) {
    %c0_i32 = arith.constant 0 : i32
    %c0_i32_0 = arith.constant 0 : i32
    %c0_i32_1 = arith.constant 0 : i32
    return %c0_i32, %c0_i32_0 : i32, i32
  }
  func.func @transform_5(%arg0: i32) -> (i32, i32) {
    %c0_i32 = arith.constant 0 : i32
    %c0_i32_0 = arith.constant 0 : i32
    %c0_i32_1 = arith.constant 0 : i32
    return %c0_i32, %c0_i32_0 : i32, i32
  }
  func.func @transform_6(%arg0: i32) -> (i32, i32) {
    %c0_i32 = arith.constant 0 : i32
    %c0_i32_0 = arith.constant 0 : i32
    %c0_i32_1 = arith.constant 0 : i32
    return %c0_i32, %c0_i32_0 : i32, i32
  }
  func.func @transform_7(%arg0: i32) -> (i32, i32) {
    %c0_i32 = arith.constant 0 : i32
    %c0_i32_0 = arith.constant 0 : i32
    %c0_i32_1 = arith.constant 0 : i32
    return %c0_i32, %c0_i32_0 : i32, i32
  }
  func.func @transform_8(%arg0: i32) -> (i32, i32) {
    %c0_i32 = arith.constant 0 : i32
    %c0_i32_0 = arith.constant 0 : i32
    %c0_i32_1 = arith.constant 0 : i32
    return %c0_i32, %c0_i32_0 : i32, i32
  }
  func.func @transform_9(%arg0: i32) -> (i32, i32) {
    %c0_i32 = arith.constant 0 : i32
    %c0_i32_0 = arith.constant 0 : i32
    %c0_i32_1 = arith.constant 0 : i32
    return %c0_i32, %c0_i32_0 : i32, i32
  }
  func.func @transform_10(%arg0: i32) -> (i32, i32) {
    %c0_i32 = arith.constant 0 : i32
    %c0_i32_0 = arith.constant 0 : i32
    %c0_i32_1 = arith.constant 0 : i32
    return %c0_i32, %c0_i32_0 : i32, i32
  }
  func.func @transform_11(%arg0: i32) -> (i32, i32) {
    %c0_i32 = arith.constant 0 : i32
    %c0_i32_0 = arith.constant 0 : i32
    %c0_i32_1 = arith.constant 0 : i32
    return %c0_i32, %c0_i32_0 : i32, i32
  }
  func.func @transform_12(%arg0: i32) -> (i32, i32) {
    %c0_i32 = arith.constant 0 : i32
    %c0_i32_0 = arith.constant 0 : i32
    %c0_i32_1 = arith.constant 0 : i32
    return %c0_i32, %c0_i32_0 : i32, i32
  }
  func.func @transform_13(%arg0: i32) -> (i32, i32) {
    %c0_i32 = arith.constant 0 : i32
    %c0_i32_0 = arith.constant 0 : i32
    %c0_i32_1 = arith.constant 0 : i32
    return %c0_i32, %c0_i32_0 : i32, i32
  }
  func.func @transform_14(%arg0: i32) -> (i32, i32) {
    %c0_i32 = arith.constant 0 : i32
    %c0_i32_0 = arith.constant 0 : i32
    %c0_i32_1 = arith.constant 0 : i32
    return %c0_i32, %c0_i32_0 : i32, i32
  }
  func.func @transform_15(%arg0: i32) -> (i32, i32) {
    %c0_i32 = arith.constant 0 : i32
    %c0_i32_0 = arith.constant 0 : i32
    %c0_i32_1 = arith.constant 0 : i32
    return %c0_i32, %c0_i32_0 : i32, i32
  }
  func.func @transform_16(%arg0: i32) -> (i32, i32) {
    %c0_i32 = arith.constant 0 : i32
    %c0_i32_0 = arith.constant 0 : i32
    %c0_i32_1 = arith.constant 0 : i32
    return %c0_i32, %c0_i32_0 : i32, i32
  }
  func.func @transform_17(%arg0: i32) -> (i32, i32) {
    %c0_i32 = arith.constant 0 : i32
    %c0_i32_0 = arith.constant 0 : i32
    %c0_i32_1 = arith.constant 0 : i32
    return %c0_i32, %c0_i32_0 : i32, i32
  }
  func.func @transform_18(%arg0: i32) -> (i32, i32) {
    %c0_i32 = arith.constant 0 : i32
    %c0_i32_0 = arith.constant 0 : i32
    %c0_i32_1 = arith.constant 0 : i32
    return %c0_i32, %c0_i32_0 : i32, i32
  }
  func.func @transform_19(%arg0: i32) -> (i32, i32) {
    %c0_i32 = arith.constant 0 : i32
    %c0_i32_0 = arith.constant 0 : i32
    %c0_i32_1 = arith.constant 0 : i32
    return %c0_i32, %c0_i32_0 : i32, i32
  }
  func.func @transform_20(%arg0: i32) -> (i32, i32) {
    %c0_i32 = arith.constant 0 : i32
    %c0_i32_0 = arith.constant 0 : i32
    %c0_i32_1 = arith.constant 0 : i32
    return %c0_i32, %c0_i32_0 : i32, i32
  }
  func.func @transform_21(%arg0: i32) -> (i32, i32) {
    %c0_i32 = arith.constant 0 : i32
    %c0_i32_0 = arith.constant 0 : i32
    %c0_i32_1 = arith.constant 0 : i32
    return %c0_i32, %c0_i32_0 : i32, i32
  }
  func.func @transform_22(%arg0: i32) -> (i32, i32, i32) {
    %c0_i32 = arith.constant 0 : i32
    %c0_i32_0 = arith.constant 0 : i32
    %c0_i32_1 = arith.constant 0 : i32
    return %arg0, %c0_i32, %c0_i32_0 : i32, i32, i32
  }
}

module attributes {stable_mosaic.version = 11 : i64} {
  func.func @_block_kernel(%arg0: i32, %arg1: memref<1x16x128xf32, #tpu.memory_space<vmem>>, %arg2: memref<1x4x512xf32, #tpu.memory_space<vmem>>, %arg3: memref<1x128xf32, #tpu.memory_space<vmem>>, %arg4: memref<1x128xf32, #tpu.memory_space<vmem>>, %arg5: memref<128x128xbf16, #tpu.memory_space<vmem>>, %arg6: memref<1x128xf32, #tpu.memory_space<vmem>>, %arg7: memref<512x128xbf16, #tpu.memory_space<vmem>>, %arg8: memref<1x128xf32, #tpu.memory_space<vmem>>, %arg9: memref<1x128xf32, #tpu.memory_space<vmem>>, %arg10: memref<1x128xf32, #tpu.memory_space<vmem>>, %arg11: memref<128x128xbf16, #tpu.memory_space<vmem>>, %arg12: memref<1x128xf32, #tpu.memory_space<vmem>>, %arg13: memref<128x128xbf16, #tpu.memory_space<vmem>>, %arg14: memref<1x128xf32, #tpu.memory_space<vmem>>, %arg15: memref<128x128xbf16, #tpu.memory_space<vmem>>, %arg16: memref<1x128xf32, #tpu.memory_space<vmem>>, %arg17: memref<1x128xf32, #tpu.memory_space<vmem>>, %arg18: memref<1x128xf32, #tpu.memory_space<vmem>>, %arg19: memref<128x256xbf16, #tpu.memory_space<vmem>>, %arg20: memref<1x256xf32, #tpu.memory_space<vmem>>, %arg21: memref<256x128xbf16, #tpu.memory_space<vmem>>, %arg22: memref<1x128xf32, #tpu.memory_space<vmem>>, %arg23: memref<1x16x128xf32, #tpu.memory_space<vmem>>) attributes {dimension_semantics = [#tpu.dimension_semantics<parallel>], iteration_bounds = array<i64: 2>, scalar_prefetch = 0 : i64, scratch_operands = 0 : i64, tpu.core_type = #tpu.core_type<tc>, window_params = [{transform_indices = @transform_0, window_bounds = array<i64: 1, 16, 128>}, {transform_indices = @transform_1, window_bounds = array<i64: 1, 4, 512>}, {pipeline_mode = #tpu.pipeline_mode<synchronous>, transform_indices = @transform_2, window_bounds = array<i64: 1, 128>}, {pipeline_mode = #tpu.pipeline_mode<synchronous>, transform_indices = @transform_3, window_bounds = array<i64: 1, 128>}, {pipeline_mode = #tpu.pipeline_mode<synchronous>, transform_indices = @transform_4, window_bounds = array<i64: 128, 128>}, {pipeline_mode = #tpu.pipeline_mode<synchronous>, transform_indices = @transform_5, window_bounds = array<i64: 1, 128>}, {pipeline_mode = #tpu.pipeline_mode<synchronous>, transform_indices = @transform_6, window_bounds = array<i64: 512, 128>}, {pipeline_mode = #tpu.pipeline_mode<synchronous>, transform_indices = @transform_7, window_bounds = array<i64: 1, 128>}, {pipeline_mode = #tpu.pipeline_mode<synchronous>, transform_indices = @transform_8, window_bounds = array<i64: 1, 128>}, {pipeline_mode = #tpu.pipeline_mode<synchronous>, transform_indices = @transform_9, window_bounds = array<i64: 1, 128>}, {pipeline_mode = #tpu.pipeline_mode<synchronous>, transform_indices = @transform_10, window_bounds = array<i64: 128, 128>}, {pipeline_mode = #tpu.pipeline_mode<synchronous>, transform_indices = @transform_11, window_bounds = array<i64: 1, 128>}, {pipeline_mode = #tpu.pipeline_mode<synchronous>, transform_indices = @transform_12, window_bounds = array<i64: 128, 128>}, {pipeline_mode = #tpu.pipeline_mode<synchronous>, transform_indices = @transform_13, window_bounds = array<i64: 1, 128>}, {pipeline_mode = #tpu.pipeline_mode<synchronous>, transform_indices = @transform_14, window_bounds = array<i64: 128, 128>}, {pipeline_mode = #tpu.pipeline_mode<synchronous>, transform_indices = @transform_15, window_bounds = array<i64: 1, 128>}, {pipeline_mode = #tpu.pipeline_mode<synchronous>, transform_indices = @transform_16, window_bounds = array<i64: 1, 128>}, {pipeline_mode = #tpu.pipeline_mode<synchronous>, transform_indices = @transform_17, window_bounds = array<i64: 1, 128>}, {pipeline_mode = #tpu.pipeline_mode<synchronous>, transform_indices = @transform_18, window_bounds = array<i64: 128, 256>}, {pipeline_mode = #tpu.pipeline_mode<synchronous>, transform_indices = @transform_19, window_bounds = array<i64: 1, 256>}, {pipeline_mode = #tpu.pipeline_mode<synchronous>, transform_indices = @transform_20, window_bounds = array<i64: 256, 128>}, {pipeline_mode = #tpu.pipeline_mode<synchronous>, transform_indices = @transform_21, window_bounds = array<i64: 1, 128>}, {transform_indices = @transform_22, window_bounds = array<i64: 1, 16, 128>}]} {
    %c0 = arith.constant 0 : index
    %c0_0 = arith.constant 0 : index
    %c0_1 = arith.constant 0 : index
    %0 = vector.load %arg1[%c0, %c0_0, %c0_1] : memref<1x16x128xf32, #tpu.memory_space<vmem>>, vector<1x16x128xf32>
    %1 = vector.shape_cast %0 : vector<1x16x128xf32> to vector<16x128xf32>
    %c0_2 = arith.constant 0 : index
    %c0_3 = arith.constant 0 : index
    %2 = vector.load %arg3[%c0_2, %c0_3] : memref<1x128xf32, #tpu.memory_space<vmem>>, vector<1x128xf32>
    %c0_4 = arith.constant 0 : index
    %c0_5 = arith.constant 0 : index
    %3 = vector.load %arg4[%c0_4, %c0_5] : memref<1x128xf32, #tpu.memory_space<vmem>>, vector<1x128xf32>
    %cst = arith.constant dense<0.000000e+00> : vector<16xf32>
    %4 = vector.multi_reduction <add>, %1, %cst [1] : vector<16x128xf32> to vector<16xf32>
    %5 = vector.shape_cast %4 : vector<16xf32> to vector<16x1xf32>
    %cst_6 = arith.constant 1.280000e+02 : f32
    %6 = vector.broadcast %cst_6 : f32 to vector<16x1xf32>
    %7 = arith.divf %5, %6 : vector<16x1xf32>
    %8 = vector.broadcast %7 : vector<16x1xf32> to vector<16x128xf32>
    %9 = arith.subf %1, %8 : vector<16x128xf32>
    %10 = arith.mulf %9, %9 : vector<16x128xf32>
    %cst_7 = arith.constant dense<0.000000e+00> : vector<16xf32>
    %11 = vector.multi_reduction <add>, %10, %cst_7 [1] : vector<16x128xf32> to vector<16xf32>
    %12 = vector.shape_cast %11 : vector<16xf32> to vector<16x1xf32>
    %cst_8 = arith.constant 1.280000e+02 : f32
    %13 = vector.broadcast %cst_8 : f32 to vector<16x1xf32>
    %14 = arith.divf %12, %13 : vector<16x1xf32>
    %15 = vector.broadcast %7 : vector<16x1xf32> to vector<16x128xf32>
    %16 = arith.subf %1, %15 : vector<16x128xf32>
    %cst_9 = arith.constant 9.99999974E-6 : f32
    %17 = vector.broadcast %cst_9 : f32 to vector<16x1xf32>
    %18 = arith.addf %14, %17 : vector<16x1xf32>
    %19 = math.rsqrt %18 : vector<16x1xf32>
    %20 = vector.broadcast %19 : vector<16x1xf32> to vector<16x128xf32>
    %21 = arith.mulf %16, %20 : vector<16x128xf32>
    %22 = vector.broadcast %2 : vector<1x128xf32> to vector<16x128xf32>
    %23 = arith.mulf %21, %22 : vector<16x128xf32>
    %24 = vector.broadcast %3 : vector<1x128xf32> to vector<16x128xf32>
    %25 = arith.addf %23, %24 : vector<16x128xf32>
    %26 = arith.truncf %25 : vector<16x128xf32> to vector<16x128xbf16>
    %c0_10 = arith.constant 0 : index
    %c0_11 = arith.constant 0 : index
    %27 = vector.load %arg5[%c0_10, %c0_11] : memref<128x128xbf16, #tpu.memory_space<vmem>>, vector<128x128xbf16>
    %cst_12 = arith.constant dense<0.000000e+00> : vector<16x128xf32>
    %28 = tpu.matmul %26, %27, %cst_12 {dimension_numbers = #tpu.dot_dimension_numbers<[1], [0], [0], [1], [0, 0, 1, 1], [], []>} : vector<16x128xbf16>, vector<128x128xbf16>, vector<16x128xf32> -> vector<16x128xf32>
    %c0_13 = arith.constant 0 : index
    %c0_14 = arith.constant 0 : index
    %29 = vector.load %arg6[%c0_13, %c0_14] : memref<1x128xf32, #tpu.memory_space<vmem>>, vector<1x128xf32>
    %30 = vector.broadcast %29 : vector<1x128xf32> to vector<16x128xf32>
    %31 = arith.addf %28, %30 : vector<16x128xf32>
    %32 = vector.extract_strided_slice %31 {offsets = [0, 0], sizes = [16, 64], strides = [1, 1]} : vector<16x128xf32> to vector<16x64xf32>
    %33 = vector.extract_strided_slice %31 {offsets = [0, 64], sizes = [16, 64], strides = [1, 1]} : vector<16x128xf32> to vector<16x64xf32>
    %c0_15 = arith.constant 0 : index
    %c0_16 = arith.constant 0 : index
    %34 = vector.load %arg13[%c0_15, %c0_16] : memref<128x128xbf16, #tpu.memory_space<vmem>>, vector<128x128xbf16>
    %cst_17 = arith.constant dense<0.000000e+00> : vector<16x128xf32>
    %35 = tpu.matmul %26, %34, %cst_17 {dimension_numbers = #tpu.dot_dimension_numbers<[1], [0], [0], [1], [0, 0, 1, 1], [], []>} : vector<16x128xbf16>, vector<128x128xbf16>, vector<16x128xf32> -> vector<16x128xf32>
    %c0_18 = arith.constant 0 : index
    %c0_19 = arith.constant 0 : index
    %36 = vector.load %arg14[%c0_18, %c0_19] : memref<1x128xf32, #tpu.memory_space<vmem>>, vector<1x128xf32>
    %37 = vector.broadcast %36 : vector<1x128xf32> to vector<16x128xf32>
    %38 = arith.addf %35, %37 : vector<16x128xf32>
    %39 = vector.extract_strided_slice %38 {offsets = [0, 0], sizes = [16, 64], strides = [1, 1]} : vector<16x128xf32> to vector<16x64xf32>
    %40 = vector.extract_strided_slice %38 {offsets = [0, 64], sizes = [16, 64], strides = [1, 1]} : vector<16x128xf32> to vector<16x64xf32>
    %c0_20 = arith.constant 0 : index
    %c0_21 = arith.constant 0 : index
    %c0_22 = arith.constant 0 : index
    %41 = vector.load %arg2[%c0_20, %c0_21, %c0_22] : memref<1x4x512xf32, #tpu.memory_space<vmem>>, vector<1x4x512xf32>
    %42 = vector.shape_cast %41 : vector<1x4x512xf32> to vector<4x512xf32>
    %cst_23 = arith.constant 0.000000e+00 : f32
    %43 = vector.broadcast %cst_23 : f32 to vector<4x128xf32>
    %44 = vector.extract_strided_slice %42 {offsets = [0, 0], sizes = [4, 128], strides = [1, 1]} : vector<4x512xf32> to vector<4x128xf32>
    %c0_24 = arith.constant 0 : index
    %c0_25 = arith.constant 0 : index
    %45 = vector.load %arg3[%c0_24, %c0_25] : memref<1x128xf32, #tpu.memory_space<vmem>>, vector<1x128xf32>
    %c0_26 = arith.constant 0 : index
    %c0_27 = arith.constant 0 : index
    %46 = vector.load %arg4[%c0_26, %c0_27] : memref<1x128xf32, #tpu.memory_space<vmem>>, vector<1x128xf32>
    %cst_28 = arith.constant dense<0.000000e+00> : vector<4xf32>
    %47 = vector.multi_reduction <add>, %44, %cst_28 [1] : vector<4x128xf32> to vector<4xf32>
    %48 = vector.shape_cast %47 : vector<4xf32> to vector<4x1xf32>
    %cst_29 = arith.constant 1.280000e+02 : f32
    %49 = vector.broadcast %cst_29 : f32 to vector<4x1xf32>
    %50 = arith.divf %48, %49 : vector<4x1xf32>
    %51 = vector.broadcast %50 : vector<4x1xf32> to vector<4x128xf32>
    %52 = arith.subf %44, %51 : vector<4x128xf32>
    %53 = arith.mulf %52, %52 : vector<4x128xf32>
    %cst_30 = arith.constant dense<0.000000e+00> : vector<4xf32>
    %54 = vector.multi_reduction <add>, %53, %cst_30 [1] : vector<4x128xf32> to vector<4xf32>
    %55 = vector.shape_cast %54 : vector<4xf32> to vector<4x1xf32>
    %cst_31 = arith.constant 1.280000e+02 : f32
    %56 = vector.broadcast %cst_31 : f32 to vector<4x1xf32>
    %57 = arith.divf %55, %56 : vector<4x1xf32>
    %58 = vector.broadcast %50 : vector<4x1xf32> to vector<4x128xf32>
    %59 = arith.subf %44, %58 : vector<4x128xf32>
    %cst_32 = arith.constant 9.99999974E-6 : f32
    %60 = vector.broadcast %cst_32 : f32 to vector<4x1xf32>
    %61 = arith.addf %57, %60 : vector<4x1xf32>
    %62 = math.rsqrt %61 : vector<4x1xf32>
    %63 = vector.broadcast %62 : vector<4x1xf32> to vector<4x128xf32>
    %64 = arith.mulf %59, %63 : vector<4x128xf32>
    %65 = vector.broadcast %45 : vector<1x128xf32> to vector<4x128xf32>
    %66 = arith.mulf %64, %65 : vector<4x128xf32>
    %67 = vector.broadcast %46 : vector<1x128xf32> to vector<4x128xf32>
    %68 = arith.addf %66, %67 : vector<4x128xf32>
    %69 = arith.truncf %68 : vector<4x128xf32> to vector<4x128xbf16>
    %c0_33 = arith.constant 0 : index
    %c0_34 = arith.constant 0 : index
    %70 = vector.load %arg7[%c0_33, %c0_34] : memref<512x128xbf16, #tpu.memory_space<vmem>>, vector<128x128xbf16>
    %cst_35 = arith.constant dense<0.000000e+00> : vector<4x128xf32>
    %71 = tpu.matmul %69, %70, %cst_35 {dimension_numbers = #tpu.dot_dimension_numbers<[1], [0], [0], [1], [0, 0, 1, 1], [], []>} : vector<4x128xbf16>, vector<128x128xbf16>, vector<4x128xf32> -> vector<4x128xf32>
    %72 = arith.addf %43, %71 : vector<4x128xf32>
    %73 = vector.extract_strided_slice %42 {offsets = [0, 128], sizes = [4, 128], strides = [1, 1]} : vector<4x512xf32> to vector<4x128xf32>
    %c0_36 = arith.constant 0 : index
    %c0_37 = arith.constant 0 : index
    %74 = vector.load %arg3[%c0_36, %c0_37] : memref<1x128xf32, #tpu.memory_space<vmem>>, vector<1x128xf32>
    %c0_38 = arith.constant 0 : index
    %c0_39 = arith.constant 0 : index
    %75 = vector.load %arg4[%c0_38, %c0_39] : memref<1x128xf32, #tpu.memory_space<vmem>>, vector<1x128xf32>
    %cst_40 = arith.constant dense<0.000000e+00> : vector<4xf32>
    %76 = vector.multi_reduction <add>, %73, %cst_40 [1] : vector<4x128xf32> to vector<4xf32>
    %77 = vector.shape_cast %76 : vector<4xf32> to vector<4x1xf32>
    %cst_41 = arith.constant 1.280000e+02 : f32
    %78 = vector.broadcast %cst_41 : f32 to vector<4x1xf32>
    %79 = arith.divf %77, %78 : vector<4x1xf32>
    %80 = vector.broadcast %79 : vector<4x1xf32> to vector<4x128xf32>
    %81 = arith.subf %73, %80 : vector<4x128xf32>
    %82 = arith.mulf %81, %81 : vector<4x128xf32>
    %cst_42 = arith.constant dense<0.000000e+00> : vector<4xf32>
    %83 = vector.multi_reduction <add>, %82, %cst_42 [1] : vector<4x128xf32> to vector<4xf32>
    %84 = vector.shape_cast %83 : vector<4xf32> to vector<4x1xf32>
    %cst_43 = arith.constant 1.280000e+02 : f32
    %85 = vector.broadcast %cst_43 : f32 to vector<4x1xf32>
    %86 = arith.divf %84, %85 : vector<4x1xf32>
    %87 = vector.broadcast %79 : vector<4x1xf32> to vector<4x128xf32>
    %88 = arith.subf %73, %87 : vector<4x128xf32>
    %cst_44 = arith.constant 9.99999974E-6 : f32
    %89 = vector.broadcast %cst_44 : f32 to vector<4x1xf32>
    %90 = arith.addf %86, %89 : vector<4x1xf32>
    %91 = math.rsqrt %90 : vector<4x1xf32>
    %92 = vector.broadcast %91 : vector<4x1xf32> to vector<4x128xf32>
    %93 = arith.mulf %88, %92 : vector<4x128xf32>
    %94 = vector.broadcast %74 : vector<1x128xf32> to vector<4x128xf32>
    %95 = arith.mulf %93, %94 : vector<4x128xf32>
    %96 = vector.broadcast %75 : vector<1x128xf32> to vector<4x128xf32>
    %97 = arith.addf %95, %96 : vector<4x128xf32>
    %98 = arith.truncf %97 : vector<4x128xf32> to vector<4x128xbf16>
    %c128 = arith.constant 128 : index
    %c0_45 = arith.constant 0 : index
    %99 = vector.load %arg7[%c128, %c0_45] : memref<512x128xbf16, #tpu.memory_space<vmem>>, vector<128x128xbf16>
    %cst_46 = arith.constant dense<0.000000e+00> : vector<4x128xf32>
    %100 = tpu.matmul %98, %99, %cst_46 {dimension_numbers = #tpu.dot_dimension_numbers<[1], [0], [0], [1], [0, 0, 1, 1], [], []>} : vector<4x128xbf16>, vector<128x128xbf16>, vector<4x128xf32> -> vector<4x128xf32>
    %101 = arith.addf %72, %100 : vector<4x128xf32>
    %102 = vector.extract_strided_slice %42 {offsets = [0, 256], sizes = [4, 128], strides = [1, 1]} : vector<4x512xf32> to vector<4x128xf32>
    %c0_47 = arith.constant 0 : index
    %c0_48 = arith.constant 0 : index
    %103 = vector.load %arg3[%c0_47, %c0_48] : memref<1x128xf32, #tpu.memory_space<vmem>>, vector<1x128xf32>
    %c0_49 = arith.constant 0 : index
    %c0_50 = arith.constant 0 : index
    %104 = vector.load %arg4[%c0_49, %c0_50] : memref<1x128xf32, #tpu.memory_space<vmem>>, vector<1x128xf32>
    %cst_51 = arith.constant dense<0.000000e+00> : vector<4xf32>
    %105 = vector.multi_reduction <add>, %102, %cst_51 [1] : vector<4x128xf32> to vector<4xf32>
    %106 = vector.shape_cast %105 : vector<4xf32> to vector<4x1xf32>
    %cst_52 = arith.constant 1.280000e+02 : f32
    %107 = vector.broadcast %cst_52 : f32 to vector<4x1xf32>
    %108 = arith.divf %106, %107 : vector<4x1xf32>
    %109 = vector.broadcast %108 : vector<4x1xf32> to vector<4x128xf32>
    %110 = arith.subf %102, %109 : vector<4x128xf32>
    %111 = arith.mulf %110, %110 : vector<4x128xf32>
    %cst_53 = arith.constant dense<0.000000e+00> : vector<4xf32>
    %112 = vector.multi_reduction <add>, %111, %cst_53 [1] : vector<4x128xf32> to vector<4xf32>
    %113 = vector.shape_cast %112 : vector<4xf32> to vector<4x1xf32>
    %cst_54 = arith.constant 1.280000e+02 : f32
    %114 = vector.broadcast %cst_54 : f32 to vector<4x1xf32>
    %115 = arith.divf %113, %114 : vector<4x1xf32>
    %116 = vector.broadcast %108 : vector<4x1xf32> to vector<4x128xf32>
    %117 = arith.subf %102, %116 : vector<4x128xf32>
    %cst_55 = arith.constant 9.99999974E-6 : f32
    %118 = vector.broadcast %cst_55 : f32 to vector<4x1xf32>
    %119 = arith.addf %115, %118 : vector<4x1xf32>
    %120 = math.rsqrt %119 : vector<4x1xf32>
    %121 = vector.broadcast %120 : vector<4x1xf32> to vector<4x128xf32>
    %122 = arith.mulf %117, %121 : vector<4x128xf32>
    %123 = vector.broadcast %103 : vector<1x128xf32> to vector<4x128xf32>
    %124 = arith.mulf %122, %123 : vector<4x128xf32>
    %125 = vector.broadcast %104 : vector<1x128xf32> to vector<4x128xf32>
    %126 = arith.addf %124, %125 : vector<4x128xf32>
    %127 = arith.truncf %126 : vector<4x128xf32> to vector<4x128xbf16>
    %c256 = arith.constant 256 : index
    %c0_56 = arith.constant 0 : index
    %128 = vector.load %arg7[%c256, %c0_56] : memref<512x128xbf16, #tpu.memory_space<vmem>>, vector<128x128xbf16>
    %cst_57 = arith.constant dense<0.000000e+00> : vector<4x128xf32>
    %129 = tpu.matmul %127, %128, %cst_57 {dimension_numbers = #tpu.dot_dimension_numbers<[1], [0], [0], [1], [0, 0, 1, 1], [], []>} : vector<4x128xbf16>, vector<128x128xbf16>, vector<4x128xf32> -> vector<4x128xf32>
    %130 = arith.addf %101, %129 : vector<4x128xf32>
    %131 = vector.extract_strided_slice %42 {offsets = [0, 384], sizes = [4, 128], strides = [1, 1]} : vector<4x512xf32> to vector<4x128xf32>
    %c0_58 = arith.constant 0 : index
    %c0_59 = arith.constant 0 : index
    %132 = vector.load %arg3[%c0_58, %c0_59] : memref<1x128xf32, #tpu.memory_space<vmem>>, vector<1x128xf32>
    %c0_60 = arith.constant 0 : index
    %c0_61 = arith.constant 0 : index
    %133 = vector.load %arg4[%c0_60, %c0_61] : memref<1x128xf32, #tpu.memory_space<vmem>>, vector<1x128xf32>
    %cst_62 = arith.constant dense<0.000000e+00> : vector<4xf32>
    %134 = vector.multi_reduction <add>, %131, %cst_62 [1] : vector<4x128xf32> to vector<4xf32>
    %135 = vector.shape_cast %134 : vector<4xf32> to vector<4x1xf32>
    %cst_63 = arith.constant 1.280000e+02 : f32
    %136 = vector.broadcast %cst_63 : f32 to vector<4x1xf32>
    %137 = arith.divf %135, %136 : vector<4x1xf32>
    %138 = vector.broadcast %137 : vector<4x1xf32> to vector<4x128xf32>
    %139 = arith.subf %131, %138 : vector<4x128xf32>
    %140 = arith.mulf %139, %139 : vector<4x128xf32>
    %cst_64 = arith.constant dense<0.000000e+00> : vector<4xf32>
    %141 = vector.multi_reduction <add>, %140, %cst_64 [1] : vector<4x128xf32> to vector<4xf32>
    %142 = vector.shape_cast %141 : vector<4xf32> to vector<4x1xf32>
    %cst_65 = arith.constant 1.280000e+02 : f32
    %143 = vector.broadcast %cst_65 : f32 to vector<4x1xf32>
    %144 = arith.divf %142, %143 : vector<4x1xf32>
    %145 = vector.broadcast %137 : vector<4x1xf32> to vector<4x128xf32>
    %146 = arith.subf %131, %145 : vector<4x128xf32>
    %cst_66 = arith.constant 9.99999974E-6 : f32
    %147 = vector.broadcast %cst_66 : f32 to vector<4x1xf32>
    %148 = arith.addf %144, %147 : vector<4x1xf32>
    %149 = math.rsqrt %148 : vector<4x1xf32>
    %150 = vector.broadcast %149 : vector<4x1xf32> to vector<4x128xf32>
    %151 = arith.mulf %146, %150 : vector<4x128xf32>
    %152 = vector.broadcast %132 : vector<1x128xf32> to vector<4x128xf32>
    %153 = arith.mulf %151, %152 : vector<4x128xf32>
    %154 = vector.broadcast %133 : vector<1x128xf32> to vector<4x128xf32>
    %155 = arith.addf %153, %154 : vector<4x128xf32>
    %156 = arith.truncf %155 : vector<4x128xf32> to vector<4x128xbf16>
    %c384 = arith.constant 384 : index
    %c0_67 = arith.constant 0 : index
    %157 = vector.load %arg7[%c384, %c0_67] : memref<512x128xbf16, #tpu.memory_space<vmem>>, vector<128x128xbf16>
    %cst_68 = arith.constant dense<0.000000e+00> : vector<4x128xf32>
    %158 = tpu.matmul %156, %157, %cst_68 {dimension_numbers = #tpu.dot_dimension_numbers<[1], [0], [0], [1], [0, 0, 1, 1], [], []>} : vector<4x128xbf16>, vector<128x128xbf16>, vector<4x128xf32> -> vector<4x128xf32>
    %159 = arith.addf %130, %158 : vector<4x128xf32>
    %c0_69 = arith.constant 0 : index
    %c0_70 = arith.constant 0 : index
    %160 = vector.load %arg8[%c0_69, %c0_70] : memref<1x128xf32, #tpu.memory_space<vmem>>, vector<1x128xf32>
    %161 = vector.broadcast %160 : vector<1x128xf32> to vector<4x128xf32>
    %162 = arith.addf %159, %161 : vector<4x128xf32>
    %c0_71 = arith.constant 0 : index
    %c0_72 = arith.constant 0 : index
    %163 = vector.load %arg9[%c0_71, %c0_72] : memref<1x128xf32, #tpu.memory_space<vmem>>, vector<1x128xf32>
    %c0_73 = arith.constant 0 : index
    %c0_74 = arith.constant 0 : index
    %164 = vector.load %arg10[%c0_73, %c0_74] : memref<1x128xf32, #tpu.memory_space<vmem>>, vector<1x128xf32>
    %cst_75 = arith.constant dense<0.000000e+00> : vector<4xf32>
    %165 = vector.multi_reduction <add>, %162, %cst_75 [1] : vector<4x128xf32> to vector<4xf32>
    %166 = vector.shape_cast %165 : vector<4xf32> to vector<4x1xf32>
    %cst_76 = arith.constant 1.280000e+02 : f32
    %167 = vector.broadcast %cst_76 : f32 to vector<4x1xf32>
    %168 = arith.divf %166, %167 : vector<4x1xf32>
    %169 = vector.broadcast %168 : vector<4x1xf32> to vector<4x128xf32>
    %170 = arith.subf %162, %169 : vector<4x128xf32>
    %171 = arith.mulf %170, %170 : vector<4x128xf32>
    %cst_77 = arith.constant dense<0.000000e+00> : vector<4xf32>
    %172 = vector.multi_reduction <add>, %171, %cst_77 [1] : vector<4x128xf32> to vector<4xf32>
    %173 = vector.shape_cast %172 : vector<4xf32> to vector<4x1xf32>
    %cst_78 = arith.constant 1.280000e+02 : f32
    %174 = vector.broadcast %cst_78 : f32 to vector<4x1xf32>
    %175 = arith.divf %173, %174 : vector<4x1xf32>
    %176 = vector.broadcast %168 : vector<4x1xf32> to vector<4x128xf32>
    %177 = arith.subf %162, %176 : vector<4x128xf32>
    %cst_79 = arith.constant 9.99999974E-6 : f32
    %178 = vector.broadcast %cst_79 : f32 to vector<4x1xf32>
    %179 = arith.addf %175, %178 : vector<4x1xf32>
    %180 = math.rsqrt %179 : vector<4x1xf32>
    %181 = vector.broadcast %180 : vector<4x1xf32> to vector<4x128xf32>
    %182 = arith.mulf %177, %181 : vector<4x128xf32>
    %183 = vector.broadcast %163 : vector<1x128xf32> to vector<4x128xf32>
    %184 = arith.mulf %182, %183 : vector<4x128xf32>
    %185 = vector.broadcast %164 : vector<1x128xf32> to vector<4x128xf32>
    %186 = arith.addf %184, %185 : vector<4x128xf32>
    %187 = arith.truncf %186 : vector<4x128xf32> to vector<4x128xbf16>
    %c0_80 = arith.constant 0 : index
    %c0_81 = arith.constant 0 : index
    %188 = vector.load %arg11[%c0_80, %c0_81] : memref<128x128xbf16, #tpu.memory_space<vmem>>, vector<128x128xbf16>
    %cst_82 = arith.constant dense<0.000000e+00> : vector<4x128xf32>
    %189 = tpu.matmul %187, %188, %cst_82 {dimension_numbers = #tpu.dot_dimension_numbers<[1], [0], [0], [1], [0, 0, 1, 1], [], []>} : vector<4x128xbf16>, vector<128x128xbf16>, vector<4x128xf32> -> vector<4x128xf32>
    %c0_83 = arith.constant 0 : index
    %c0_84 = arith.constant 0 : index
    %190 = vector.load %arg12[%c0_83, %c0_84] : memref<1x128xf32, #tpu.memory_space<vmem>>, vector<1x128xf32>
    %191 = vector.broadcast %190 : vector<1x128xf32> to vector<4x128xf32>
    %192 = arith.addf %189, %191 : vector<4x128xf32>
    %193 = vector.extract_strided_slice %192 {offsets = [0, 0], sizes = [4, 64], strides = [1, 1]} : vector<4x128xf32> to vector<4x64xf32>
    %194 = vector.extract_strided_slice %192 {offsets = [0, 64], sizes = [4, 64], strides = [1, 1]} : vector<4x128xf32> to vector<4x64xf32>
    %195 = arith.truncf %32 : vector<16x64xf32> to vector<16x64xbf16>
    %196 = arith.truncf %193 : vector<4x64xf32> to vector<4x64xbf16>
    %cst_85 = arith.constant dense<0.000000e+00> : vector<16x4xf32>
    %197 = tpu.matmul %195, %196, %cst_85 {dimension_numbers = #tpu.dot_dimension_numbers<[1], [1], [0], [0], [0, 0, 1, 0], [], []>} : vector<16x64xbf16>, vector<4x64xbf16>, vector<16x4xf32> -> vector<16x4xf32>
    %cst_86 = arith.constant 1.250000e-01 : f32
    %198 = vector.broadcast %cst_86 : f32 to vector<16x4xf32>
    %199 = arith.mulf %197, %198 : vector<16x4xf32>
    %cst_87 = arith.constant dense<0xFF800000> : vector<16xf32>
    %200 = vector.multi_reduction <maximumf>, %199, %cst_87 [1] : vector<16x4xf32> to vector<16xf32>
    %201 = vector.shape_cast %200 : vector<16xf32> to vector<16x1xf32>
    %202 = vector.broadcast %201 : vector<16x1xf32> to vector<16x4xf32>
    %203 = arith.subf %199, %202 : vector<16x4xf32>
    %204 = math.exp %203 : vector<16x4xf32>
    %cst_88 = arith.constant dense<0.000000e+00> : vector<16xf32>
    %205 = vector.multi_reduction <add>, %204, %cst_88 [1] : vector<16x4xf32> to vector<16xf32>
    %206 = vector.shape_cast %205 : vector<16xf32> to vector<16x1xf32>
    %207 = arith.truncf %204 : vector<16x4xf32> to vector<16x4xbf16>
    %208 = arith.truncf %194 : vector<4x64xf32> to vector<4x64xbf16>
    %cst_89 = arith.constant dense<0.000000e+00> : vector<16x64xf32>
    %209 = tpu.matmul %207, %208, %cst_89 {dimension_numbers = #tpu.dot_dimension_numbers<[1], [0], [0], [1], [0, 0, 1, 1], [], []>} : vector<16x4xbf16>, vector<4x64xbf16>, vector<16x64xf32> -> vector<16x64xf32>
    %210 = tpu.reciprocal %206 {approx = true} : vector<16x1xf32> -> vector<16x1xf32>
    %211 = vector.broadcast %210 : vector<16x1xf32> to vector<16x64xf32>
    %212 = arith.mulf %209, %211 : vector<16x64xf32>
    %213 = arith.truncf %33 : vector<16x64xf32> to vector<16x64xbf16>
    %214 = arith.truncf %39 : vector<16x64xf32> to vector<16x64xbf16>
    %cst_90 = arith.constant dense<0.000000e+00> : vector<16x16xf32>
    %215 = tpu.matmul %213, %214, %cst_90 {dimension_numbers = #tpu.dot_dimension_numbers<[1], [1], [0], [0], [0, 0, 1, 0], [], []>} : vector<16x64xbf16>, vector<16x64xbf16>, vector<16x16xf32> -> vector<16x16xf32>
    %cst_91 = arith.constant 1.250000e-01 : f32
    %216 = vector.broadcast %cst_91 : f32 to vector<16x16xf32>
    %217 = arith.mulf %215, %216 : vector<16x16xf32>
    %cst_92 = arith.constant dense<0xFF800000> : vector<16xf32>
    %218 = vector.multi_reduction <maximumf>, %217, %cst_92 [1] : vector<16x16xf32> to vector<16xf32>
    %219 = vector.shape_cast %218 : vector<16xf32> to vector<16x1xf32>
    %220 = vector.broadcast %219 : vector<16x1xf32> to vector<16x16xf32>
    %221 = arith.subf %217, %220 : vector<16x16xf32>
    %222 = math.exp %221 : vector<16x16xf32>
    %cst_93 = arith.constant dense<0.000000e+00> : vector<16xf32>
    %223 = vector.multi_reduction <add>, %222, %cst_93 [1] : vector<16x16xf32> to vector<16xf32>
    %224 = vector.shape_cast %223 : vector<16xf32> to vector<16x1xf32>
    %225 = arith.truncf %222 : vector<16x16xf32> to vector<16x16xbf16>
    %226 = arith.truncf %40 : vector<16x64xf32> to vector<16x64xbf16>
    %cst_94 = arith.constant dense<0.000000e+00> : vector<16x64xf32>
    %227 = tpu.matmul %225, %226, %cst_94 {dimension_numbers = #tpu.dot_dimension_numbers<[1], [0], [0], [1], [0, 0, 1, 1], [], []>} : vector<16x16xbf16>, vector<16x64xbf16>, vector<16x64xf32> -> vector<16x64xf32>
    %228 = tpu.reciprocal %224 {approx = true} : vector<16x1xf32> -> vector<16x1xf32>
    %229 = vector.broadcast %228 : vector<16x1xf32> to vector<16x64xf32>
    %230 = arith.mulf %227, %229 : vector<16x64xf32>
    %231 = tpu.concatenate %212, %230 in 1 : vector<16x64xf32>, vector<16x64xf32> -> vector<16x128xf32>
    %232 = arith.truncf %231 : vector<16x128xf32> to vector<16x128xbf16>
    %c0_95 = arith.constant 0 : index
    %c0_96 = arith.constant 0 : index
    %233 = vector.load %arg15[%c0_95, %c0_96] : memref<128x128xbf16, #tpu.memory_space<vmem>>, vector<128x128xbf16>
    %cst_97 = arith.constant dense<0.000000e+00> : vector<16x128xf32>
    %234 = tpu.matmul %232, %233, %cst_97 {dimension_numbers = #tpu.dot_dimension_numbers<[1], [0], [0], [1], [0, 0, 1, 1], [], []>} : vector<16x128xbf16>, vector<128x128xbf16>, vector<16x128xf32> -> vector<16x128xf32>
    %c0_98 = arith.constant 0 : index
    %c0_99 = arith.constant 0 : index
    %235 = vector.load %arg16[%c0_98, %c0_99] : memref<1x128xf32, #tpu.memory_space<vmem>>, vector<1x128xf32>
    %236 = vector.broadcast %235 : vector<1x128xf32> to vector<16x128xf32>
    %237 = arith.addf %234, %236 : vector<16x128xf32>
    %238 = arith.addf %1, %237 : vector<16x128xf32>
    %c0_100 = arith.constant 0 : index
    %c0_101 = arith.constant 0 : index
    %239 = vector.load %arg17[%c0_100, %c0_101] : memref<1x128xf32, #tpu.memory_space<vmem>>, vector<1x128xf32>
    %c0_102 = arith.constant 0 : index
    %c0_103 = arith.constant 0 : index
    %240 = vector.load %arg18[%c0_102, %c0_103] : memref<1x128xf32, #tpu.memory_space<vmem>>, vector<1x128xf32>
    %cst_104 = arith.constant dense<0.000000e+00> : vector<16xf32>
    %241 = vector.multi_reduction <add>, %238, %cst_104 [1] : vector<16x128xf32> to vector<16xf32>
    %242 = vector.shape_cast %241 : vector<16xf32> to vector<16x1xf32>
    %cst_105 = arith.constant 1.280000e+02 : f32
    %243 = vector.broadcast %cst_105 : f32 to vector<16x1xf32>
    %244 = arith.divf %242, %243 : vector<16x1xf32>
    %245 = vector.broadcast %244 : vector<16x1xf32> to vector<16x128xf32>
    %246 = arith.subf %238, %245 : vector<16x128xf32>
    %247 = arith.mulf %246, %246 : vector<16x128xf32>
    %cst_106 = arith.constant dense<0.000000e+00> : vector<16xf32>
    %248 = vector.multi_reduction <add>, %247, %cst_106 [1] : vector<16x128xf32> to vector<16xf32>
    %249 = vector.shape_cast %248 : vector<16xf32> to vector<16x1xf32>
    %cst_107 = arith.constant 1.280000e+02 : f32
    %250 = vector.broadcast %cst_107 : f32 to vector<16x1xf32>
    %251 = arith.divf %249, %250 : vector<16x1xf32>
    %252 = vector.broadcast %244 : vector<16x1xf32> to vector<16x128xf32>
    %253 = arith.subf %238, %252 : vector<16x128xf32>
    %cst_108 = arith.constant 9.99999974E-6 : f32
    %254 = vector.broadcast %cst_108 : f32 to vector<16x1xf32>
    %255 = arith.addf %251, %254 : vector<16x1xf32>
    %256 = math.rsqrt %255 : vector<16x1xf32>
    %257 = vector.broadcast %256 : vector<16x1xf32> to vector<16x128xf32>
    %258 = arith.mulf %253, %257 : vector<16x128xf32>
    %259 = vector.broadcast %239 : vector<1x128xf32> to vector<16x128xf32>
    %260 = arith.mulf %258, %259 : vector<16x128xf32>
    %261 = vector.broadcast %240 : vector<1x128xf32> to vector<16x128xf32>
    %262 = arith.addf %260, %261 : vector<16x128xf32>
    %263 = arith.truncf %262 : vector<16x128xf32> to vector<16x128xbf16>
    %c0_109 = arith.constant 0 : index
    %c0_110 = arith.constant 0 : index
    %264 = vector.load %arg19[%c0_109, %c0_110] : memref<128x256xbf16, #tpu.memory_space<vmem>>, vector<128x256xbf16>
    %cst_111 = arith.constant dense<0.000000e+00> : vector<16x256xf32>
    %265 = tpu.matmul %263, %264, %cst_111 {dimension_numbers = #tpu.dot_dimension_numbers<[1], [0], [0], [1], [0, 0, 1, 1], [], []>} : vector<16x128xbf16>, vector<128x256xbf16>, vector<16x256xf32> -> vector<16x256xf32>
    %c0_112 = arith.constant 0 : index
    %c0_113 = arith.constant 0 : index
    %266 = vector.load %arg20[%c0_112, %c0_113] : memref<1x256xf32, #tpu.memory_space<vmem>>, vector<1x256xf32>
    %267 = vector.broadcast %266 : vector<1x256xf32> to vector<16x256xf32>
    %268 = arith.addf %265, %267 : vector<16x256xf32>
    %269 = arith.mulf %268, %268 : vector<16x256xf32>
    %270 = arith.mulf %268, %269 : vector<16x256xf32>
    %cst_114 = arith.constant 4.471500e-02 : f32
    %271 = vector.broadcast %cst_114 : f32 to vector<16x256xf32>
    %272 = arith.mulf %271, %270 : vector<16x256xf32>
    %273 = arith.addf %268, %272 : vector<16x256xf32>
    %cst_115 = arith.constant 0.797884583 : f32
    %274 = vector.broadcast %cst_115 : f32 to vector<16x256xf32>
    %275 = arith.mulf %274, %273 : vector<16x256xf32>
    %276 = math.tanh %275 : vector<16x256xf32>
    %cst_116 = arith.constant 1.000000e+00 : f32
    %277 = vector.broadcast %cst_116 : f32 to vector<16x256xf32>
    %278 = arith.addf %277, %276 : vector<16x256xf32>
    %cst_117 = arith.constant 5.000000e-01 : f32
    %279 = vector.broadcast %cst_117 : f32 to vector<16x256xf32>
    %280 = arith.mulf %279, %278 : vector<16x256xf32>
    %281 = arith.mulf %268, %280 : vector<16x256xf32>
    %282 = arith.truncf %281 : vector<16x256xf32> to vector<16x256xbf16>
    %c0_118 = arith.constant 0 : index
    %c0_119 = arith.constant 0 : index
    %283 = vector.load %arg21[%c0_118, %c0_119] : memref<256x128xbf16, #tpu.memory_space<vmem>>, vector<256x128xbf16>
    %cst_120 = arith.constant dense<0.000000e+00> : vector<16x128xf32>
    %284 = tpu.matmul %282, %283, %cst_120 {dimension_numbers = #tpu.dot_dimension_numbers<[1], [0], [0], [1], [0, 0, 1, 1], [], []>} : vector<16x256xbf16>, vector<256x128xbf16>, vector<16x128xf32> -> vector<16x128xf32>
    %c0_121 = arith.constant 0 : index
    %c0_122 = arith.constant 0 : index
    %285 = vector.load %arg22[%c0_121, %c0_122] : memref<1x128xf32, #tpu.memory_space<vmem>>, vector<1x128xf32>
    %286 = vector.broadcast %285 : vector<1x128xf32> to vector<16x128xf32>
    %287 = arith.addf %284, %286 : vector<16x128xf32>
    %288 = arith.addf %238, %287 : vector<16x128xf32>
    %c0_123 = arith.constant 0 : index
    %c0_124 = arith.constant 0 : index
    %c0_125 = arith.constant 0 : index
    %289 = vector.load %arg23[%c0_123, %c0_124, %c0_125] : memref<1x16x128xf32, #tpu.memory_space<vmem>>, vector<1x16x128xf32>
    %290 = vector.shape_cast %289 : vector<1x16x128xf32> to vector<16x128xf32>
    %291 = vector.shape_cast %288 : vector<16x128xf32> to vector<1x16x128xf32>
    tpu.vector_store %arg23[%c0_123, %c0_124, %c0_125], %291 {strides = array<i32>} : memref<1x16x128xf32, #tpu.memory_space<vmem>>, vector<1x16x128xf32>,
    return
  }
  func.func @transform_0(%arg0: i32) -> (i32, i32, i32) {
    %c0_i32 = arith.constant 0 : i32
    %c0_i32_0 = arith.constant 0 : i32
    %c0_i32_1 = arith.constant 0 : i32
    return %arg0, %c0_i32, %c0_i32_0 : i32, i32, i32
  }
  func.func @transform_1(%arg0: i32) -> (i32, i32, i32) {
    %c0_i32 = arith.constant 0 : i32
    %c0_i32_0 = arith.constant 0 : i32
    %c0_i32_1 = arith.constant 0 : i32
    return %arg0, %c0_i32, %c0_i32_0 : i32, i32, i32
  }
  func.func @transform_2(%arg0: i32) -> (i32, i32) {
    %c0_i32 = arith.constant 0 : i32
    %c0_i32_0 = arith.constant 0 : i32
    %c0_i32_1 = arith.constant 0 : i32
    return %c0_i32, %c0_i32_0 : i32, i32
  }
  func.func @transform_3(%arg0: i32) -> (i32, i32) {
    %c0_i32 = arith.constant 0 : i32
    %c0_i32_0 = arith.constant 0 : i32
    %c0_i32_1 = arith.constant 0 : i32
    return %c0_i32, %c0_i32_0 : i32, i32
  }
  func.func @transform_4(%arg0: i32) -> (i32, i32) {
    %c0_i32 = arith.constant 0 : i32
    %c0_i32_0 = arith.constant 0 : i32
    %c0_i32_1 = arith.constant 0 : i32
    return %c0_i32, %c0_i32_0 : i32, i32
  }
  func.func @transform_5(%arg0: i32) -> (i32, i32) {
    %c0_i32 = arith.constant 0 : i32
    %c0_i32_0 = arith.constant 0 : i32
    %c0_i32_1 = arith.constant 0 : i32
    return %c0_i32, %c0_i32_0 : i32, i32
  }
  func.func @transform_6(%arg0: i32) -> (i32, i32) {
    %c0_i32 = arith.constant 0 : i32
    %c0_i32_0 = arith.constant 0 : i32
    %c0_i32_1 = arith.constant 0 : i32
    return %c0_i32, %c0_i32_0 : i32, i32
  }
  func.func @transform_7(%arg0: i32) -> (i32, i32) {
    %c0_i32 = arith.constant 0 : i32
    %c0_i32_0 = arith.constant 0 : i32
    %c0_i32_1 = arith.constant 0 : i32
    return %c0_i32, %c0_i32_0 : i32, i32
  }
  func.func @transform_8(%arg0: i32) -> (i32, i32) {
    %c0_i32 = arith.constant 0 : i32
    %c0_i32_0 = arith.constant 0 : i32
    %c0_i32_1 = arith.constant 0 : i32
    return %c0_i32, %c0_i32_0 : i32, i32
  }
  func.func @transform_9(%arg0: i32) -> (i32, i32) {
    %c0_i32 = arith.constant 0 : i32
    %c0_i32_0 = arith.constant 0 : i32
    %c0_i32_1 = arith.constant 0 : i32
    return %c0_i32, %c0_i32_0 : i32, i32
  }
  func.func @transform_10(%arg0: i32) -> (i32, i32) {
    %c0_i32 = arith.constant 0 : i32
    %c0_i32_0 = arith.constant 0 : i32
    %c0_i32_1 = arith.constant 0 : i32
    return %c0_i32, %c0_i32_0 : i32, i32
  }
  func.func @transform_11(%arg0: i32) -> (i32, i32) {
    %c0_i32 = arith.constant 0 : i32
    %c0_i32_0 = arith.constant 0 : i32
    %c0_i32_1 = arith.constant 0 : i32
    return %c0_i32, %c0_i32_0 : i32, i32
  }
  func.func @transform_12(%arg0: i32) -> (i32, i32) {
    %c0_i32 = arith.constant 0 : i32
    %c0_i32_0 = arith.constant 0 : i32
    %c0_i32_1 = arith.constant 0 : i32
    return %c0_i32, %c0_i32_0 : i32, i32
  }
  func.func @transform_13(%arg0: i32) -> (i32, i32) {
    %c0_i32 = arith.constant 0 : i32
    %c0_i32_0 = arith.constant 0 : i32
    %c0_i32_1 = arith.constant 0 : i32
    return %c0_i32, %c0_i32_0 : i32, i32
  }
  func.func @transform_14(%arg0: i32) -> (i32, i32) {
    %c0_i32 = arith.constant 0 : i32
    %c0_i32_0 = arith.constant 0 : i32
    %c0_i32_1 = arith.constant 0 : i32
    return %c0_i32, %c0_i32_0 : i32, i32
  }
  func.func @transform_15(%arg0: i32) -> (i32, i32) {
    %c0_i32 = arith.constant 0 : i32
    %c0_i32_0 = arith.constant 0 : i32
    %c0_i32_1 = arith.constant 0 : i32
    return %c0_i32, %c0_i32_0 : i32, i32
  }
  func.func @transform_16(%arg0: i32) -> (i32, i32) {
    %c0_i32 = arith.constant 0 : i32
    %c0_i32_0 = arith.constant 0 : i32
    %c0_i32_1 = arith.constant 0 : i32
    return %c0_i32, %c0_i32_0 : i32, i32
  }
  func.func @transform_17(%arg0: i32) -> (i32, i32) {
    %c0_i32 = arith.constant 0 : i32
    %c0_i32_0 = arith.constant 0 : i32
    %c0_i32_1 = arith.constant 0 : i32
    return %c0_i32, %c0_i32_0 : i32, i32
  }
  func.func @transform_18(%arg0: i32) -> (i32, i32) {
    %c0_i32 = arith.constant 0 : i32
    %c0_i32_0 = arith.constant 0 : i32
    %c0_i32_1 = arith.constant 0 : i32
    return %c0_i32, %c0_i32_0 : i32, i32
  }
  func.func @transform_19(%arg0: i32) -> (i32, i32) {
    %c0_i32 = arith.constant 0 : i32
    %c0_i32_0 = arith.constant 0 : i32
    %c0_i32_1 = arith.constant 0 : i32
    return %c0_i32, %c0_i32_0 : i32, i32
  }
  func.func @transform_20(%arg0: i32) -> (i32, i32) {
    %c0_i32 = arith.constant 0 : i32
    %c0_i32_0 = arith.constant 0 : i32
    %c0_i32_1 = arith.constant 0 : i32
    return %c0_i32, %c0_i32_0 : i32, i32
  }
  func.func @transform_21(%arg0: i32) -> (i32, i32) {
    %c0_i32 = arith.constant 0 : i32
    %c0_i32_0 = arith.constant 0 : i32
    %c0_i32_1 = arith.constant 0 : i32
    return %c0_i32, %c0_i32_0 : i32, i32
  }
  func.func @transform_22(%arg0: i32) -> (i32, i32, i32) {
    %c0_i32 = arith.constant 0 : i32
    %c0_i32_0 = arith.constant 0 : i32
    %c0_i32_1 = arith.constant 0 : i32
    return %arg0, %c0_i32, %c0_i32_0 : i32, i32, i32
  }
}

module attributes {stable_mosaic.version = 11 : i64} {
  func.func @_head_kernel(%arg0: memref<32x128xf32, #tpu.memory_space<vmem>>, %arg1: memref<2x32xf32, #tpu.memory_space<vmem>>, %arg2: memref<1x128xf32, #tpu.memory_space<vmem>>, %arg3: memref<1x128xf32, #tpu.memory_space<vmem>>, %arg4: memref<128x10xf32, #tpu.memory_space<vmem>>, %arg5: memref<1x10xf32, #tpu.memory_space<vmem>>, %arg6: memref<2x10xf32, #tpu.memory_space<vmem>>) attributes {dimension_semantics = [], scalar_prefetch = 0 : i64, scratch_operands = 0 : i64, tpu.core_type = #tpu.core_type<tc>} {
    %c0 = arith.constant 0 : index
    %c0_0 = arith.constant 0 : index
    %0 = vector.load %arg0[%c0, %c0_0] : memref<32x128xf32, #tpu.memory_space<vmem>>, vector<32x128xf32>
    %c0_1 = arith.constant 0 : index
    %c0_2 = arith.constant 0 : index
    %1 = vector.load %arg2[%c0_1, %c0_2] : memref<1x128xf32, #tpu.memory_space<vmem>>, vector<1x128xf32>
    %c0_3 = arith.constant 0 : index
    %c0_4 = arith.constant 0 : index
    %2 = vector.load %arg3[%c0_3, %c0_4] : memref<1x128xf32, #tpu.memory_space<vmem>>, vector<1x128xf32>
    %cst = arith.constant dense<0.000000e+00> : vector<32xf32>
    %3 = vector.multi_reduction <add>, %0, %cst [1] : vector<32x128xf32> to vector<32xf32>
    %4 = vector.shape_cast %3 : vector<32xf32> to vector<32x1xf32>
    %cst_5 = arith.constant 1.280000e+02 : f32
    %5 = vector.broadcast %cst_5 : f32 to vector<32x1xf32>
    %6 = arith.divf %4, %5 : vector<32x1xf32>
    %7 = vector.broadcast %6 : vector<32x1xf32> to vector<32x128xf32>
    %8 = arith.subf %0, %7 : vector<32x128xf32>
    %9 = arith.mulf %8, %8 : vector<32x128xf32>
    %cst_6 = arith.constant dense<0.000000e+00> : vector<32xf32>
    %10 = vector.multi_reduction <add>, %9, %cst_6 [1] : vector<32x128xf32> to vector<32xf32>
    %11 = vector.shape_cast %10 : vector<32xf32> to vector<32x1xf32>
    %cst_7 = arith.constant 1.280000e+02 : f32
    %12 = vector.broadcast %cst_7 : f32 to vector<32x1xf32>
    %13 = arith.divf %11, %12 : vector<32x1xf32>
    %14 = vector.broadcast %6 : vector<32x1xf32> to vector<32x128xf32>
    %15 = arith.subf %0, %14 : vector<32x128xf32>
    %cst_8 = arith.constant 9.99999974E-6 : f32
    %16 = vector.broadcast %cst_8 : f32 to vector<32x1xf32>
    %17 = arith.addf %13, %16 : vector<32x1xf32>
    %18 = math.rsqrt %17 : vector<32x1xf32>
    %19 = vector.broadcast %18 : vector<32x1xf32> to vector<32x128xf32>
    %20 = arith.mulf %15, %19 : vector<32x128xf32>
    %21 = vector.broadcast %1 : vector<1x128xf32> to vector<32x128xf32>
    %22 = arith.mulf %20, %21 : vector<32x128xf32>
    %23 = vector.broadcast %2 : vector<1x128xf32> to vector<32x128xf32>
    %24 = arith.addf %22, %23 : vector<32x128xf32>
    %c0_9 = arith.constant 0 : index
    %c0_10 = arith.constant 0 : index
    %25 = vector.load %arg1[%c0_9, %c0_10] : memref<2x32xf32, #tpu.memory_space<vmem>>, vector<2x32xf32>
    %cst_11 = arith.constant dense<0.000000e+00> : vector<2x128xf32>
    %26 = tpu.matmul %25, %24, %cst_11 {dimension_numbers = #tpu.dot_dimension_numbers<[1], [0], [0], [1], [0, 0, 1, 1], [], []>} : vector<2x32xf32>, vector<32x128xf32>, vector<2x128xf32> -> vector<2x128xf32>
    %c0_12 = arith.constant 0 : index
    %c0_13 = arith.constant 0 : index
    %27 = vector.load %arg4[%c0_12, %c0_13] : memref<128x10xf32, #tpu.memory_space<vmem>>, vector<128x10xf32>
    %cst_14 = arith.constant dense<0.000000e+00> : vector<2x10xf32>
    %28 = tpu.matmul %26, %27, %cst_14 {dimension_numbers = #tpu.dot_dimension_numbers<[1], [0], [0], [1], [0, 0, 1, 1], [], []>} : vector<2x128xf32>, vector<128x10xf32>, vector<2x10xf32> -> vector<2x10xf32>
    %c0_15 = arith.constant 0 : index
    %c0_16 = arith.constant 0 : index
    %29 = vector.load %arg5[%c0_15, %c0_16] : memref<1x10xf32, #tpu.memory_space<vmem>>, vector<1x10xf32>
    %30 = vector.broadcast %29 : vector<1x10xf32> to vector<2x10xf32>
    %31 = arith.addf %28, %30 : vector<2x10xf32>
    %c0_17 = arith.constant 0 : index
    %c0_18 = arith.constant 0 : index
    %32 = vector.load %arg6[%c0_17, %c0_18] : memref<2x10xf32, #tpu.memory_space<vmem>>, vector<2x10xf32>
    tpu.vector_store %arg6[%c0_17, %c0_18], %31 {strides = array<i32>} : memref<2x10xf32, #tpu.memory_space<vmem>>, vector<2x10xf32>,
    return
  }
}

</mosaic_0001>

<bundles_post_ra>
// kernel: shunted_transformer_forward.4
= control target key start
LH: loop header
LB: loop body
LE: loop exit
PB: predicated region body
PF: predicated region fallthrough
CT: control target
= control target key end

     0   :  { %vm66_vm0 = vcmask 523264   ;;  %s311_s1 = inlined_call_operand.vmem [shape: bf16[64,128], index: 1, kind: input, shape index: {}]   ;;  %s312_s0 = inlined_call_operand.vmem [shape: f32[32,64], index: 0, kind: input, shape index: {}]   ;;  %s313_s2 = inlined_call_operand.vmem [shape: f32[1,128], index: 2, kind: input, shape index: {}]   ;;  %s314_s3 = inlined_call_operand.vmem [shape: f32[1,128], index: 3, kind: input, shape index: {}]   ;;  %s315_s4 = inlined_call_operand.vmem [shape: f32[1,128], index: 4, kind: input, shape index: {}]   ;;  %s316_s5 = inlined_call_operand.vmem [shape: f32[32,128], index: 5, kind: output, shape index: {}]  }
   0x1   :  { %v224_v0 = vld [vmem:[%s311_s1] sm:$0xff]   ;;  %v225_v1 = vld [vmem:[%s311_s1 + $0x8] sm:$0xff]   ;;  %v226_v2 = vld [vmem:[%s311_s1 + $0x10] sm:$0xff]  }
   0x2   :  { %212 = vmatprep.subr.bf16.mxu0 %v224_v0  ;;  %v21_v3 = vld [vmem:[%s312_s0] sm:$0xff]  ;;  %v22_v4 = vld [vmem:[%s312_s0 + $0x8] sm:$0xff]  ;;  %v227_v6 = vld [vmem:[%s311_s1 + $0x18] sm:$0xff]  }
   0x3   :  { %213 = vmatpush3.bf16.msra.mxu0 %v224_v0  ;;  %v25_v5 = vpack.c.bf16 %v22_v4, %v21_v3  ;;  %v23_v7 = vld [vmem:[%s312_s0 + $0x10] sm:$0xff]  ;;  %v24_v8 = vld [vmem:[%s312_s0 + $0x18] sm:$0xff]  ;;  %v197_v10 = vld [vmem:[%s313_s2] ss:$0 sm:$0xff] }
   0x4   :  { %214 = vmatprep.subr.bf16.mxu0 %v225_v1  ;;  %v26_v9 = vpack.c.bf16 %v24_v8, %v23_v7  ;;  %v204_v48 = vld [vmem:[%s314_s3] ss:$0 sm:$0xff] }
   0x5   :  { %220 = vmatprep.mubr.msk.bf16.mxu0 %vm66_vm0, %v25_v5  ;;  %v205_v50 = vld [vmem:[%s315_s4] ss:$0 sm:$0xff] }
   0x7   :  { %215 = vmatpush3.bf16.msra.mxu0 %v225_v1 }
   0x8   :  { %216 = vmatprep.subr.bf16.mxu0 %v226_v2 }
   0xb   :  { %217 = vmatpush3.bf16.msra.mxu0 %v226_v2 }
   0xc   :  { %218 = vmatprep.subr.bf16.mxu0 %v227_v6 }
   0xf   :  { %219 = vmatpush3.bf16.msra.mxu0 %v227_v6 }
  0x12   :  { %221 = vmatmul.mubr.msk.bf16.vlgmr.msra.gmra.mrb[0].mxu0 %vm66_vm0, %v26_v9 }
  0xe5   :  { %v222_v11 = vpop.f32.mrb[0].mxu0 }
  0xe6   :  { %v116_v12 = vadd.f32 %v222_v11, %v197_v10  ;;  %v107_v13 = vpop.f32.mrb[1].mxu0 }
  0xe7   :  { %v108_v14 = vadd.f32 %v197_v10, %v107_v13  ;;  %v223_v15 = vpop.f32.mrb[2].mxu0 }
  0xe8   :  { %128 = vadd.xlane.f32.xlu1 %v116_v12  ;;  %v110_v16 = vpop.f32.mrb[3].mxu0  ;;  %v119_v17 = vadd.f32 %v223_v15, %v197_v10 }
  0xe9   :  { %124 = vadd.xlane.f32.xlu0 %v108_v14  ;;  %v111_v18 = vadd.f32 %v197_v10, %v110_v16 }
  0xec   :  { %130 = vadd.xlane.f32.xlu1 %v119_v17 }
  0xed   :  { %126 = vadd.xlane.f32.xlu0 %v111_v18 }
 0x175   :  { %v129_v19 = vpop.xlane.xlu1 %128 }
 0x176   :  { %v125_v20 = vpop.xlane.xlu0 %124  ;;  %v135_v21 = vmul.f32 0.0078125, %v129_v19 }
 0x177   :  { %v133_v22 = vmul.f32 0.0078125, %v125_v20 }
 0x178   :  { %v139_v26 = vsub.f32 %v116_v12, %v135_v21 }
 0x179   :  { %v137_v23 = vsub.f32 %v108_v14, %v133_v22  ;;  %v131_v24 = vpop.xlane.xlu1 %130 }
 0x17a   :  { %v127_v25 = vpop.xlane.xlu0 %126  ;;  %v136_v27 = vmul.f32 0.0078125, %v131_v24  ;;  %v143_v32 = vmul.f32 %v139_v26, %v139_v26 }
 0x17b   :  { %v134_v28 = vmul.f32 0.0078125, %v127_v25  ;;  %v141_v29 = vmul.f32 %v137_v23, %v137_v23 }
 0x17c   :  { %v140_v31 = vsub.f32 %v119_v17, %v136_v27 }
 0x17d   :  { %v138_v30 = vsub.f32 %v111_v18, %v134_v28  ;;  %145 = vadd.xlane.f32.xlu0 %v141_v29 }
 0x17e   :  { %v144_v34 = vmul.f32 %v140_v31, %v140_v31 }
 0x17f   :  { %v142_v33 = vmul.f32 %v138_v30, %v138_v30 }
 0x181   :  { %149 = vadd.xlane.f32.xlu0 %v143_v32  ;;  %147 = vadd.xlane.f32.xlu1 %v142_v33 }
 0x185   :  { %151 = vadd.xlane.f32.xlu1 %v144_v34 }
 0x20a   :  { %v146_v35 = vpop.xlane.xlu0 %145 }
 0x20b   :  { %v153_v36 = vmul.f32 0.0078125, %v146_v35 }
 0x20d   :  { %v157_v37 = vadd.f32 1e-05, %v153_v36 }
 0x20e   :  { %v148_v38 = vpop.xlane.xlu1 %147  ;;  %v150_v39 = vpop.xlane.xlu0 %149 }
 0x20f   :  { %228 = vrsqrt.f32 %v157_v37  ;;  %v154_v40 = vmul.f32 0.0078125, %v148_v38  ;;  %v155_v41 = vmul.f32 0.0078125, %v150_v39 }
 0x211   :  { %v158_v42 = vadd.f32 1e-05, %v154_v40  ;;  %v159_v43 = vadd.f32 1e-05, %v155_v41 }
 0x212   :  { %v152_v44 = vpop.xlane.xlu1 %151 }
 0x213   :  { %230 = vrsqrt.f32 %v158_v42  ;;  %v156_v45 = vmul.f32 0.0078125, %v152_v44 }
 0x214   :  { %232 = vrsqrt.f32 %v159_v43 }
 0x215   :  { %v160_v46 = vadd.f32 1e-05, %v156_v45 }
 0x217   :  { %234 = vrsqrt.f32 %v160_v46 }
 0x219   :  { %v229_v47 = vpop.eup %228 }
 0x21a   :  { %v165_v49 = vmul.f32 %v229_v47, %v137_v23 }
 0x21c   :  { %v175_v51 = vmul.f32 %v204_v48, %v165_v49 }
 0x21d   :  { %v231_v52 = vpop.eup %230 }
 0x21e   :  { %v233_v53 = vpop.eup %232  ;;  %v185_v54 = vadd.f32 %v205_v50, %v175_v51  ;;  %v166_v55 = vmul.f32 %v231_v52, %v138_v30 }
 0x21f   :  { %v167_v56 = vmul.f32 %v233_v53, %v139_v26 }
 0x220   :  { %189 = vst [vmem:[%s316_s5] sm:$0xff] %v185_v54  ;;  %v176_v57 = vmul.f32 %v204_v48, %v166_v55 }
 0x221   :  { %v235_v58 = vpop.eup %234  ;;  %v177_v59 = vmul.f32 %v204_v48, %v167_v56 }
 0x222   :  { %v186_v60 = vadd.f32 %v205_v50, %v176_v57  ;;  %v168_v61 = vmul.f32 %v235_v58, %v140_v31 }
 0x223   :  { %v187_v62 = vadd.f32 %v205_v50, %v177_v59 }
 0x224   :  { %190 = vst [vmem:[%s316_s5 + $0x8] sm:$0xff] %v186_v60  ;;  %v178_v63 = vmul.f32 %v204_v48, %v168_v61 }
 0x225   :  { %191 = vst [vmem:[%s316_s5 + $0x10] sm:$0xff] %v187_v62 }
 0x226   :  { %v188_v0 = vadd.f32 %v205_v50, %v178_v63 }
 0x228   :  { %192 = vst [vmem:[%s316_s5 + $0x18] sm:$0xff] %v188_v0 }

// kernel: shunted_transformer_forward.5
= control target key start
LH: loop header
LB: loop body
LE: loop exit
PB: predicated region body
PF: predicated region fallthrough
CT: control target
= control target key end

     0   :  { %s3737_s0 = inlined_call_operand.vmem [shape: f32[2,16,128], index: 0, kind: input, shape index: {}]   ;;  %s3738_s1 = inlined_call_operand.vmem [shape: f32[2,4,512], index: 1, kind: input, shape index: {}]   ;;  %s3739_s2 = inlined_call_operand.vmem [shape: f32[1,128], index: 2, kind: input, shape index: {}]   ;;  %s3740_s3 = inlined_call_operand.vmem [shape: f32[1,128], index: 3, kind: input, shape index: {}]   ;;  %s3741_s4 = inlined_call_operand.vmem [shape: bf16[128,128], index: 4, kind: input, shape index: {}]   ;;  %s3742_s5 = inlined_call_operand.vmem [shape: f32[1,128], index: 5, kind: input, shape index: {}]   ;;  %s3743_s6 = inlined_call_operand.vmem [shape: bf16[512,128], index: 6, kind: input, shape index: {}]   ;;  %s3744_s7 = inlined_call_operand.vmem [shape: f32[1,128], index: 7, kind: input, shape index: {}]   ;;  %s3745_s8 = inlined_call_operand.vmem [shape: f32[1,128], index: 8, kind: input, shape index: {}]   ;;  %s3746_s9 = inlined_call_operand.vmem [shape: f32[1,128], index: 9, kind: input, shape index: {}]   ;;  %s3747_s10 = inlined_call_operand.vmem [shape: bf16[128,128], index: 10, kind: input, shape index: {}]   ;;  %s3748_s11 = inlined_call_operand.vmem [shape: f32[1,128], index: 11, kind: input, shape index: {}]   ;;  %s3749_s12 = inlined_call_operand.vmem [shape: bf16[128,128], index: 12, kind: input, shape index: {}]   ;;  %s3750_s13 = inlined_call_operand.vmem [shape: f32[1,128], index: 13, kind: input, shape index: {}]   ;;  %s3751_s14 = inlined_call_operand.vmem [shape: bf16[128,128], index: 14, kind: input, shape index: {}]   ;;  %s3752_s15 = inlined_call_operand.vmem [shape: f32[1,128], index: 15, kind: input, shape index: {}]   ;;  %s3753_s16 = inlined_call_operand.vmem [shape: f32[1,128], index: 16, kind: input, shape index: {}]   ;;  %s3754_s17 = inlined_call_operand.vmem [shape: f32[1,128], index: 17, kind: input, shape index: {}]   ;;  %s3755_s18 = inlined_call_operand.vmem [shape: bf16[128,256], index: 18, kind: input, shape index: {}]   ;;  %s3756_s19 = inlined_call_operand.vmem [shape: f32[1,256], index: 19, kind: input, shape index: {}]   ;;  %s3757_s20 = inlined_call_operand.vmem [shape: bf16[256,128], index: 20, kind: input, shape index: {}]   ;;  %s3758_s21 = inlined_call_operand.vmem [shape: f32[1,128], index: 21, kind: input, shape index: {}]   ;;  %s3759_s22 = inlined_call_operand.vmem [shape: f32[2,16,128], index: 22, kind: output, shape index: {}]  }
   0x1   :  { %3762 = sst [smem:[#allocation2_spill]] %s3737_s0 }
   0x2   :  { %3763 = sst [smem:[#allocation3_spill]] %s3738_s1 }
   0x3   :  { %3764 = sst [smem:[#allocation4_spill]] %s3739_s2 }
   0x4   :  { %3765 = sst [smem:[#allocation5_spill]] %s3740_s3  ;;  %s3179_s3 = smov 0  }
   0x5   :  { %3766 = sst [smem:[#allocation6_spill]] %s3741_s4 }
   0x6   :  { %3767 = sst [smem:[#allocation7_spill]] %s3742_s5 }
   0x7   :  { %3768 = sst [smem:[#allocation8_spill]] %s3743_s6 }
   0x8 LB: > { %s2471_s28 = sadd.s32 4294967295, %s3058_s3   ;;  %p2475_p0 = scmp.ge.s32.totalorder %s3058_s3, 1  ;;  %s3058_s3 = sphi %s3179_s3, %s32_s3  }
   0x9   : > { %p622_p1 = scmp.lt.s32.totalorder %s3058_s3, 3 }
   0xb   : > { %p623_p2 = pnand %p2475_p0, %p622_p1 }
   0xc   : > { %p689_p3 = scmp.lt.s32.totalorder (!%p623_p2), %s2471_s28, 1  ;;  %s3769_s0 = sld [smem:[#allocation2_spill]] (!%p623_p2)  ;;  %vm975_vm0 = vcmask (!%p623_p2), 1043456   ;;  %v2905_v11 = vld [vmem:[%s3749_s12] sm:$0xff] (!%p623_p2)   ;;  %v3060_v13 = vmov (!%p623_p2), 0.0   ;;  %v2907_v14 = vld [vmem:[%s3749_s12 + $0x8] sm:$0xff] (!%p623_p2)  }
   0xd   : > { %626 = sbr.rel (%p623_p2) target bundleno = 3262 (0xcbe), region = 108  ;;  %s3770_s24 = sld [smem:[#allocation3_spill]] (!%p623_p2)  ;;  %2701 = vmatprep.subr.bf16.mxu0 (!%p623_p2), %v3060_v13  ;;  %2721 = vmatprep.subr.bf16.mxu1 (!%p623_p2), %v3060_v13  ;;  %v2909_v46 = vld [vmem:[%s3749_s12 + $0x10] sm:$0xff] (!%p623_p2)   ;;  %v2911_v48 = vld [vmem:[%s3749_s12 + $0x18] sm:$0xff] (!%p623_p2)   ;;  %v2913_v50 = vld [vmem:[%s3749_s12 + $0x20] sm:$0xff] (!%p623_p2)   ;;  %vm3061_vm1 = vmmov (!%p623_p2), 0  }
   0xe   : > { %s3771_s2 = sld [smem:[#allocation6_spill]] (!%p623_p2)  ;;  %2722 = vmatpush3.bf16.msra.mxu1 (!%p623_p2), %v2905_v11  ;;  %v2915_v52 = vld [vmem:[%s3749_s12 + $0x28] sm:$0xff] (!%p623_p2)   ;;  %v2917_v54 = vld [vmem:[%s3749_s12 + $0x30] sm:$0xff] (!%p623_p2)   ;;  %2717 = vmatprep.mubr.msk.bf16.mxu0 (!%p623_p2), %vm3061_vm1, %v3060_v13  ;;  %v2919_v56 = vld [vmem:[%s3749_s12 + $0x38] sm:$0xff] (!%p623_p2)   ;;  %s3772_s26 = sld [smem:[#allocation4_spill]] (!%p623_p2)  ;;  %vm1619_vm2 = vcmask (!%p623_p2), 523264  }
   0xf   : > { %2723 = vmatprep.subr.bf16.mxu1 (!%p623_p2), %v3060_v13  ;;  %2737 = vmatprep.mubr.msk.bf16.mxu1 (!%p623_p2), %vm3061_vm1, %v3060_v13  ;;  %s3773_s30 = sld [smem:[#allocation5_spill]] (!%p623_p2)  ;;  %s3774_s1 = sld [smem:[#allocation8_spill]] (!%p623_p2)  ;;  %vm1669_vm3 = vcmask (!%p623_p2), 31744   ;;  %vm1695_vm4 = vcmask (!%p623_p2), 1041408   ;;  %vm1797_vm5 = vcmask (!%p623_p2), 130048  }
  0x12   : > { %2724 = vmatpush3.bf16.msra.mxu1 (!%p623_p2), %v2907_v14 }
  0x13   : > { %2725 = vmatprep.subr.bf16.mxu1 (!%p623_p2), %v3060_v13 }
  0x14   : > { %s3777_s28 = smov (!%p689_p3, %s2471_s28), 1  ;;  %v2904_v10 = vld [vmem:[%s3771_s2] sm:$0xff]   ;;  %v2906_v12 = vld [vmem:[%s3771_s2 + $0x8] sm:$0xff]   ;;  %v2908_v45 = vld [vmem:[%s3771_s2 + $0x10] sm:$0xff]  }
  0x15   : > { %s3187_s29 = sshll.u32 %s3777_s28, 4  ;;  %2702 = vmatpush3.bf16.msra.mxu0 %v2904_v10  ;;  %v2910_v47 = vld [vmem:[%s3771_s2 + $0x18] sm:$0xff]   ;;  %v2912_v49 = vld [vmem:[%s3771_s2 + $0x20] sm:$0xff]   ;;  %v2914_v51 = vld [vmem:[%s3771_s2 + $0x28] sm:$0xff]  }
  0x16   : > { %s3193_s23 = scalar_lea.vmem %s3769_s0, %s3187_s29  ;;  %s698_s6 = scalar_lea.vmem %s3770_s24, %s3187_s29  ;;  %2703 = vmatprep.subr.bf16.mxu0 %v3060_v13  ;;  %2726 = vmatpush3.bf16.msra.mxu1 %v2909_v46  ;;  %v2916_v53 = vld [vmem:[%s3771_s2 + $0x30] sm:$0xff]   ;;  %v2918_v55 = vld [vmem:[%s3771_s2 + $0x38] sm:$0xff]   ;;  %v3314_v14 = vld [vmem:[%s3773_s30] ss:$0 sm:$0xff] }
  0x17   : > { %v705_v0 = vld [vmem:[%s3193_s23] sm:$0xff]  ;;  %v706_v1 = vld [vmem:[%s3193_s23 + $0x8] sm:$0xff]  ;;  %2727 = vmatprep.subr.bf16.mxu1 %v3060_v13  ;;  %s3062_s24 = smov 64   ;;  %s703_s4 = scalar_lea.vmem %s3759_s22, %s3187_s29 }
  0x18   : > { %709 = vadd.xlane.f32.xlu0 %v705_v0  ;;  %v973_v2 = vld [vmem:[%s698_s6] sm:$0xff]  ;;  %v974_v3 = vld [vmem:[%s698_s6 + $0x8] sm:$0xff] }
  0x19   : > { %v1009_v4 = vcombine.high %v973_v2, %v973_v2  ;;  %v976_v5 = vsel %vm975_vm0, %v973_v2, 0.0  ;;  %v1221_v6 = vsel %vm975_vm0, %v974_v3, 0.0  ;;  %v1343_v7 = vcombine.high %v974_v3, %v974_v3  ;;  %2704 = vmatpush3.bf16.msra.mxu0 %v2906_v12  ;;  %v2931_v46 = vld [vmem:[%s3774_s1 + $0x28] sm:$0xff]  }
  0x1a   : > { %2705 = vmatprep.subr.bf16.mxu0 %v3060_v13  ;;  %v1015_v18 = vrot.slane %v973_v2, 4  ;;  %v1349_v34 = vrot.slane %v974_v3, 4  ;;  %2728 = vmatpush3.bf16.msra.mxu1 %v2911_v48 }
  0x1b   : > { %v1011_v8 = vsel %vm975_vm0, %v1009_v4, 0.0  ;;  %v1345_v9 = vsel %vm975_vm0, %v1343_v7, 0.0  ;;  %2729 = vmatprep.subr.bf16.mxu1 %v3060_v13 }
  0x1c   : > { %1012 = vadd.xlane.f32.xlu1 %v1011_v8  ;;  %711 = vadd.xlane.f32.xlu0 %v706_v1 }
  0x1d   : > { %2706 = vmatpush3.bf16.msra.mxu0 %v2908_v45  ;;  %v2930_v45 = vld [vmem:[%s3774_s1 + $0x68] sm:$0xff]  }
  0x1e   : > { %2707 = vmatprep.subr.bf16.mxu0 %v3060_v13  ;;  %2730 = vmatpush3.bf16.msra.mxu1 %v2913_v50  ;;  %v2933_v50 = vld [vmem:[%s3774_s1 + $0x30] sm:$0xff]  }
  0x1f   : > { %2731 = vmatprep.subr.bf16.mxu1 %v3060_v13 }
  0x20   : > { %977 = vadd.xlane.f32.xlu1 %v976_v5  ;;  %1222 = vadd.xlane.f32.xlu0 %v1221_v6 }
  0x21   : > { %2708 = vmatpush3.bf16.msra.mxu0 %v2910_v47 }
  0x22   : > { %2709 = vmatprep.subr.bf16.mxu0 %v3060_v13  ;;  %2732 = vmatpush3.bf16.msra.mxu1 %v2915_v52  ;;  %v2935_v52 = vld [vmem:[%s3774_s1 + $0x38] sm:$0xff]  }
  0x23   : > { %2733 = vmatprep.subr.bf16.mxu1 %v3060_v13 }
  0x24   : > { %1346 = vadd.xlane.f32.xlu1 %v1345_v9  ;;  %v3307_v9 = vld [vmem:[%s3772_s26] ss:$0 sm:$0xff]  ;;  %s3775_s26 = sld [smem:[#allocation7_spill]] }
  0x25   : > { %2710 = vmatpush3.bf16.msra.mxu0 %v2912_v49  ;;  %v2932_v49 = vld [vmem:[%s3774_s1 + $0x70] sm:$0xff]  }
  0x26   : > { %2711 = vmatprep.subr.bf16.mxu0 %v3060_v13  ;;  %2734 = vmatpush3.bf16.msra.mxu1 %v2917_v54 }
  0x27   : > { %2735 = vmatprep.subr.bf16.mxu1 %v3060_v13 }
  0x29   : > { %2712 = vmatpush3.bf16.msra.mxu0 %v2914_v51 }
  0x2a   : > { %2713 = vmatprep.subr.bf16.mxu0 %v3060_v13  ;;  %2736 = vmatpush3.bf16.msra.mxu1 %v2919_v56  ;;  %v2937_v56 = vld [vmem:[%s3774_s1 + $0xc0] sm:$0xff]  }
  0x2b   : > { %2761 = vmatprep.subr.bf16.mxu1 %v3060_v13 }
  0x2d   : > { %2714 = vmatpush3.bf16.msra.mxu0 %v2916_v53 }
  0x2e   : > { %2715 = vmatprep.subr.bf16.mxu0 %v3060_v13 }
  0x31   : > { %2716 = vmatpush3.bf16.msra.mxu0 %v2918_v55  ;;  %v2936_v55 = vld [vmem:[%s3774_s1 + $0x80] sm:$0xff]  }
  0x32   : > { %2741 = vmatprep.subr.bf16.mxu0 %v3060_v13 }
  0xa5   : > { %v710_v15 = vpop.xlane.xlu0 %709 }
  0xa6   : > { %v714_v16 = vmul.f32 0.0078125, %v710_v15 }
  0xa8   : > { %v3223_v17 = vsub.f32 %v705_v0, %v714_v16 }
  0xa9   : > { %v1013_v19 = vpop.xlane.xlu1 %1012  ;;  %v712_v20 = vpop.xlane.xlu0 %711 }
  0xaa   : > { %v1014_v21 = vmul.f32 0.0078125, %v1013_v19  ;;  %v715_v22 = vmul.f32 0.0078125, %v712_v20  ;;  %v718_v23 = vmul.f32 %v3223_v17, %v3223_v17 }
  0xac   : > { %v3227_v24 = vsub.f32 %v1015_v18, %v1014_v21  ;;  %v3229_v25 = vsub.f32 %v706_v1, %v715_v22  ;;  %720 = vadd.xlane.f32.xlu0 %v718_v23  ;;  %v2920_v21 = vld [vmem:[%s3774_s1 + $0x40] sm:$0xff]  }
  0xad   : > { %v978_v26 = vpop.xlane.xlu1 %977  ;;  %v1223_v27 = vpop.xlane.xlu0 %1222  ;;  %v2921_v22 = vld [vmem:[%s3774_s1] sm:$0xff]  }
  0xae   : > { %v979_v28 = vmul.f32 0.0078125, %v978_v26  ;;  %v1224_v29 = vmul.f32 0.0078125, %v1223_v27  ;;  %v1018_v30 = vmul.f32 %v3227_v24, %v3227_v24  ;;  %v719_v31 = vmul.f32 %v3229_v25, %v3229_v25 }
  0xb0   : > { %v3235_v32 = vsub.f32 %v973_v2, %v979_v28  ;;  %v3237_v33 = vsub.f32 %v974_v3, %v1224_v29  ;;  %v1019_v35 = vsel %vm975_vm0, %v1018_v30, 0.0  ;;  %722 = vadd.xlane.f32.xlu1 %v719_v31  ;;  %v2922_v30 = vld [vmem:[%s3774_s1 + $0x48] sm:$0xff]  }
  0xb1   : > { %v1347_v36 = vpop.xlane.xlu1 %1346  ;;  %1020 = vadd.xlane.f32.xlu0 %v1019_v35  ;;  %v2923_v31 = vld [vmem:[%s3774_s1 + $0x8] sm:$0xff]  }
  0xb2   : > { %v1348_v37 = vmul.f32 0.0078125, %v1347_v36  ;;  %v981_v38 = vmul.f32 %v3235_v32, %v3235_v32  ;;  %v1226_v39 = vmul.f32 %v3237_v33, %v3237_v33  ;;  %v2924_v36 = vld [vmem:[%s3774_s1 + $0x50] sm:$0xff]  }
  0xb4   : > { %v3244_v40 = vsub.f32 %v1349_v34, %v1348_v37  ;;  %v982_v41 = vsel %vm975_vm0, %v981_v38, 0.0  ;;  %v1227_v42 = vsel %vm975_vm0, %v1226_v39, 0.0  ;;  %v2925_v37 = vld [vmem:[%s3774_s1 + $0x10] sm:$0xff]   ;;  %v2926_v39 = vld [vmem:[%s3774_s1 + $0x58] sm:$0xff]  }
  0xb5   : > { %983 = vadd.xlane.f32.xlu1 %v982_v41  ;;  %1228 = vadd.xlane.f32.xlu0 %v1227_v42  ;;  %v2928_v41 = vld [vmem:[%s3774_s1 + $0x60] sm:$0xff]  }
  0xb6   : > { %v1352_v43 = vmul.f32 %v3244_v40, %v3244_v40  ;;  %v2929_v42 = vld [vmem:[%s3774_s1 + $0x20] sm:$0xff]  }
  0xb8   : > { %v1353_v44 = vsel %vm975_vm0, %v1352_v43, 0.0 }
  0xb9   : > { %1354 = vadd.xlane.f32.xlu1 %v1353_v44 }
 0x139   : > { %v721_v57 = vpop.xlane.xlu0 %720 }
 0x13a   : > { %v724_v58 = vmul.f32 0.0078125, %v721_v57 }
 0x13c   : > { %v726_v59 = vadd.f32 1e-05, %v724_v58 }
 0x13d   : > { %v723_v60 = vpop.xlane.xlu1 %722 }
 0x13e   : > { %3008 = vrsqrt.f32 %v726_v59  ;;  %v725_v61 = vmul.f32 0.0078125, %v723_v60  ;;  %v1021_v62 = vpop.xlane.xlu0 %1020  ;;  %v2938_v59 = vld [vmem:[%s3774_s1 + $0x88] sm:$0xff]  }
 0x13f   : > { %v1022_v16 = vmul.f32 0.0078125, %v1021_v62  ;;  %v2939_v60 = vld [vmem:[%s3774_s1 + $0xc8] sm:$0xff]   ;;  %v2941_v62 = vld [vmem:[%s3774_s1 + $0xd0] sm:$0xff]  }
 0x140   : > { %v727_v63 = vadd.f32 1e-05, %v725_v61  ;;  %v2940_v61 = vld [vmem:[%s3774_s1 + $0x90] sm:$0xff]  }
 0x141   : > { %v1023_v27 = vadd.f32 1e-05, %v1022_v16 }
 0x142   : > { %3010 = vrsqrt.f32 %v727_v63  ;;  %v984_v0 = vpop.xlane.xlu1 %983  ;;  %v1229_v1 = vpop.xlane.xlu0 %1228  ;;  %v2942_v63 = vld [vmem:[%s3774_s1 + $0x98] sm:$0xff]  }
 0x143   : > { %v1230_v2 = vmul.f32 0.0078125, %v1229_v1  ;;  %v985_v20 = vmul.f32 0.0078125, %v984_v0  ;;  %v2943_v0 = vld [vmem:[%s3774_s1 + $0xd8] sm:$0xff]   ;;  %v2944_v1 = vld [vmem:[%s3774_s1 + $0xa0] sm:$0xff]  }
 0x145   : > { %v1231_v3 = vadd.f32 1e-05, %v1230_v2  ;;  %v986_v29 = vadd.f32 1e-05, %v985_v20  ;;  %v2945_v2 = vld [vmem:[%s3774_s1 + $0xe0] sm:$0xff]  }
 0x146   : > { %v1355_v4 = vpop.xlane.xlu1 %1354 }
 0x147   : > { %v1356_v5 = vmul.f32 0.0078125, %v1355_v4  ;;  %3012 = vrsqrt.f32 %v1231_v3  ;;  %v2946_v3 = vld [vmem:[%s3774_s1 + $0xa8] sm:$0xff]  }
 0x148   : > { %v3009_v6 = vpop.eup %3008  ;;  %v2947_v4 = vld [vmem:[%s3774_s1 + $0xe8] sm:$0xff]  }
 0x149   : > { %v1357_v7 = vadd.f32 1e-05, %v1356_v5  ;;  %v730_v8 = vmul.f32 %v3009_v6, %v3223_v17  ;;  %v2948_v5 = vld [vmem:[%s3774_s1 + $0xb0] sm:$0xff]  }
 0x14a   : > { %v2949_v6 = vld [vmem:[%s3774_s1 + $0xf0] sm:$0xff]  }
 0x14b   : > { %3014 = vrsqrt.f32 %v1357_v7  ;;  %v738_v12 = vmul.f32 %v3307_v9, %v730_v8  ;;  %v2950_v7 = vld [vmem:[%s3774_s1 + $0xb8] sm:$0xff]  }
 0x14c   : > { %v3011_v10 = vpop.eup %3010  ;;  %3016 = vrsqrt.f32 %v1023_v27  ;;  %v2951_v8 = vld [vmem:[%s3774_s1 + $0xf8] sm:$0xff]  }
 0x14d   : > { %v731_v11 = vmul.f32 %v3011_v10, %v3229_v25  ;;  %v746_v17 = vadd.f32 %v3314_v14, %v738_v12  ;;  %3018 = vrsqrt.f32 %v986_v29 }
 0x14f   : > { %v739_v15 = vmul.f32 %v3307_v9, %v731_v11  ;;  %v2484_v11 = vld [vmem:[%s3775_s26] ss:$0 sm:$0xff] }
 0x151   : > { %v747_v18 = vadd.f32 %v3314_v14, %v739_v15  ;;  %v3013_v19 = vpop.eup %3012 }
 0x152   : > { %v1233_v25 = vmul.f32 %v3013_v19, %v3237_v33 }
 0x153   : > { %v748_v23 = vpack.c.bf16 %v747_v18, %v746_v17 }
 0x154   : > { %v1234_v28 = vmul.f32 %v3307_v9, %v1233_v25 }
 0x155   : > { %v3015_v26 = vpop.eup %3014  ;;  %2718 = vmatmul.mubr.bf16.vlgmr.msra.gmra.mrb[0].mxu0 %v748_v23  ;;  %2738 = vmatmul.mubr.bf16.vlgmr.msra.gmra.mrb[0].mxu1 %v748_v23 }
 0x156   : > { %2742 = vmatpush3.bf16.msra.mxu0 %v2920_v21  ;;  %2762 = vmatpush3.bf16.msra.mxu1 %v2921_v22  ;;  %v1359_v34 = vmul.f32 %v3015_v26, %v3244_v40  ;;  %v3337_v33 = vadd.f32 %v3314_v14, %v1234_v28  ;;  %v2927_v40 = vld [vmem:[%s3774_s1 + $0x18] sm:$0xff]   ;;  %v3017_v43 = vpop.eup %3016 }
 0x157   : > { %2743 = vmatprep.subr.bf16.mxu0 %v3060_v13  ;;  %2763 = vmatprep.subr.bf16.mxu1 %v3060_v13  ;;  %v3019_v44 = vpop.eup %3018  ;;  %v1025_v47 = vmul.f32 %v3017_v43, %v3227_v24 }
 0x158   : > { %2757 = vmatprep.mubr.msk.bf16.mxu0 %vm3061_vm1, %v3060_v13  ;;  %2777 = vmatprep.mubr.msk.bf16.mxu1 %vm3061_vm1, %v3060_v13  ;;  %v1360_v35 = vmul.f32 %v3307_v9, %v1359_v34  ;;  %v988_v48 = vmul.f32 %v3019_v44, %v3235_v32  ;;  %v2934_v32 = vld [vmem:[%s3774_s1 + $0x78] sm:$0xff]  }
 0x159   : > { %v1026_v51 = vmul.f32 %v3307_v9, %v1025_v47 }
 0x15a   : > { %2744 = vmatpush3.bf16.msra.mxu0 %v2922_v30  ;;  %2764 = vmatpush3.bf16.msra.mxu1 %v2923_v31  ;;  %v3351_v38 = vadd.f32 %v3314_v14, %v1360_v35  ;;  %v989_v24 = vmul.f32 %v3307_v9, %v988_v48  ;;  %v1236_v9 = vpack.c.bf16 %v3337_v33, %v3337_v33 }
 0x15b   : > { %2745 = vmatprep.subr.bf16.mxu0 %v3060_v13  ;;  %2765 = vmatprep.subr.bf16.mxu1 %v3060_v13  ;;  %v1027_v53 = vadd.f32 %v3314_v14, %v1026_v51 }
 0x15c   : > { %v990_v54 = vadd.f32 %v3314_v14, %v989_v24  ;;  %v1362_v10 = vpack.c.bf16 %v3351_v38, %v3351_v38  ;;  %v2493_v14 = vld [vmem:[%s3750_s13] ss:$0 sm:$0xff] }
 0x15d   : > { %v1028_v57 = vpack.c.bf16 %v1027_v53, %v1027_v53  ;;  %v2952_v24 = vld [vmem:[%s3747_s10] sm:$0xff]  }
 0x15e   : > { %2746 = vmatpush3.bf16.msra.mxu0 %v2924_v36  ;;  %2766 = vmatpush3.bf16.msra.mxu1 %v2925_v37  ;;  %v991_v58 = vpack.c.bf16 %v990_v54, %v990_v54 }
 0x15f   : > { %2747 = vmatprep.subr.bf16.mxu0 %v3060_v13  ;;  %2767 = vmatprep.subr.bf16.mxu1 %v3060_v13 }
 0x162   : > { %2748 = vmatpush3.bf16.msra.mxu0 %v2926_v39  ;;  %2768 = vmatpush3.bf16.msra.mxu1 %v2927_v40 }
 0x163   : > { %2749 = vmatprep.subr.bf16.mxu0 %v3060_v13  ;;  %2769 = vmatprep.subr.bf16.mxu1 %v3060_v13 }
 0x166   : > { %2750 = vmatpush3.bf16.msra.mxu0 %v2928_v41  ;;  %2770 = vmatpush3.bf16.msra.mxu1 %v2929_v42 }
 0x167   : > { %2751 = vmatprep.subr.bf16.mxu0 %v3060_v13  ;;  %2771 = vmatprep.subr.bf16.mxu1 %v3060_v13 }
 0x16a   : > { %2752 = vmatpush3.bf16.msra.mxu0 %v2930_v45  ;;  %2772 = vmatpush3.bf16.msra.mxu1 %v2931_v46  ;;  %v2534_v46 = vld [vmem:[%s3744_s7] ss:$0 sm:$0xff] }
 0x16b   : > { %2753 = vmatprep.subr.bf16.mxu0 %v3060_v13  ;;  %2773 = vmatprep.subr.bf16.mxu1 %v3060_v13 }
 0x16e   : > { %2754 = vmatpush3.bf16.msra.mxu0 %v2932_v49  ;;  %2774 = vmatpush3.bf16.msra.mxu1 %v2933_v50 }
 0x16f   : > { %2755 = vmatprep.subr.bf16.mxu0 %v3060_v13  ;;  %2775 = vmatprep.subr.bf16.mxu1 %v3060_v13 }
 0x172   : > { %2756 = vmatpush3.bf16.msra.mxu0 %v2934_v32  ;;  %2776 = vmatpush3.bf16.msra.mxu1 %v2935_v52  ;;  %v2953_v32 = vld [vmem:[%s3747_s10 + $0x8] sm:$0xff]  }
 0x173   : > { %2781 = vmatprep.subr.bf16.mxu0 %v3060_v13  ;;  %2801 = vmatprep.subr.bf16.mxu1 %v3060_v13 }
 0x175   : > { %2758 = vmatmul.mubr.bf16.vlgmr.msra.gmra.mrb[4].mxu0 %v1028_v57  ;;  %2778 = vmatmul.mubr.bf16.vlgmr.msra.gmra.mrb[4].mxu1 %v991_v58  ;;  %v2954_v57 = vld [vmem:[%s3747_s10 + $0x10] sm:$0xff]   ;;  %v2955_v58 = vld [vmem:[%s3747_s10 + $0x18] sm:$0xff]  }
 0x176   : > { %2782 = vmatpush3.bf16.msra.mxu0 %v2936_v55  ;;  %2802 = vmatpush3.bf16.msra.mxu1 %v2937_v56 }
 0x177   : > { %2783 = vmatprep.subr.bf16.mxu0 %v3060_v13  ;;  %2803 = vmatprep.subr.bf16.mxu1 %v3060_v13 }
 0x178   : > { %2797 = vmatprep.mubr.msk.bf16.mxu0 %vm3061_vm1, %v3060_v13  ;;  %2817 = vmatprep.mubr.msk.bf16.mxu1 %vm3061_vm1, %v3060_v13 }
 0x17a   : > { %2784 = vmatpush3.bf16.msra.mxu0 %v2938_v59  ;;  %2804 = vmatpush3.bf16.msra.mxu1 %v2939_v60  ;;  %v2956_v59 = vld [vmem:[%s3747_s10 + $0x20] sm:$0xff]   ;;  %v2957_v60 = vld [vmem:[%s3747_s10 + $0x28] sm:$0xff]  }
 0x17b   : > { %2785 = vmatprep.subr.bf16.mxu0 %v3060_v13  ;;  %2805 = vmatprep.subr.bf16.mxu1 %v3060_v13 }
 0x17e   : > { %2786 = vmatpush3.bf16.msra.mxu0 %v2940_v61  ;;  %2806 = vmatpush3.bf16.msra.mxu1 %v2941_v62  ;;  %v2958_v61 = vld [vmem:[%s3747_s10 + $0x30] sm:$0xff]   ;;  %v2959_v62 = vld [vmem:[%s3747_s10 + $0x38] sm:$0xff]  }
 0x17f   : > { %2787 = vmatprep.subr.bf16.mxu0 %v3060_v13  ;;  %2807 = vmatprep.subr.bf16.mxu1 %v3060_v13 }
 0x182   : > { %2788 = vmatpush3.bf16.msra.mxu0 %v2942_v63  ;;  %2808 = vmatpush3.bf16.msra.mxu1 %v2943_v0 }
 0x183   : > { %2789 = vmatprep.subr.bf16.mxu0 %v3060_v13  ;;  %2809 = vmatprep.subr.bf16.mxu1 %v3060_v13 }
 0x186   : > { %2790 = vmatpush3.bf16.msra.mxu0 %v2944_v1  ;;  %2810 = vmatpush3.bf16.msra.mxu1 %v2945_v2 }
 0x187   : > { %2791 = vmatprep.subr.bf16.mxu0 %v3060_v13  ;;  %2811 = vmatprep.subr.bf16.mxu1 %v3060_v13 }
 0x18a   : > { %2792 = vmatpush3.bf16.msra.mxu0 %v2946_v3  ;;  %2812 = vmatpush3.bf16.msra.mxu1 %v2947_v4  ;;  %v2535_v3 = vld [vmem:[%s3745_s8] ss:$0 sm:$0xff] }
 0x18b   : > { %2793 = vmatprep.subr.bf16.mxu0 %v3060_v13  ;;  %2813 = vmatprep.subr.bf16.mxu1 %v3060_v13 }
 0x18e   : > { %2794 = vmatpush3.bf16.msra.mxu0 %v2948_v5  ;;  %2814 = vmatpush3.bf16.msra.mxu1 %v2949_v6  ;;  %v2536_v5 = vld [vmem:[%s3746_s9] ss:$0 sm:$0xff] }
 0x18f   : > { %2795 = vmatprep.subr.bf16.mxu0 %v3060_v13  ;;  %2815 = vmatprep.subr.bf16.mxu1 %v3060_v13 }
 0x192   : > { %2796 = vmatpush3.bf16.msra.mxu0 %v2950_v7  ;;  %2816 = vmatpush3.bf16.msra.mxu1 %v2951_v8 }
 0x193   : > { %2821 = vmatprep.subr.bf16.mxu0 %v3060_v13  ;;  %2841 = vmatprep.subr.bf16.mxu1 %v3060_v13 }
 0x195   : > { %2798 = vmatmul.mubr.bf16.vlgmr.msra.gmra.mrb[8].mxu0 %v1236_v9  ;;  %2818 = vmatmul.mubr.bf16.vlgmr.msra.gmra.mrb[8].mxu1 %v1362_v10  ;;  %v2537_v9 = vld [vmem:[%s3748_s11] ss:$0 sm:$0xff] }
 0x196   : > { %2837 = vmatprep.mubr.msk.bf16.mxu0 %vm3061_vm1, %v3060_v13  ;;  %2843 = vmatprep.mubr.msk.bf16.mxu1 %vm3061_vm1, %v3060_v13 }
 0x197   : > { %2822 = vmatpush3.bf16.msra.mxu0 %v2952_v24 }
 0x198   : > { %2823 = vmatprep.subr.bf16.mxu0 %v3060_v13 }
 0x19b   : > { %2824 = vmatpush3.bf16.msra.mxu0 %v2953_v32 }
 0x19c   : > { %2825 = vmatprep.subr.bf16.mxu0 %v3060_v13 }
 0x19f   : > { %2826 = vmatpush3.bf16.msra.mxu0 %v2954_v57 }
 0x1a0   : > { %2827 = vmatprep.subr.bf16.mxu0 %v3060_v13 }
 0x1a3   : > { %2828 = vmatpush3.bf16.msra.mxu0 %v2955_v58 }
 0x1a4   : > { %2829 = vmatprep.subr.bf16.mxu0 %v3060_v13 }
 0x1a7   : > { %2830 = vmatpush3.bf16.msra.mxu0 %v2956_v59 }
 0x1a8   : > { %2831 = vmatprep.subr.bf16.mxu0 %v3060_v13 }
 0x1ab   : > { %2832 = vmatpush3.bf16.msra.mxu0 %v2957_v60 }
 0x1ac   : > { %2833 = vmatprep.subr.bf16.mxu0 %v3060_v13 }
 0x1af   : > { %2834 = vmatpush3.bf16.msra.mxu0 %v2958_v61 }
 0x1b0   : > { %2835 = vmatprep.subr.bf16.mxu0 %v3060_v13 }
 0x1b3   : > { %2836 = vmatpush3.bf16.msra.mxu0 %v2959_v62 }
 0x1b4   : > { %2865 = vmatprep.subr.bf16.mxu0 %v3060_v13 }
 0x228   : > { %v854_v12 = vpop.f32.mrb[0].mxu0  ;;  %v966_v15 = vpop.f32.mrb[0].mxu1 }
 0x229   : > { %v2719_v16 = vpop.f32.mrb[1].mxu0  ;;  %v2739_v17 = vpop.f32.mrb[1].mxu1  ;;  %v855_v20 = vadd.f32 %v2484_v11, %v854_v12  ;;  %v967_v21 = vadd.f32 %v2493_v14, %v966_v15 }
 0x22a   : > { %v857_v18 = vpop.f32.mrb[2].mxu0  ;;  %v969_v19 = vpop.f32.mrb[2].mxu1 }
 0x22b   : > { %v858_v22 = vadd.f32 %v2484_v11, %v857_v18  ;;  %v970_v23 = vadd.f32 %v2493_v14, %v969_v19  ;;  %v2720_v25 = vpop.f32.mrb[3].mxu0  ;;  %v2740_v26 = vpop.f32.mrb[3].mxu1 }
 0x22d   : > { %v3485_v27 = vpack.c.bf16 %v858_v22, %v855_v20  ;;  %v3487_v28 = vpack.c.bf16 %v970_v23, %v967_v21 }
 0x248   : > { %v1127_v29 = vpop.f32.mrb[4].mxu0  ;;  %v1215_v30 = vpop.f32.mrb[4].mxu1 }
 0x249   : > { %v1216_v31 = vadd.f32 %v1215_v30, %v1127_v29  ;;  %v2759_v34 = vpop.f32.mrb[5].mxu0  ;;  %v2779_v33 = vpop.f32.mrb[5].mxu1 }
 0x24a   : > { %v1130_v35 = vpop.f32.mrb[6].mxu0  ;;  %v1218_v36 = vpop.f32.mrb[6].mxu1 }
 0x24b   : > { %v2760_v37 = vpop.f32.mrb[7].mxu0  ;;  %v2780_v38 = vpop.f32.mrb[7].mxu1 }
 0x268   : > { %v1335_v39 = vpop.f32.mrb[8].mxu0  ;;  %v1461_v40 = vpop.f32.mrb[8].mxu1 }
 0x269   : > { %v1341_v41 = vadd.f32 %v1335_v39, %v1216_v31  ;;  %v2799_v42 = vpop.f32.mrb[9].mxu0  ;;  %v2819_v43 = vpop.f32.mrb[9].mxu1 }
 0x26a   : > { %v1338_v44 = vpop.f32.mrb[10].mxu0  ;;  %v1464_v45 = vpop.f32.mrb[10].mxu1 }
 0x26b   : > { %v1467_v47 = vadd.f32 %v1461_v40, %v1341_v41  ;;  %v2800_v48 = vpop.f32.mrb[11].mxu0  ;;  %v2820_v49 = vpop.f32.mrb[11].mxu1 }
 0x26d   : > { %v1475_v50 = vadd.f32 %v2534_v46, %v1467_v47 }
 0x26f   : > { %v1478_v51 = vsel %vm975_vm0, %v1475_v50, 0.0 }
 0x270   : > { %1479 = vadd.xlane.f32.xlu0 %v1478_v51 }
 0x2fd   : > { %v1480_v52 = vpop.xlane.xlu0 %1479 }
 0x2fe   : > { %v1481_v53 = vmul.f32 0.0078125, %v1480_v52 }
 0x300   : > { %v1482_v54 = vsub.f32 %v1475_v50, %v1481_v53 }
 0x302   : > { %v1483_v55 = vmul.f32 %v1482_v54, %v1482_v54 }
 0x304   : > { %v1484_v56 = vsel %vm975_vm0, %v1483_v55, 0.0 }
 0x305   : > { %1485 = vadd.xlane.f32.xlu1 %v1484_v56 }
 0x392   : > { %v1486_v63 = vpop.xlane.xlu1 %1485 }
 0x393   : > { %v1487_v0 = vmul.f32 0.0078125, %v1486_v63 }
 0x395   : > { %v1488_v1 = vadd.f32 1e-05, %v1487_v0 }
 0x397   : > { %3020 = vrsqrt.f32 %v1488_v1  ;;  %v2960_v1 = vld [vmem:[%s3751_s14] sm:$0xff]  }
 0x3a1   : > { %v3021_v2 = vpop.eup %3020 }
 0x3a2   : > { %v1490_v4 = vmul.f32 %v3021_v2, %v1482_v54  ;;  %v2961_v2 = vld [vmem:[%s3751_s14 + $0x8] sm:$0xff]  }
 0x3a4   : > { %v1497_v6 = vmul.f32 %v2535_v3, %v1490_v4  ;;  %v2962_v3 = vld [vmem:[%s3751_s14 + $0x10] sm:$0xff]   ;;  %v2963_v4 = vld [vmem:[%s3751_s14 + $0x18] sm:$0xff]  }
 0x3a6   : > { %v1504_v7 = vadd.f32 %v2536_v5, %v1497_v6  ;;  %v2964_v5 = vld [vmem:[%s3751_s14 + $0x20] sm:$0xff]   ;;  %v2965_v6 = vld [vmem:[%s3751_s14 + $0x28] sm:$0xff]  }
 0x3a8   : > { %v1505_v8 = vpack.c.bf16 %v1504_v7, %v1504_v7  ;;  %v2966_v7 = vld [vmem:[%s3751_s14 + $0x30] sm:$0xff]  }
 0x3aa   : > { %2838 = vmatmul.mubr.bf16.vlgmr.msra.gmra.mrb[12].mxu0 %v1505_v8 }
 0x3ab   : > { %2881 = vmatprep.mubr.msk.bf16.mxu0 %vm3061_vm1, %v3060_v13  ;;  %2866 = vmatpush3.bf16.msra.mxu0 %v2960_v1  ;;  %v2991_v1 = vld [vmem:[%s3755_s18 + $0x74] ss:$8 sps:$4 sm:$0xff]  }
 0x3ac   : > { %2867 = vmatprep.subr.bf16.mxu0 %v3060_v13 }
 0x3af   : > { %2868 = vmatpush3.bf16.msra.mxu0 %v2961_v2  ;;  %v2989_v2 = vld [vmem:[%s3755_s18 + $0x70] ss:$8 sps:$4 sm:$0xff]  }
 0x3b0   : > { %2869 = vmatprep.subr.bf16.mxu0 %v3060_v13 }
 0x3b3   : > { %2870 = vmatpush3.bf16.msra.mxu0 %v2962_v3  ;;  %v3063_v3 = vmov 0  }
 0x3b4   : > { %2871 = vmatprep.subr.bf16.mxu0 %v3060_v13 }
 0x3b7   : > { %2872 = vmatpush3.bf16.msra.mxu0 %v2963_v4 }
 0x3b8   : > { %2873 = vmatprep.subr.bf16.mxu0 %v3060_v13 }
 0x3bb   : > { %2874 = vmatpush3.bf16.msra.mxu0 %v2964_v5 }
 0x3bc   : > { %2875 = vmatprep.subr.bf16.mxu0 %v3060_v13 }
 0x3bf   : > { %2876 = vmatpush3.bf16.msra.mxu0 %v2965_v6 }
 0x3c0   : > { %2877 = vmatprep.subr.bf16.mxu0 %v3060_v13 }
 0x3c3   : > { %2878 = vmatpush3.bf16.msra.mxu0 %v2966_v7 }
 0x3c4   : > { %2879 = vmatprep.subr.bf16.mxu0 %v3060_v13 }
 0x47d   : > { %v1611_v10 = vpop.f32.mrb[12].mxu0 }
 0x47e   : > { %v1612_v11 = vadd.f32 %v2537_v9, %v1611_v10  ;;  %v2839_v12 = vpop.f32.mrb[13].mxu0  ;;  %v2967_v10 = vld [vmem:[%s3751_s14 + $0x38] sm:$0xff]  }
 0x47f   : > { %v1614_v14 = vpop.f32.mrb[14].mxu0  ;;  %2880 = vmatpush3.bf16.msra.mxu0 %v2967_v10 }
 0x480   : > { %v1618_v15 = vpack.c.bf16 %v1612_v11, %v1612_v11  ;;  %v2840_v16 = vpop.f32.mrb[15].mxu0 }
 0x482   : > { %v1624_v17 = vsel %vm1619_vm2, %v1618_v15, 0 }
 0x483   : > { %2842 = vmatpush3.bf16.xpose.msra.mxu1 %v1624_v17 }
 0x484   : > { %2847 = vmatprep.subr.bf16.mxu1 %v3060_v13 }
 0x48a   : > { %2844 = vmatmul.mubr.msk.bf16.vlgmr.msra.gmra.mrb[12].mxu1 %vm1619_vm2, %v3485_v27 }
 0x48b   : > { %2849 = vmatprep.mubr.msk.bf16.mxu1 %vm3061_vm1, %v3060_v13 }
 0x55d   : > { %v1660_v18 = vpop.f32.mrb[12].mxu1 }
 0x55e   : > { %v1667_v19 = vmul.f32 0.125, %v1660_v18  ;;  %v2845_v20 = vpop.f32.mrb[13].mxu1 }
 0x55f   : > { %v1663_v21 = vpop.f32.mrb[14].mxu1 }
 0x560   : > { %v1668_v22 = vmul.f32 0.125, %v1663_v21  ;;  %v2846_v23 = vpop.f32.mrb[15].mxu1  ;;  %v1670_v25 = vsel %vm1669_vm3, %v1667_v19, -inf }
 0x561   : > { %1671 = vmax.xlane.f32.xlu0 %v1670_v25 }
 0x562   : > { %v1673_v26 = vsel %vm1669_vm3, %v1668_v22, -inf }
 0x563   : > { %1674 = vmax.xlane.f32.xlu1 %v1673_v26 }
 0x574   : > { %1746 = vrot.lane.b32.xlu1 %v3485_v27, %s3062_s24  ;;  %v1752_v27 = vsel %vm1619_vm2, %v3487_v28, 0 }
 0x577   : > { %1690 = vrot.lane.b32.xlu0 %v1618_v15, %s3062_s24 }
 0x5ee   : > { %v1672_v29 = vpop.xlane.xlu0 %1671 }
 0x5ef   : > { %v1676_v30 = vsub.f32 %v1667_v19, %v1672_v29 }
 0x5f0   : > { %v1675_v31 = vpop.xlane.xlu1 %1674 }
 0x5f1   : > { %v1678_v34 = vmul.f32 1.442695, %v1676_v30  ;;  %v1677_v33 = vsub.f32 %v1668_v22, %v1675_v31 }
 0x5f2   : > { %v1691_v35 = vpop.permute.xlu0 %1690 }
 0x5f3   : > { %v1680_v36 = vmul.f32 1.442695, %v1677_v33  ;;  %v1697_v37 = vsel %vm1695_vm4, %v1691_v35, 0  ;;  %3022 = vpow2.f32 %v1678_v34 }
 0x5f4   : > { %2848 = vmatpush3.bf16.msra.mxu1 %v1697_v37  ;;  %v1747_v41 = vpop.permute.xlu1 %1746 }
 0x5f5   : > { %3024 = vpow2.f32 %v1680_v36  ;;  %2853 = vmatprep.subr.bf16.mxu1 %v3060_v13  ;;  %v2550_v36 = vld [vmem:[%s3752_s15] ss:$0 sm:$0xff] }
 0x5fd   : > { %v3023_v38 = vpop.eup %3022 }
 0x5fe   : > { %v1682_v63 = vsel %vm1669_vm3, %v3023_v38, 0.0 }
 0x5ff   : > { %v3025_v39 = vpop.eup %3024 }
 0x600   : > { %v1688_v40 = vpack.c.bf16 %v3025_v39, %v3023_v38  ;;  %v1685_v0 = vsel %vm1669_vm3, %v3025_v39, 0.0 }
 0x602   : > { %2850 = vmatmul.mubr.msk.bf16.vlgmr.msra.gmra.mrb[16].mxu1 %vm1669_vm3, %v1688_v40 }
 0x603   : > { %2854 = vmatpush3.bf16.xpose.msra.mxu1 %v1752_v27  ;;  %2855 = vmatprep.mubr.msk.bf16.mxu1 %vm3061_vm1, %v3060_v13  ;;  %v3050_v27 = vld [vmem:[%s3193_s23] sm:$0xff] }
 0x604   : > { %2859 = vmatprep.subr.bf16.mxu1 %v3060_v13 }
 0x60a   : > { %2856 = vmatmul.mubr.msk.bf16.vlgmr.msra.gmra.mrb[20].mxu1 %vm1619_vm2, %v1747_v41 }
 0x60b   : > { %2861 = vmatprep.mubr.msk.bf16.mxu1 %vm3061_vm1, %v3060_v13 }
 0x6d5   : > { %v3558_v42 = vpop.f32.mrb[16].mxu1 }
 0x6d6   : > { %v2851_v43 = vpop.f32.mrb[17].mxu1 }
 0x6d7   : > { %v3560_v44 = vpop.f32.mrb[18].mxu1 }
 0x6d8   : > { %v2852_v45 = vpop.f32.mrb[19].mxu1 }
 0x6dd   : > { %v1788_v46 = vpop.f32.mrb[20].mxu1 }
 0x6de   : > { %v1795_v47 = vmul.f32 0.125, %v1788_v46  ;;  %v2857_v48 = vpop.f32.mrb[21].mxu1  ;;  %v2968_v46 = vld [vmem:[%s3755_s18] ss:$8 sps:$4 sm:$0xff]  }
 0x6df   : > { %v1791_v49 = vpop.f32.mrb[22].mxu1  ;;  %v2973_v48 = vld [vmem:[%s3755_s18 + $0x14] ss:$8 sps:$4 sm:$0xff]  }
 0x6e0   : > { %v1796_v50 = vmul.f32 0.125, %v1791_v49  ;;  %v2858_v51 = vpop.f32.mrb[23].mxu1  ;;  %v1798_v24 = vsel %vm1797_vm5, %v1795_v47, -inf  ;;  %v2971_v49 = vld [vmem:[%s3755_s18 + $0x10] ss:$8 sps:$4 sm:$0xff]  }
 0x6e1   : > { %1799 = vmax.xlane.f32.xlu1 %v1798_v24 }
 0x6e2   : > { %v1801_v32 = vsel %vm1797_vm5, %v1796_v50, -inf }
 0x6e3   : > { %1802 = vmax.xlane.f32.xlu0 %v1801_v32 }
 0x6f9   : > { %1818 = vrot.lane.b32.xlu0 %v3487_v28, %s3062_s24 }
 0x76e   : > { %v1800_v52 = vpop.xlane.xlu1 %1799 }
 0x76f   : > { %v1804_v53 = vsub.f32 %v1795_v47, %v1800_v52  ;;  %v2970_v47 = vld [vmem:[%s3755_s18 + $0x4] ss:$8 sps:$4 sm:$0xff]  }
 0x770   : > { %v1803_v54 = vpop.xlane.xlu0 %1802 }
 0x771   : > { %v1806_v55 = vmul.f32 1.442695, %v1804_v53  ;;  %v1805_v56 = vsub.f32 %v1796_v50, %v1803_v54 }
 0x773   : > { %3026 = vpow2.f32 %v1806_v55  ;;  %v1808_v57 = vmul.f32 1.442695, %v1805_v56  ;;  %v2976_v56 = vld [vmem:[%s3755_s18 + $0x24] ss:$8 sps:$4 sm:$0xff]  }
 0x774   : > { %v1819_v58 = vpop.permute.xlu0 %1818 }
 0x775   : > { %3028 = vpow2.f32 %v1808_v57  ;;  %2860 = vmatpush3.bf16.msra.mxu1 %v1819_v58  ;;  %v2974_v57 = vld [vmem:[%s3755_s18 + $0x20] ss:$8 sps:$4 sm:$0xff]   ;;  %v2979_v58 = vld [vmem:[%s3755_s18 + $0x34] ss:$8 sps:$4 sm:$0xff]  }
 0x776   : > { %2143 = vmatprep.subr.bf16.mxu1 %v2970_v47 }
 0x77d   : > { %v3027_v59 = vpop.eup %3026 }
 0x77e   : > { %v1810_v60 = vsel %vm1797_vm5, %v3027_v59, 0.0 }
 0x77f   : > { %v3029_v61 = vpop.eup %3028  ;;  %1811 = vadd.xlane.f32.xlu1 %v1810_v60  ;;  %v2982_v60 = vld [vmem:[%s3755_s18 + $0x44] ss:$8 sps:$4 sm:$0xff]  }
 0x780   : > { %v1816_v62 = vpack.c.bf16 %v3029_v61, %v3027_v59  ;;  %v1813_v28 = vsel %vm1797_vm5, %v3029_v61, 0.0  ;;  %v2977_v59 = vld [vmem:[%s3755_s18 + $0x30] ss:$8 sps:$4 sm:$0xff]   ;;  %v2980_v61 = vld [vmem:[%s3755_s18 + $0x40] ss:$8 sps:$4 sm:$0xff]  }
 0x782   : > { %2862 = vmatmul.mubr.msk.bf16.vlgmr.msra.gmra.mrb[24].mxu1 %vm1797_vm5, %v1816_v62  ;;  %v2985_v62 = vld [vmem:[%s3755_s18 + $0x54] ss:$8 sps:$4 sm:$0xff]  }
 0x783   : > { %1814 = vadd.xlane.f32.xlu1 %v1813_v28  ;;  %2144 = vmatpush1.bf16.msra.mxu1 %v2968_v46  ;;  %v2983_v28 = vld [vmem:[%s3755_s18 + $0x50] ss:$8 sps:$4 sm:$0xff]  }
 0x784   : > { %2145 = vmatprep.subr.bf16.mxu1 %v2973_v48  ;;  %2175 = vmatprep.mubr.bf16.mxu1 %v3063_v3 }
 0x787   : > { %1683 = vadd.xlane.f32.xlu1 %v1682_v63  ;;  %2146 = vmatpush1.bf16.msra.mxu1 %v2971_v49  ;;  %v2988_v63 = vld [vmem:[%s3755_s18 + $0x64] ss:$8 sps:$4 sm:$0xff]  }
 0x788   : > { %2147 = vmatprep.subr.bf16.mxu1 %v2976_v56 }
 0x78b   : > { %1686 = vadd.xlane.f32.xlu1 %v1685_v0  ;;  %2148 = vmatpush1.bf16.msra.mxu1 %v2974_v57  ;;  %v2986_v0 = vld [vmem:[%s3755_s18 + $0x60] ss:$8 sps:$4 sm:$0xff]  }
 0x78c   : > { %2149 = vmatprep.subr.bf16.mxu1 %v2979_v58 }
 0x78f   : > { %2150 = vmatpush1.bf16.msra.mxu1 %v2977_v59 }
 0x790   : > { %2151 = vmatprep.subr.bf16.mxu1 %v2982_v60 }
 0x793   : > { %2152 = vmatpush1.bf16.msra.mxu1 %v2980_v61 }
 0x794   : > { %2153 = vmatprep.subr.bf16.mxu1 %v2985_v62 }
 0x797   : > { %2154 = vmatpush1.bf16.msra.mxu1 %v2983_v28 }
 0x798   : > { %2155 = vmatprep.subr.bf16.mxu1 %v2988_v63 }
 0x79b   : > { %2156 = vmatpush1.bf16.msra.mxu1 %v2986_v0 }
 0x79c   : > { %2157 = vmatprep.subr.bf16.mxu1 %v2991_v1 }
 0x79f   : > { %2158 = vmatpush1.bf16.msra.mxu1 %v2989_v2 }
 0x80c   : > { %v1812_v8 = vpop.xlane.xlu1 %1811 }
 0x80d   : > { %3030 = vrcp.f32 %v1812_v8 }
 0x810   : > { %v1815_v9 = vpop.xlane.xlu1 %1814 }
 0x811   : > { %3032 = vrcp.f32 %v1815_v9 }
 0x814   : > { %v1684_v13 = vpop.xlane.xlu1 %1683 }
 0x815   : > { %3034 = vrcp.f32 %v1684_v13 }
 0x817   : > { %v3031_v12 = vpop.eup %3030 }
 0x818   : > { %v1687_v21 = vpop.xlane.xlu1 %1686 }
 0x819   : > { %3036 = vrcp.f32 %v1687_v21  ;;  %v2992_v21 = vld [vmem:[%s3757_s20 + $0x40] sm:$0xff]  }
 0x81a   : > { %2679 = vmatprep.subr.bf16.mxu0 %v2992_v21 }
 0x81b   : > { %v3033_v15 = vpop.eup %3032 }
 0x81f   : > { %v3035_v22 = vpop.eup %3034 }
 0x820   : > { %v1742_v26 = vmul.f32 %v3035_v22, %v3558_v42  ;;  %v2993_v22 = vld [vmem:[%s3757_s20] sm:$0xff]  }
 0x823   : > { %v3037_v23 = vpop.eup %3036 }
 0x824   : > { %v1743_v29 = vmul.f32 %v3037_v23, %v3560_v44  ;;  %v3051_v44 = vld [vmem:[%s3193_s23 + $0x8] sm:$0xff] }
 0x825   : > { %v2994_v23 = vld [vmem:[%s3757_s20 + $0x48] sm:$0xff]  }
 0x855   : > { %v1858_v11 = vpop.f32.mrb[24].mxu1 }
 0x856   : > { %v2863_v14 = vpop.f32.mrb[25].mxu1  ;;  %v1867_v17 = vmul.f32 %v3031_v12, %v1858_v11  ;;  %v2559_v12 = vld [vmem:[%s3753_s16] ss:$0 sm:$0xff] }
 0x857   : > { %v1861_v16 = vpop.f32.mrb[26].mxu1 }
 0x858   : > { %v1868_v18 = vmul.f32 %v3033_v15, %v1861_v16  ;;  %v2864_v19 = vpop.f32.mrb[27].mxu1 }
 0x85a   : > { %v2897_v20 = vpack.i.bf16 %v1868_v18, %v1867_v17  ;;  %v2560_v17 = vld [vmem:[%s3754_s17] ss:$0 sm:$0xff] }
 0x85c   : > { %2898 = vrot.lane.b32.xlu1 %v2897_v20, %s3062_s24 }
 0x8ce   : > { %v2899_v25 = vpop.permute.xlu1 %2898 }
 0x8cf   : > { %v2901_v30 = vunpack.i.h.bf16 %v2899_v25  ;;  %v2900_v31 = vunpack.i.l.bf16 %v2899_v25  ;;  %v2995_v25 = vld [vmem:[%s3757_s20 + $0x8] sm:$0xff]  }
 0x8d1   : > { %v1878_v34 = vsel %vm1619_vm2, %v1743_v29, %v2901_v30  ;;  %v1877_v33 = vsel %vm1619_vm2, %v1742_v26, %v2900_v31  ;;  %v2996_v26 = vld [vmem:[%s3757_s20 + $0x50] sm:$0xff]   ;;  %v2998_v30 = vld [vmem:[%s3757_s20 + $0x58] sm:$0xff]  }
 0x8d2   : > { %v1879_v35 = vpack.c.bf16 %v1878_v34, %v1877_v33  ;;  %v2997_v29 = vld [vmem:[%s3757_s20 + $0x10] sm:$0xff]   ;;  %v2999_v31 = vld [vmem:[%s3757_s20 + $0x18] sm:$0xff]   ;;  %v3000_v34 = vld [vmem:[%s3757_s20 + $0x60] sm:$0xff]  }
 0x8d3   : > { %v3001_v33 = vld [vmem:[%s3757_s20 + $0x20] sm:$0xff]  }
 0x8d4   : > { %2882 = vmatmul.mubr.bf16.vlgmr.msra.gmra.mrb[16].mxu0 %v1879_v35  ;;  %v3002_v35 = vld [vmem:[%s3757_s20 + $0x68] sm:$0xff]  }
 0x8d5   : > { %2680 = vmatpush3.bf16.msra.mxu0 %v2993_v22 }
 0x8d6   : > { %2681 = vmatprep.subr.bf16.mxu0 %v2994_v23 }
 0x8d9   : > { %2682 = vmatpush3.bf16.msra.mxu0 %v2995_v25 }
 0x8da   : > { %2683 = vmatprep.subr.bf16.mxu0 %v2996_v26 }
 0x8dd   : > { %2684 = vmatpush3.bf16.msra.mxu0 %v2997_v29 }
 0x8de   : > { %2685 = vmatprep.subr.bf16.mxu0 %v2998_v30 }
 0x8e1   : > { %2686 = vmatpush3.bf16.msra.mxu0 %v2999_v31 }
 0x8e2   : > { %2687 = vmatprep.subr.bf16.mxu0 %v3000_v34  ;;  %v2577_v34 = vld [vmem:[%s3758_s21] ss:$0 sm:$0xff] }
 0x8e5   : > { %2688 = vmatpush3.bf16.msra.mxu0 %v3001_v33 }
 0x8e6   : > { %2689 = vmatprep.subr.bf16.mxu0 %v3002_v35 }
 0x9a7   : > { %v1985_v37 = vpop.f32.mrb[16].mxu0 }
 0x9a8   : > { %v1986_v38 = vadd.f32 %v2550_v36, %v1985_v37  ;;  %v2883_v39 = vpop.f32.mrb[17].mxu0  ;;  %v3004_v37 = vld [vmem:[%s3757_s20 + $0x70] sm:$0xff]  }
 0x9a9   : > { %v1988_v40 = vpop.f32.mrb[18].mxu0  ;;  %v3006_v39 = vld [vmem:[%s3757_s20 + $0x78] sm:$0xff]  }
 0x9aa   : > { %v3611_v41 = vadd.f32 %v3050_v27, %v1986_v38  ;;  %v1989_v42 = vadd.f32 %v2550_v36, %v1988_v40  ;;  %v2884_v43 = vpop.f32.mrb[19].mxu0  ;;  %v3003_v36 = vld [vmem:[%s3757_s20 + $0x28] sm:$0xff]   ;;  %v3005_v38 = vld [vmem:[%s3757_s20 + $0x30] sm:$0xff]   ;;  %v3007_v40 = vld [vmem:[%s3757_s20 + $0x38] sm:$0xff]   ;;  %v2053_v27 = vlaneseq }
 0x9ab   : > { %2690 = vmatpush3.bf16.msra.mxu0 %v3003_v36 }
 0x9ac   : > { %v3614_v45 = vadd.f32 %v3051_v44, %v1989_v42  ;;  %1996 = vadd.xlane.f32.xlu0 %v3611_v41  ;;  %2691 = vmatprep.subr.bf16.mxu0 %v3004_v37  ;;  %v2054_v42 = vshrl.u32 %v2053_v27, 7  ;;  %v2051_v44 = vld [vmem:[%s3756_s19] sm:$0x3] }
 0x9ae   : > { %1998 = vadd.xlane.f32.xlu1 %v3614_v45  ;;  %v2055_v43 = vsub.s32 0, %v2054_v42  ;;  %v2059_v46 = vsub.s32 1, %v2054_v42 }
 0x9af   : > { %2692 = vmatpush3.bf16.msra.mxu0 %v3005_v38 }
 0x9b0   : > { %2693 = vmatprep.subr.bf16.mxu0 %v3006_v39  ;;  %v2056_v47 = vrot.slane %v2051_v44, %v2055_v43  ;;  %v2060_v48 = vrot.slane %v2051_v44, %v2059_v46 }
 0x9b3   : > { %2694 = vmatpush3.bf16.msra.mxu0 %v3007_v40 }
 0xa39   : > { %v1997_v50 = vpop.xlane.xlu0 %1996 }
 0xa3a   : > { %v2000_v51 = vmul.f32 0.0078125, %v1997_v50 }
 0xa3b   : > { %v1999_v24 = vpop.xlane.xlu1 %1998 }
 0xa3c   : > { %v2002_v32 = vsub.f32 %v3611_v41, %v2000_v51  ;;  %v2001_v52 = vmul.f32 0.0078125, %v1999_v24 }
 0xa3e   : > { %v2003_v53 = vsub.f32 %v3614_v45, %v2001_v52  ;;  %v2004_v54 = vmul.f32 %v2002_v32, %v2002_v32 }
 0xa40   : > { %2006 = vadd.xlane.f32.xlu0 %v2004_v54  ;;  %v2005_v55 = vmul.f32 %v2003_v53, %v2003_v53 }
 0xa44   : > { %2008 = vadd.xlane.f32.xlu0 %v2005_v55 }
 0xacd   : > { %v2007_v4 = vpop.xlane.xlu0 %2006 }
 0xace   : > { %v2010_v5 = vmul.f32 0.0078125, %v2007_v4 }
 0xad0   : > { %v2012_v6 = vadd.f32 1e-05, %v2010_v5 }
 0xad1   : > { %v2009_v7 = vpop.xlane.xlu0 %2008 }
 0xad2   : > { %3038 = vrsqrt.f32 %v2012_v6  ;;  %v2011_v8 = vmul.f32 0.0078125, %v2009_v7 }
 0xad4   : > { %v2013_v9 = vadd.f32 1e-05, %v2011_v8 }
 0xad6   : > { %3040 = vrsqrt.f32 %v2013_v9 }
 0xadc   : > { %v3039_v10 = vpop.eup %3038 }
 0xadd   : > { %v2016_v11 = vmul.f32 %v3039_v10, %v2002_v32 }
 0xadf   : > { %v2024_v16 = vmul.f32 %v2559_v12, %v2016_v11 }
 0xae0   : > { %v3041_v14 = vpop.eup %3040 }
 0xae1   : > { %v2017_v15 = vmul.f32 %v3041_v14, %v2003_v53  ;;  %v2032_v19 = vadd.f32 %v2560_v17, %v2024_v16 }
 0xae3   : > { %v2025_v18 = vmul.f32 %v2559_v12, %v2017_v15 }
 0xae5   : > { %v2033_v20 = vadd.f32 %v2560_v17, %v2025_v18 }
 0xae7   : > { %v2034_v13 = vpack.c.bf16 %v2033_v20, %v2032_v19 }
 0xae9   : > { %2176 = vmatmul.mubr.bf16.vlgmr.msra.gmra.mrb[28].mxu1 %v2034_v13 }
 0xbbc   : > { %v2177_v49 = vpop.f32.mrb[28].mxu1 }
 0xbbd   : > { %v2178_v50 = vadd.f32 %v2177_v49, %v2056_v47  ;;  %v2179_v51 = vpop.f32.mrb[29].mxu1 }
 0xbbe   : > { %v2180_v24 = vadd.f32 %v2179_v51, %v2060_v48  ;;  %v2181_v32 = vpop.f32.mrb[30].mxu1 }
 0xbbf   : > { %v2186_v52 = vmul.f32 %v2178_v50, %v2178_v50  ;;  %v2182_v53 = vadd.f32 %v2181_v32, %v2056_v47  ;;  %v2183_v54 = vpop.f32.mrb[31].mxu1 }
 0xbc0   : > { %v2187_v55 = vmul.f32 %v2180_v24, %v2180_v24  ;;  %v2184_v56 = vadd.f32 %v2183_v54, %v2060_v48 }
 0xbc1   : > { %v2190_v57 = vmul.f32 %v2186_v52, %v2178_v50  ;;  %v2188_v58 = vmul.f32 %v2182_v53, %v2182_v53 }
 0xbc2   : > { %v2191_v59 = vmul.f32 %v2187_v55, %v2180_v24  ;;  %v2189_v60 = vmul.f32 %v2184_v56, %v2184_v56 }
 0xbc3   : > { %v2194_v61 = vmul.f32 0.044715, %v2190_v57  ;;  %v2192_v62 = vmul.f32 %v2188_v58, %v2182_v53 }
 0xbc4   : > { %v2195_v28 = vmul.f32 0.044715, %v2191_v59  ;;  %v2193_v63 = vmul.f32 %v2189_v60, %v2184_v56 }
 0xbc5   : > { %v2198_v0 = vadd.f32 %v2194_v61, %v2178_v50  ;;  %v2196_v1 = vmul.f32 0.044715, %v2192_v62 }
 0xbc6   : > { %v2199_v2 = vadd.f32 %v2195_v28, %v2180_v24  ;;  %v2197_v3 = vmul.f32 0.044715, %v2193_v63 }
 0xbc7   : > { %v2202_v4 = vmul.f32 0.7978846, %v2198_v0  ;;  %v2200_v5 = vadd.f32 %v2196_v1, %v2182_v53 }
 0xbc8   : > { %v2203_v6 = vmul.f32 0.7978846, %v2199_v2  ;;  %v2201_v7 = vadd.f32 %v2197_v3, %v2184_v56 }
 0xbc9   : > { %3042 = vtanh.f32 %v2202_v4  ;;  %v2204_v8 = vmul.f32 0.7978846, %v2200_v5 }
 0xbca   : > { %3044 = vtanh.f32 %v2203_v6  ;;  %v2205_v9 = vmul.f32 0.7978846, %v2201_v7 }
 0xbcb   : > { %3046 = vtanh.f32 %v2204_v8 }
 0xbcc   : > { %3048 = vtanh.f32 %v2205_v9 }
 0xbd3   : > { %v3043_v10 = vpop.eup %3042 }
 0xbd4   : > { %v3045_v11 = vpop.eup %3044  ;;  %v2210_v12 = vadd.f32 1.0, %v3043_v10 }
 0xbd5   : > { %v3047_v14 = vpop.eup %3046  ;;  %v2211_v15 = vadd.f32 1.0, %v3045_v11 }
 0xbd6   : > { %v3049_v16 = vpop.eup %3048  ;;  %v2214_v17 = vmul.f32 0.5, %v2210_v12  ;;  %v2212_v18 = vadd.f32 1.0, %v3047_v14 }
 0xbd7   : > { %v2213_v19 = vadd.f32 1.0, %v3049_v16  ;;  %v2215_v20 = vmul.f32 0.5, %v2211_v15 }
 0xbd8   : > { %v2216_v13 = vmul.f32 0.5, %v2212_v18  ;;  %v2218_v22 = vmul.f32 %v2214_v17, %v2178_v50 }
 0xbd9   : > { %v2217_v21 = vmul.f32 0.5, %v2213_v19  ;;  %v2219_v25 = vmul.f32 %v2215_v20, %v2180_v24 }
 0xbda   : > { %v2220_v23 = vmul.f32 %v2216_v13, %v2182_v53 }
 0xbdb   : > { %v2221_v26 = vmul.f32 %v2217_v21, %v2184_v56 }
 0xbdc   : > { %v2222_v29 = vpack.c.bf16 %v2220_v23, %v2218_v22 }
 0xbdd   : > { %v2223_v30 = vpack.c.bf16 %v2221_v26, %v2219_v25 }
 0xbdf   : > { %2391 = vmatprep.mubr.bf16.mxu0 %v2223_v30 }
 0xbe0   : > { %2392 = vmatmul.mubr.bf16.vlgmr.msra.gmra.mrb[20].mxu0 %v2222_v29 }
 0xcb3   : > { %v2695_v31 = vpop.f32.mrb[20].mxu0 }
 0xcb4   : > { %v2696_v33 = vpop.f32.mrb[21].mxu0 }
 0xcb5   : > { %v2697_v35 = vadd.f32 %v2696_v33, %v2695_v31  ;;  %v2698_v36 = vpop.f32.mrb[22].mxu0 }
 0xcb6   : > { %v2699_v37 = vpop.f32.mrb[23].mxu0 }
 0xcb7   : > { %v2394_v38 = vadd.f32 %v2697_v35, %v2577_v34  ;;  %v2700_v39 = vadd.f32 %v2699_v37, %v2698_v36 }
 0xcb9   : > { %v2400_v40 = vadd.f32 %v2394_v38, %v3611_v41  ;;  %v2397_v27 = vadd.f32 %v2700_v39, %v2577_v34 }
 0xcbb   : > { %2402 = vst [vmem:[%s703_s4] sm:$0xff] %v2400_v40  ;;  %v2401_v42 = vadd.f32 %v2397_v27, %v3614_v45 }
 0xcbd   : > { %2403 = vst [vmem:[%s703_s4 + $0x8] sm:$0xff] %v2401_v42 }
 0xcbe PF: > { %s32_s3 = sadd.s32 1, %s3058_s3  }
 0xcbf   : > { %p29_p4 = scmp.ge.s32.totalorder %s32_s3, 4  }
 0xcc1   :  { %31 = sbr.rel (!%p29_p4) target bundleno = 8 (0x8), region = 141 }

// kernel: shunted_transformer_forward.7
= control target key start
LH: loop header
LB: loop body
LE: loop exit
PB: predicated region body
PF: predicated region fallthrough
CT: control target
= control target key end

     0   :  { %s570_s0 = inlined_call_operand.vmem [shape: f32[32,128], index: 0, kind: input, shape index: {}]   ;;  %s571_s1 = inlined_call_operand.vmem [shape: f32[2,32], index: 1, kind: input, shape index: {}]   ;;  %s572_s2 = inlined_call_operand.vmem [shape: f32[1,128], index: 2, kind: input, shape index: {}]   ;;  %s573_s3 = inlined_call_operand.vmem [shape: f32[1,128], index: 3, kind: input, shape index: {}]   ;;  %s574_s4 = inlined_call_operand.vmem [shape: f32[128,10], index: 4, kind: input, shape index: {}]   ;;  %s575_s5 = inlined_call_operand.vmem [shape: f32[1,10], index: 5, kind: input, shape index: {}]   ;;  %s576_s6 = inlined_call_operand.hbm [shape: f32[2,10], index: 6, kind: output, shape index: {}]  }
   0x1   :  { %v24_v0 = vld [vmem:[%s570_s0] sm:$0xff]  ;;  %v26_v1 = vld [vmem:[%s570_s0 + $0x10] sm:$0xff] }
   0x2   :  { %30 = vadd.xlane.f32.xlu0 %v24_v0  ;;  %34 = vadd.xlane.f32.xlu1 %v26_v1 }
   0x3   :  { %11 = vsyncpa [#allocation3], 0  ;;  %v25_v2 = vld [vmem:[%s570_s0 + $0x8] sm:$0xff]  ;;  %v27_v3 = vld [vmem:[%s570_s0 + $0x18] sm:$0xff]  ;;  %v417_v20 = vmov 0.0|0.0   ;;  %vm418_vm0 = vmmov 0  }
   0x4   :  { %351 = vmatprep.subr.bf16.mxu0 %v417_v20  ;;  %357 = vmatprep.subr.bf16.mxu1 %v417_v20  ;;  %v419_v21 = vmov 0.0   ;;  %v170_v22 = vld [vmem:[%s574_s4] sm:$0xff]  ;;  %v171_v23 = vld [vmem:[%s574_s4 + $0x8] sm:$0xff]  ;;  %v172_v24 = vld [vmem:[%s574_s4 + $0x10] sm:$0xff]  ;;  %vm96_vm1 = vcmask 261120   ;;  %s420_s16 = smov [#allocation2]  }
   0x5   :  { %313 = vmatprep.mubr.msk.f32.mxu0 %vm418_vm0, %v419_v21  ;;  %348 = vmatprep.mubr.msk.f32.mxu1 %vm418_vm0, %v419_v21  ;;  %v358_v25 = vpack.c.bf16 %v171_v23, %v170_v22  ;;  %v173_v26 = vld [vmem:[%s574_s4 + $0x18] sm:$0xff]  ;;  %v174_v28 = vld [vmem:[%s574_s4 + $0x20] sm:$0xff]  ;;  %v175_v29 = vld [vmem:[%s574_s4 + $0x28] sm:$0xff]  ;;  %s271_s17 = sshll.u32 %s420_s16, 4  ;;  %vm263_vm2 = vcmask 74752   ;;  %s272_s17 = int_to_ptr.vmem [resolvable:$true] %s271_s17 }
   0x6   :  { %32 = vadd.xlane.f32.xlu0 %v25_v2  ;;  %36 = vadd.xlane.f32.xlu1 %v27_v3  ;;  %v361_v27 = vpack.c.bf16 %v173_v26, %v172_v24  ;;  %v364_v30 = vpack.c.bf16 %v175_v29, %v174_v28  ;;  %v176_v31 = vld [vmem:[%s574_s4 + $0x30] sm:$0xff]  ;;  %v177_v32 = vld [vmem:[%s574_s4 + $0x38] sm:$0xff]  ;;  %v178_v34 = vld [vmem:[%s574_s4 + $0x40] sm:$0xff]  ;;  %s393_s18 = scalar_lea.vmem %s272_s17, 32  ;;  %p398_p1 = scmp.lt.s32.totalorder %s272_s17, %s272_s17 }
   0x7   :  { %359 = vmatpush3.bf16.msra.mxu1 %v358_v25  ;;  %v367_v33 = vpack.c.bf16 %v177_v32, %v176_v31  ;;  %v179_v35 = vld [vmem:[%s574_s4 + $0x48] sm:$0xff]  ;;  %v180_v37 = vld [vmem:[%s574_s4 + $0x50] sm:$0xff]  ;;  %v181_v38 = vld [vmem:[%s574_s4 + $0x58] sm:$0xff]  ;;  %p394_p0 = scmp.ne.s32.totalorder %s272_s17, %s393_s18  ;;  %p399_p2 = scmp.lt.s32.totalorder %s393_s18, %s393_s18 }
   0x8   :  { %360 = vmatprep.subr.bf16.mxu1 %v417_v20  ;;  %v370_v36 = vpack.c.bf16 %v179_v35, %v178_v34  ;;  %v373_v39 = vpack.c.bf16 %v181_v38, %v180_v37  ;;  %v182_v40 = vld [vmem:[%s574_s4 + $0x60] sm:$0xff]  ;;  %v183_v41 = vld [vmem:[%s574_s4 + $0x68] sm:$0xff]  ;;  %v184_v43 = vld [vmem:[%s574_s4 + $0x70] sm:$0xff] }
   0x9   :  { %v376_v42 = vpack.c.bf16 %v183_v41, %v182_v40  ;;  %v185_v44 = vld [vmem:[%s574_s4 + $0x78] sm:$0xff]  ;;  %v279_v60 = vld [vmem:[%s572_s2] ss:$0 sm:$0xff]  ;;  %p400_p3 = por %p399_p2, %p398_p1 }
   0xa   :  { %v379_v45 = vpack.c.bf16 %v185_v44, %v184_v43 }
   0xb   :  { %362 = vmatpush3.bf16.msra.mxu1 %v361_v27  ;;  %p401_p4 = pnand %p400_p3, %p394_p0 }
   0xc   :  { %363 = vmatprep.subr.bf16.mxu1 %v417_v20 }
   0xf   :  { %365 = vmatpush3.bf16.msra.mxu1 %v364_v30 }
  0x10   :  { %366 = vmatprep.subr.bf16.mxu1 %v417_v20 }
  0x13   :  { %368 = vmatpush3.bf16.msra.mxu1 %v367_v33 }
  0x14   :  { %369 = vmatprep.subr.bf16.mxu1 %v417_v20 }
  0x17   :  { %371 = vmatpush3.bf16.msra.mxu1 %v370_v36 }
  0x18   :  { %372 = vmatprep.subr.bf16.mxu1 %v417_v20 }
  0x1b   :  { %374 = vmatpush3.bf16.msra.mxu1 %v373_v39 }
  0x1c   :  { %375 = vmatprep.subr.bf16.mxu1 %v417_v20 }
  0x1f   :  { %377 = vmatpush3.bf16.msra.mxu1 %v376_v42 }
  0x20   :  { %378 = vmatprep.subr.bf16.mxu1 %v417_v20 }
  0x23   :  { %380 = vmatpush3.bf16.msra.mxu1 %v379_v45 }
  0x8f   :  { %v31_v4 = vpop.xlane.xlu0 %30  ;;  %v35_v5 = vpop.xlane.xlu1 %34 }
  0x90   :  { %v39_v6 = vmul.f32 0.0078125, %v31_v4  ;;  %v41_v7 = vmul.f32 0.0078125, %v35_v5 }
  0x92   :  { %v468_v8 = vsub.f32 %v24_v0, %v39_v6  ;;  %v470_v9 = vsub.f32 %v26_v1, %v41_v7  ;;  %v280_v1 = vld [vmem:[%s573_s3] ss:$0 sm:$0xff] }
  0x93   :  { %v33_v10 = vpop.xlane.xlu0 %32  ;;  %v37_v11 = vpop.xlane.xlu1 %36 }
  0x94   :  { %v40_v12 = vmul.f32 0.0078125, %v33_v10  ;;  %v47_v13 = vmul.f32 %v468_v8, %v468_v8  ;;  %v42_v14 = vmul.f32 0.0078125, %v37_v11  ;;  %v49_v17 = vmul.f32 %v470_v9, %v470_v9 }
  0x96   :  { %v474_v15 = vsub.f32 %v25_v2, %v40_v12  ;;  %51 = vadd.xlane.f32.xlu0 %v47_v13  ;;  %v476_v16 = vsub.f32 %v27_v3, %v42_v14 }
  0x98   :  { %v48_v18 = vmul.f32 %v474_v15, %v474_v15  ;;  %v50_v19 = vmul.f32 %v476_v16, %v476_v16 }
  0x9a   :  { %55 = vadd.xlane.f32.xlu0 %v49_v17  ;;  %53 = vadd.xlane.f32.xlu1 %v48_v18 }
  0x9e   :  { %57 = vadd.xlane.f32.xlu1 %v50_v19 }
 0x123   :  { %v52_v46 = vpop.xlane.xlu0 %51 }
 0x124   :  { %v59_v47 = vmul.f32 0.0078125, %v52_v46 }
 0x126   :  { %v63_v48 = vadd.f32 1e-05, %v59_v47 }
 0x127   :  { %v54_v49 = vpop.xlane.xlu1 %53  ;;  %v56_v50 = vpop.xlane.xlu0 %55 }
 0x128   :  { %385 = vrsqrt.f32 %v63_v48  ;;  %v60_v51 = vmul.f32 0.0078125, %v54_v49  ;;  %v61_v52 = vmul.f32 0.0078125, %v56_v50 }
 0x12a   :  { %v64_v53 = vadd.f32 1e-05, %v60_v51  ;;  %v65_v54 = vadd.f32 1e-05, %v61_v52 }
 0x12b   :  { %v58_v55 = vpop.xlane.xlu1 %57 }
 0x12c   :  { %387 = vrsqrt.f32 %v64_v53  ;;  %v62_v56 = vmul.f32 0.0078125, %v58_v55 }
 0x12d   :  { %389 = vrsqrt.f32 %v65_v54 }
 0x12e   :  { %v66_v57 = vadd.f32 1e-05, %v62_v56 }
 0x130   :  { %391 = vrsqrt.f32 %v66_v57 }
 0x132   :  { %v386_v58 = vpop.eup %385 }
 0x133   :  { %v71_v59 = vmul.f32 %v386_v58, %v468_v8 }
 0x135   :  { %v81_v0 = vmul.f32 %v279_v60, %v71_v59 }
 0x136   :  { %v388_v61 = vpop.eup %387 }
 0x137   :  { %v390_v62 = vpop.eup %389  ;;  %v72_v63 = vmul.f32 %v388_v61, %v474_v15  ;;  %v91_v5 = vadd.f32 %v280_v1, %v81_v0 }
 0x138   :  { %v73_v2 = vmul.f32 %v390_v62, %v470_v9  ;;  %v95_v9 = vld [vmem:[%s571_s1] sm:$0x3] }
 0x139   :  { %v82_v3 = vmul.f32 %v279_v60, %v72_v63 }
 0x13a   :  { %v392_v4 = vpop.eup %391  ;;  %v83_v8 = vmul.f32 %v279_v60, %v73_v2 }
 0x13b   :  { %v92_v6 = vadd.f32 %v280_v1, %v82_v3  ;;  %v74_v7 = vmul.f32 %v392_v4, %v476_v16  ;;  %v282_v16 = vld [vmem:[%s575_s5] ss:$0 sm:$0xff] }
 0x13c   :  { %v93_v12 = vadd.f32 %v280_v1, %v83_v8 }
 0x13d   :  { %v352_v10 = vpack.c.bf16 %v92_v6, %v91_v5  ;;  %v84_v11 = vmul.f32 %v279_v60, %v74_v7 }
 0x13f   :  { %353 = vmatpush3.bf16.msra.mxu0 %v352_v10  ;;  %v94_v13 = vadd.f32 %v280_v1, %v84_v11 }
 0x140   :  { %354 = vmatprep.subr.bf16.mxu0 %v417_v20 }
 0x141   :  { %v355_v14 = vpack.c.bf16 %v94_v13, %v93_v12 }
 0x143   :  { %356 = vmatpush3.bf16.msra.mxu0 %v355_v14 }
 0x146   :  { %314 = vmatmul.mubr.msk.f32.vlgmr.msra.gmra.mrb[0].mxu0 %vm96_vm1, %v95_v9 }
 0x219   :  { %v166_v15 = vpop.f32.mrb[0].mxu0 }
 0x21a   :  { %v315_v17 = vpop.f32.mrb[1].mxu0  ;;  %349 = vmatmul.mubr.f32.vlgmr.msra.gmra.mrb[0].mxu1 %v166_v15 }
 0x2ed   :  { %v259_v18 = vpop.f32.mrb[0].mxu1 }
 0x2ee   :  { %v260_v19 = vadd.f32 %v282_v16, %v259_v18  ;;  %v350_v20 = vpop.f32.mrb[1].mxu1 }
 0x2f0   :  { %264 = vst.msk [vmem:[#allocation2] sm:$0x3] %vm263_vm2, %v260_v19 }
 0x2f1   :  { %404 = shalt.err (!%p401_p4)
}
 0x2f2   :  { %s405_s20 = scalar_lea.hbm %s576_s6, 32 }
 0x2f3   :  { %p406_p5 = scmp.ne.s32.totalorder %s576_s6, %s405_s20  ;;  %p409_p6 = scmp.lt.u32.totalorder %s405_s20, %s576_s6 }
 0x2f5   :  { %p411_p7 = pnand %p409_p6, %p406_p5 }
 0x2f7   :  { %414 = shalt.err (!%p411_p7)
}
 0x2f8   :  { %274 = dma.vmem_to_hbm [thread:$0]  %s272_s17, 32, %s576_s6, [#allocation3]  }
 0x2f9   :  { %415 = dma.done.wait [#allocation3], 32  }
 0x2fa   :  { %416 = vsyncadd [#allocation3], 4294967264 }
 0x2fb   :  { %278 = vsyncpa [#allocation3], 1 }

// kernel: shunted_transformer_forward.6
= control target key start
LH: loop header
LB: loop body
LE: loop exit
PB: predicated region body
PF: predicated region fallthrough
CT: control target
= control target key end

     0   :  { %s3844_s0 = inlined_call_operand.vmem [shape: f32[2,16,128], index: 0, kind: input, shape index: {}]   ;;  %s3845_s1 = inlined_call_operand.vmem [shape: f32[2,4,512], index: 1, kind: input, shape index: {}]   ;;  %s3846_s2 = inlined_call_operand.vmem [shape: f32[1,128], index: 2, kind: input, shape index: {}]   ;;  %s3847_s3 = inlined_call_operand.vmem [shape: f32[1,128], index: 3, kind: input, shape index: {}]   ;;  %s3848_s4 = inlined_call_operand.vmem [shape: bf16[128,128], index: 4, kind: input, shape index: {}]   ;;  %s3849_s5 = inlined_call_operand.vmem [shape: f32[1,128], index: 5, kind: input, shape index: {}]   ;;  %s3850_s6 = inlined_call_operand.vmem [shape: bf16[512,128], index: 6, kind: input, shape index: {}]   ;;  %s3851_s7 = inlined_call_operand.vmem [shape: f32[1,128], index: 7, kind: input, shape index: {}]   ;;  %s3852_s8 = inlined_call_operand.vmem [shape: f32[1,128], index: 8, kind: input, shape index: {}]   ;;  %s3853_s9 = inlined_call_operand.vmem [shape: f32[1,128], index: 9, kind: input, shape index: {}]   ;;  %s3854_s10 = inlined_call_operand.vmem [shape: bf16[128,128], index: 10, kind: input, shape index: {}]   ;;  %s3855_s11 = inlined_call_operand.vmem [shape: f32[1,128], index: 11, kind: input, shape index: {}]   ;;  %s3856_s12 = inlined_call_operand.vmem [shape: bf16[128,128], index: 12, kind: input, shape index: {}]   ;;  %s3857_s13 = inlined_call_operand.vmem [shape: f32[1,128], index: 13, kind: input, shape index: {}]   ;;  %s3858_s14 = inlined_call_operand.vmem [shape: bf16[128,128], index: 14, kind: input, shape index: {}]   ;;  %s3859_s15 = inlined_call_operand.vmem [shape: f32[1,128], index: 15, kind: input, shape index: {}]   ;;  %s3860_s16 = inlined_call_operand.vmem [shape: f32[1,128], index: 16, kind: input, shape index: {}]   ;;  %s3861_s17 = inlined_call_operand.vmem [shape: f32[1,128], index: 17, kind: input, shape index: {}]   ;;  %s3862_s18 = inlined_call_operand.vmem [shape: bf16[128,256], index: 18, kind: input, shape index: {}]   ;;  %s3863_s19 = inlined_call_operand.vmem [shape: f32[1,256], index: 19, kind: input, shape index: {}]   ;;  %s3864_s20 = inlined_call_operand.vmem [shape: bf16[256,128], index: 20, kind: input, shape index: {}]   ;;  %s3865_s21 = inlined_call_operand.hbm [shape: f32[1,128], index: 21, kind: input, shape index: {}]   ;;  %s3866_s22 = inlined_call_operand.vmem [shape: f32[2,16,128], index: 22, kind: output, shape index: {}]  }
   0x1   :  { %3871 = sst [smem:[#allocation5_spill]] %s3844_s0 }
   0x2   :  { %3872 = sst [smem:[#allocation6_spill]] %s3845_s1 }
   0x3   :  { %3873 = sst [smem:[#allocation7_spill]] %s3846_s2 }
   0x4   :  { %3874 = sst [smem:[#allocation8_spill]] %s3847_s3 }
   0x5   :  { %3875 = sst [smem:[#allocation9_spill]] %s3848_s4 }
   0x6   :  { %3876 = sst [smem:[#allocation10_spill]] %s3849_s5 }
   0x7   :  { %3877 = sst [smem:[#allocation11_spill]] %s3850_s6 }
   0x8   :  { %27 = vsyncpa [#allocation3], 0  ;;  %s3250_s3 = smov 0  }
   0x9 LB: > { %s3256_s28 = sadd.s32 4294967295, %s3128_s3   ;;  %p2498_p0 = scmp.ge.s32.totalorder %s3128_s3, 1  ;;  %s3128_s3 = sphi %s3250_s3, %s33_s3  }
   0xa   : > { %p536_p1 = scmp.lt.s32.totalorder %s3128_s3, 3  ;;  %p3869_p3 = scmp.eq.s32.totalorder %s3256_s28, 0 }
   0xb   : > { %s3130_s30 = smov [#allocation2]   ;;  %s3090_s5 = scalar_lea.hbm %s3865_s21, 16 }
   0xc   : > { %p3260_p2 = pnand %p2498_p0, %p536_p1  ;;  %s606_s4 = sshll.u32 %s3130_s30, 4  ;;  %s607_s4 = int_to_ptr.vmem [resolvable:$true] %s606_s4 }
   0xd   : > { %p3091_p6 = scmp.ne.s32.totalorder %s3865_s21, %s3090_s5  ;;  %p3097_p10 = scmp.lt.u32.totalorder %s3090_s5, %s3865_s21 }
   0xe   : > { %s3878_s29 = scalar_select %p3260_p2, 1, 0 }
   0xf   : > { %p2916_p4 = pneg %p3260_p2 }
  0x11   : > { %p3269_p5 = pnand %p3869_p3, %p2916_p4 }
  0x13   : > { %p3092_p7 = pneg %p3269_p5 }
  0x15   : > { %p3093_p8 = pnand %p3092_p7, %p3091_p6 }
  0x17   : > { %p3094_p9 = pneg %p3093_p8 }
  0x19   : > { %p3099_p11 = pnand %p3097_p10, %p3094_p9 }
  0x1b   : > { %3102 = shalt.err (!%p3099_p11)
}
  0x1c   : > { %s3103_s2 = scalar_lea.vmem %s607_s4, 16  ;;  %s3110_s27 = scalar_lea.vmem %s607_s4, 32 }
  0x1d   : > { %p3104_p12 = scmp.ne.s32.totalorder %s607_s4, %s3103_s2  ;;  %p3111_p1 = scmp.lt.s32.totalorder %s607_s4, %s607_s4 }
  0x1e   : > { %p3112_p4 = scmp.lt.s32.totalorder %s3110_s27, %s3103_s2 }
  0x1f   : > { %p3106_p13 = pnand %p3104_p12, %p3092_p7 }
  0x20   : > { %p3113_p3 = por %p3112_p4, %p3111_p1 }
  0x21   : > { %p3107_p0 = pneg %p3106_p13 }
  0x23   : > { %p3114_p2 = pnand %p3113_p3, %p3107_p0 }
  0x25   : > { %3117 = shalt.err (!%p3114_p2)
}
  0x26   : > { %2919 = dma.hbm_to_vmem [thread:$0]  (!%p3269_p5), %s3865_s21, 16, %s607_s4, [#allocation3]  }
  0x27   : > { %p3880_p6 = scmp.ne.s32.totalorder %s3878_s29, 0 }
  0x28   : > { %p3881_p8 = scmp.eq.s32.totalorder (!%p3880_p6), %s3256_s28, 0 }
  0x29   : > { %635 = sbr.rel (%p3880_p6) target bundleno = 3295 (0xcdf), region = 108 }
  0x30   : > { %3123 = dma.done.wait (%p3881_p8), [#allocation3], 16   ;;  %p3882_p7 = pmov %p3881_p8 }
  0x31   : > { %p702_p9 = scmp.lt.s32.totalorder %s3256_s28, 1  ;;  %s3883_s24 = sld [smem:[#allocation5_spill]]  ;;  %vm988_vm0 = vcmask 1043456   ;;  %v2943_v11 = vld [vmem:[%s3856_s12] sm:$0xff]   ;;  %v3131_v13 = vmov 0.0   ;;  %v2945_v14 = vld [vmem:[%s3856_s12 + $0x8] sm:$0xff]  }
  0x32   : > { %3125 = vsyncadd (%p3882_p7), [#allocation3], 4294967280  ;;  %s3884_s25 = sld [smem:[#allocation6_spill]]  ;;  %s3885_s27 = sld [smem:[#allocation9_spill]]  ;;  %2728 = vmatprep.subr.bf16.mxu0 %v3131_v13  ;;  %2748 = vmatprep.subr.bf16.mxu1 %v3131_v13  ;;  %v2947_v46 = vld [vmem:[%s3856_s12 + $0x10] sm:$0xff]   ;;  %v2949_v48 = vld [vmem:[%s3856_s12 + $0x18] sm:$0xff]  }
  0x33   : > { %s3891_s28 = smov (!%p702_p9, %s3256_s28), 1  ;;  %2749 = vmatpush3.bf16.msra.mxu1 %v2943_v11  ;;  %v2951_v50 = vld [vmem:[%s3856_s12 + $0x20] sm:$0xff]   ;;  %v2953_v52 = vld [vmem:[%s3856_s12 + $0x28] sm:$0xff]   ;;  %v2955_v54 = vld [vmem:[%s3856_s12 + $0x30] sm:$0xff]   ;;  %vm3132_vm1 = vmmov 0   ;;  %s3886_s2 = sld [smem:[#allocation7_spill]] }
  0x34   : > { %s3297_s1 = sshll.u32 %s3891_s28, 4  ;;  %2750 = vmatprep.subr.bf16.mxu1 %v3131_v13  ;;  %2744 = vmatprep.mubr.msk.bf16.mxu0 %vm3132_vm1, %v3131_v13  ;;  %v2957_v56 = vld [vmem:[%s3856_s12 + $0x38] sm:$0xff]   ;;  %s3887_s0 = sld [smem:[#allocation8_spill]]  ;;  %vm1632_vm2 = vcmask 523264   ;;  %vm1682_vm3 = vcmask 31744   ;;  %vm1708_vm4 = vcmask 1041408  }
  0x35   : > { %2764 = vmatprep.mubr.msk.bf16.mxu1 %vm3132_vm1, %v3131_v13  ;;  %s3888_s29 = sld [smem:[#allocation11_spill]]  ;;  %vm1810_vm5 = vcmask 130048  }
  0x37   : > { %s3303_s4 = scalar_lea.vmem %s3883_s24, %s3297_s1  ;;  %2751 = vmatpush3.bf16.msra.mxu1 %v2945_v14 }
  0x38   : > { %s711_s26 = scalar_lea.vmem %s3884_s25, %s3297_s1  ;;  %v718_v0 = vld [vmem:[%s3303_s4] sm:$0xff]  ;;  %v719_v2 = vld [vmem:[%s3303_s4 + $0x8] sm:$0xff]  ;;  %2752 = vmatprep.subr.bf16.mxu1 %v3131_v13  ;;  %v2946_v45 = vld [vmem:[%s3885_s27 + $0x10] sm:$0xff]   ;;  %s3133_s25 = smov 64  }
  0x39   : > { %v986_v1 = vld [vmem:[%s711_s26] sm:$0xff]  ;;  %722 = vadd.xlane.f32.xlu0 %v718_v0  ;;  %v987_v5 = vld [vmem:[%s711_s26 + $0x8] sm:$0xff]  ;;  %v2948_v47 = vld [vmem:[%s3885_s27 + $0x18] sm:$0xff]  }
  0x3a   : > { %v1022_v3 = vcombine.high %v986_v1, %v986_v1  ;;  %v989_v4 = vsel %vm988_vm0, %v986_v1, 0.0  ;;  %v1234_v6 = vsel %vm988_vm0, %v987_v5, 0.0  ;;  %v1356_v7 = vcombine.high %v987_v5, %v987_v5  ;;  %v2942_v10 = vld [vmem:[%s3885_s27] sm:$0xff]   ;;  %v2944_v12 = vld [vmem:[%s3885_s27 + $0x8] sm:$0xff]   ;;  %v2954_v53 = vld [vmem:[%s3885_s27 + $0x30] sm:$0xff]  }
  0x3b   : > { %2729 = vmatpush3.bf16.msra.mxu0 %v2942_v10  ;;  %v1028_v17 = vrot.slane %v986_v1, 4  ;;  %v1362_v33 = vrot.slane %v987_v5, 4  ;;  %2753 = vmatpush3.bf16.msra.mxu1 %v2947_v46  ;;  %v2950_v49 = vld [vmem:[%s3885_s27 + $0x20] sm:$0xff]   ;;  %v2952_v51 = vld [vmem:[%s3885_s27 + $0x28] sm:$0xff]   ;;  %v2956_v55 = vld [vmem:[%s3885_s27 + $0x38] sm:$0xff]  }
  0x3c   : > { %v1024_v8 = vsel %vm988_vm0, %v1022_v3, 0.0  ;;  %v1358_v9 = vsel %vm988_vm0, %v1356_v7, 0.0  ;;  %2730 = vmatprep.subr.bf16.mxu0 %v3131_v13  ;;  %2754 = vmatprep.subr.bf16.mxu1 %v3131_v13  ;;  %v3424_v14 = vld [vmem:[%s3887_s0] ss:$0 sm:$0xff]  ;;  %v2969_v46 = vld [vmem:[%s3888_s29 + $0x28] sm:$0xff]  }
  0x3d   : > { %1025 = vadd.xlane.f32.xlu1 %v1024_v8  ;;  %724 = vadd.xlane.f32.xlu0 %v719_v2 }
  0x3f   : > { %2731 = vmatpush3.bf16.msra.mxu0 %v2944_v12  ;;  %2755 = vmatpush3.bf16.msra.mxu1 %v2949_v48 }
  0x40   : > { %2732 = vmatprep.subr.bf16.mxu0 %v3131_v13  ;;  %2756 = vmatprep.subr.bf16.mxu1 %v3131_v13 }
  0x41   : > { %990 = vadd.xlane.f32.xlu1 %v989_v4  ;;  %1235 = vadd.xlane.f32.xlu0 %v1234_v6 }
  0x43   : > { %2733 = vmatpush3.bf16.msra.mxu0 %v2946_v45  ;;  %2757 = vmatpush3.bf16.msra.mxu1 %v2951_v50  ;;  %v2968_v45 = vld [vmem:[%s3888_s29 + $0x68] sm:$0xff]   ;;  %v2971_v50 = vld [vmem:[%s3888_s29 + $0x30] sm:$0xff]  }
  0x44   : > { %2734 = vmatprep.subr.bf16.mxu0 %v3131_v13  ;;  %2758 = vmatprep.subr.bf16.mxu1 %v3131_v13 }
  0x45   : > { %1359 = vadd.xlane.f32.xlu1 %v1358_v9  ;;  %v3417_v9 = vld [vmem:[%s3886_s2] ss:$0 sm:$0xff]  ;;  %s3889_s2 = sld [smem:[#allocation10_spill]] }
  0x47   : > { %2735 = vmatpush3.bf16.msra.mxu0 %v2948_v47  ;;  %2759 = vmatpush3.bf16.msra.mxu1 %v2953_v52  ;;  %v2973_v52 = vld [vmem:[%s3888_s29 + $0x38] sm:$0xff]  }
  0x48   : > { %2736 = vmatprep.subr.bf16.mxu0 %v3131_v13  ;;  %2760 = vmatprep.subr.bf16.mxu1 %v3131_v13 }
  0x4b   : > { %2737 = vmatpush3.bf16.msra.mxu0 %v2950_v49  ;;  %2761 = vmatpush3.bf16.msra.mxu1 %v2955_v54  ;;  %v2970_v49 = vld [vmem:[%s3888_s29 + $0x70] sm:$0xff]  }
  0x4c   : > { %2738 = vmatprep.subr.bf16.mxu0 %v3131_v13  ;;  %2762 = vmatprep.subr.bf16.mxu1 %v3131_v13 }
  0x4f   : > { %2739 = vmatpush3.bf16.msra.mxu0 %v2952_v51  ;;  %2763 = vmatpush3.bf16.msra.mxu1 %v2957_v56  ;;  %v2975_v56 = vld [vmem:[%s3888_s29 + $0xc0] sm:$0xff]  }
  0x50   : > { %2740 = vmatprep.subr.bf16.mxu0 %v3131_v13  ;;  %2788 = vmatprep.subr.bf16.mxu1 %v3131_v13 }
  0x53   : > { %2741 = vmatpush3.bf16.msra.mxu0 %v2954_v53 }
  0x54   : > { %2742 = vmatprep.subr.bf16.mxu0 %v3131_v13 }
  0x57   : > { %2743 = vmatpush3.bf16.msra.mxu0 %v2956_v55  ;;  %v2974_v55 = vld [vmem:[%s3888_s29 + $0x80] sm:$0xff]  }
  0x58   : > { %2768 = vmatprep.subr.bf16.mxu0 %v3131_v13 }
  0xc6   : > { %v723_v15 = vpop.xlane.xlu0 %722 }
  0xc7   : > { %v727_v16 = vmul.f32 0.0078125, %v723_v15 }
  0xc9   : > { %v3333_v18 = vsub.f32 %v718_v0, %v727_v16 }
  0xca   : > { %v1026_v19 = vpop.xlane.xlu1 %1025  ;;  %v725_v21 = vpop.xlane.xlu0 %724 }
  0xcb   : > { %v1027_v20 = vmul.f32 0.0078125, %v1026_v19  ;;  %v728_v22 = vmul.f32 0.0078125, %v725_v21  ;;  %v731_v23 = vmul.f32 %v3333_v18, %v3333_v18  ;;  %v2958_v21 = vld [vmem:[%s3888_s29 + $0x40] sm:$0xff]  }
  0xcd   : > { %v3337_v24 = vsub.f32 %v1028_v17, %v1027_v20  ;;  %v3339_v25 = vsub.f32 %v719_v2, %v728_v22  ;;  %733 = vadd.xlane.f32.xlu0 %v731_v23  ;;  %v2959_v22 = vld [vmem:[%s3888_s29] sm:$0xff]  }
  0xce   : > { %v991_v26 = vpop.xlane.xlu1 %990  ;;  %v1236_v28 = vpop.xlane.xlu0 %1235 }
  0xcf   : > { %v992_v27 = vmul.f32 0.0078125, %v991_v26  ;;  %v1031_v29 = vmul.f32 %v3337_v24, %v3337_v24  ;;  %v1237_v30 = vmul.f32 0.0078125, %v1236_v28  ;;  %v732_v31 = vmul.f32 %v3339_v25, %v3339_v25 }
  0xd1   : > { %v3345_v32 = vsub.f32 %v986_v1, %v992_v27  ;;  %v1032_v34 = vsel %vm988_vm0, %v1031_v29, 0.0  ;;  %v3348_v35 = vsub.f32 %v987_v5, %v1237_v30  ;;  %735 = vadd.xlane.f32.xlu1 %v732_v31  ;;  %v2960_v31 = vld [vmem:[%s3888_s29 + $0x48] sm:$0xff]  }
  0xd2   : > { %v1360_v36 = vpop.xlane.xlu1 %1359  ;;  %1033 = vadd.xlane.f32.xlu0 %v1032_v34 }
  0xd3   : > { %v1361_v37 = vmul.f32 0.0078125, %v1360_v36  ;;  %v994_v38 = vmul.f32 %v3345_v32, %v3345_v32  ;;  %v1239_v39 = vmul.f32 %v3348_v35, %v3348_v35 }
  0xd5   : > { %v3354_v40 = vsub.f32 %v1362_v33, %v1361_v37  ;;  %v995_v41 = vsel %vm988_vm0, %v994_v38, 0.0  ;;  %v1240_v42 = vsel %vm988_vm0, %v1239_v39, 0.0  ;;  %v2961_v33 = vld [vmem:[%s3888_s29 + $0x8] sm:$0xff]   ;;  %v2962_v37 = vld [vmem:[%s3888_s29 + $0x50] sm:$0xff]   ;;  %v2964_v39 = vld [vmem:[%s3888_s29 + $0x58] sm:$0xff]  }
  0xd6   : > { %996 = vadd.xlane.f32.xlu1 %v995_v41  ;;  %1241 = vadd.xlane.f32.xlu0 %v1240_v42  ;;  %v2963_v38 = vld [vmem:[%s3888_s29 + $0x10] sm:$0xff]   ;;  %v2966_v41 = vld [vmem:[%s3888_s29 + $0x60] sm:$0xff]  }
  0xd7   : > { %v1365_v43 = vmul.f32 %v3354_v40, %v3354_v40  ;;  %v2967_v42 = vld [vmem:[%s3888_s29 + $0x20] sm:$0xff]  }
  0xd9   : > { %v1366_v44 = vsel %vm988_vm0, %v1365_v43, 0.0 }
  0xda   : > { %1367 = vadd.xlane.f32.xlu1 %v1366_v44 }
 0x15a   : > { %v734_v57 = vpop.xlane.xlu0 %733 }
 0x15b   : > { %v737_v58 = vmul.f32 0.0078125, %v734_v57 }
 0x15d   : > { %v739_v59 = vadd.f32 1e-05, %v737_v58 }
 0x15e   : > { %v736_v60 = vpop.xlane.xlu1 %735 }
 0x15f   : > { %v1034_v61 = vpop.xlane.xlu0 %1033  ;;  %3046 = vrsqrt.f32 %v739_v59  ;;  %v738_v62 = vmul.f32 0.0078125, %v736_v60  ;;  %v2976_v59 = vld [vmem:[%s3888_s29 + $0x88] sm:$0xff]  }
 0x160   : > { %v1035_v17 = vmul.f32 0.0078125, %v1034_v61  ;;  %v2977_v60 = vld [vmem:[%s3888_s29 + $0xc8] sm:$0xff]   ;;  %v2978_v61 = vld [vmem:[%s3888_s29 + $0x90] sm:$0xff]  }
 0x161   : > { %v740_v63 = vadd.f32 1e-05, %v738_v62  ;;  %v2979_v62 = vld [vmem:[%s3888_s29 + $0xd0] sm:$0xff]  }
 0x162   : > { %v1036_v28 = vadd.f32 1e-05, %v1035_v17 }
 0x163   : > { %v997_v0 = vpop.xlane.xlu1 %996  ;;  %3048 = vrsqrt.f32 %v740_v63  ;;  %v1242_v1 = vpop.xlane.xlu0 %1241  ;;  %v2980_v63 = vld [vmem:[%s3888_s29 + $0x98] sm:$0xff]  }
 0x164   : > { %v1243_v2 = vmul.f32 0.0078125, %v1242_v1  ;;  %v998_v20 = vmul.f32 0.0078125, %v997_v0  ;;  %v2981_v0 = vld [vmem:[%s3888_s29 + $0xd8] sm:$0xff]   ;;  %v2982_v1 = vld [vmem:[%s3888_s29 + $0xa0] sm:$0xff]  }
 0x166   : > { %v1244_v3 = vadd.f32 1e-05, %v1243_v2  ;;  %v999_v30 = vadd.f32 1e-05, %v998_v20  ;;  %v2983_v2 = vld [vmem:[%s3888_s29 + $0xe0] sm:$0xff]  }
 0x167   : > { %v1368_v4 = vpop.xlane.xlu1 %1367 }
 0x168   : > { %v1369_v5 = vmul.f32 0.0078125, %v1368_v4  ;;  %3050 = vrsqrt.f32 %v1244_v3  ;;  %v2984_v3 = vld [vmem:[%s3888_s29 + $0xa8] sm:$0xff]  }
 0x169   : > { %v3047_v6 = vpop.eup %3046  ;;  %v2985_v4 = vld [vmem:[%s3888_s29 + $0xe8] sm:$0xff]  }
 0x16a   : > { %v1370_v7 = vadd.f32 1e-05, %v1369_v5  ;;  %v743_v8 = vmul.f32 %v3047_v6, %v3333_v18  ;;  %v2986_v5 = vld [vmem:[%s3888_s29 + $0xb0] sm:$0xff]  }
 0x16b   : > { %v2987_v6 = vld [vmem:[%s3888_s29 + $0xf0] sm:$0xff]  }
 0x16c   : > { %3052 = vrsqrt.f32 %v1370_v7  ;;  %v751_v12 = vmul.f32 %v3417_v9, %v743_v8  ;;  %v2988_v7 = vld [vmem:[%s3888_s29 + $0xb8] sm:$0xff]  }
 0x16d   : > { %v3049_v10 = vpop.eup %3048  ;;  %3054 = vrsqrt.f32 %v1036_v28  ;;  %v2989_v8 = vld [vmem:[%s3888_s29 + $0xf8] sm:$0xff]  }
 0x16e   : > { %v744_v11 = vmul.f32 %v3049_v10, %v3339_v25  ;;  %v759_v18 = vadd.f32 %v3424_v14, %v751_v12  ;;  %3056 = vrsqrt.f32 %v999_v30 }
 0x170   : > { %v752_v15 = vmul.f32 %v3417_v9, %v744_v11  ;;  %v2511_v11 = vld [vmem:[%s3889_s2] ss:$0 sm:$0xff] }
 0x172   : > { %v3051_v16 = vpop.eup %3050  ;;  %v760_v19 = vadd.f32 %v3424_v14, %v752_v15 }
 0x173   : > { %v1246_v23 = vmul.f32 %v3051_v16, %v3348_v35 }
 0x174   : > { %v761_v25 = vpack.c.bf16 %v760_v19, %v759_v18 }
 0x175   : > { %v1247_v27 = vmul.f32 %v3417_v9, %v1246_v23 }
 0x176   : > { %v3053_v26 = vpop.eup %3052  ;;  %2745 = vmatmul.mubr.bf16.vlgmr.msra.gmra.mrb[0].mxu0 %v761_v25  ;;  %2765 = vmatmul.mubr.bf16.vlgmr.msra.gmra.mrb[0].mxu1 %v761_v25 }
 0x177   : > { %v1372_v29 = vmul.f32 %v3053_v26, %v3354_v40  ;;  %2769 = vmatpush3.bf16.msra.mxu0 %v2958_v21  ;;  %2789 = vmatpush3.bf16.msra.mxu1 %v2959_v22  ;;  %v3445_v34 = vadd.f32 %v3424_v14, %v1247_v27  ;;  %v2965_v40 = vld [vmem:[%s3888_s29 + $0x18] sm:$0xff]   ;;  %v3055_v43 = vpop.eup %3054 }
 0x178   : > { %2770 = vmatprep.subr.bf16.mxu0 %v3131_v13  ;;  %2790 = vmatprep.subr.bf16.mxu1 %v3131_v13  ;;  %v3057_v44 = vpop.eup %3056  ;;  %v1038_v47 = vmul.f32 %v3055_v43, %v3337_v24 }
 0x179   : > { %v1373_v35 = vmul.f32 %v3417_v9, %v1372_v29  ;;  %2784 = vmatprep.mubr.msk.bf16.mxu0 %vm3132_vm1, %v3131_v13  ;;  %2804 = vmatprep.mubr.msk.bf16.mxu1 %vm3132_vm1, %v3131_v13  ;;  %v1001_v48 = vmul.f32 %v3057_v44, %v3345_v32  ;;  %v2972_v32 = vld [vmem:[%s3888_s29 + $0x78] sm:$0xff]  }
 0x17a   : > { %v1039_v51 = vmul.f32 %v3417_v9, %v1038_v47 }
 0x17b   : > { %v3455_v36 = vadd.f32 %v3424_v14, %v1373_v35  ;;  %2771 = vmatpush3.bf16.msra.mxu0 %v2960_v31  ;;  %2791 = vmatpush3.bf16.msra.mxu1 %v2961_v33  ;;  %v1002_v24 = vmul.f32 %v3417_v9, %v1001_v48  ;;  %v1249_v9 = vpack.c.bf16 %v3445_v34, %v3445_v34 }
 0x17c   : > { %2772 = vmatprep.subr.bf16.mxu0 %v3131_v13  ;;  %2792 = vmatprep.subr.bf16.mxu1 %v3131_v13  ;;  %v1040_v53 = vadd.f32 %v3424_v14, %v1039_v51 }
 0x17d   : > { %v1003_v54 = vadd.f32 %v3424_v14, %v1002_v24  ;;  %v1375_v10 = vpack.c.bf16 %v3455_v36, %v3455_v36  ;;  %v2520_v14 = vld [vmem:[%s3857_s13] ss:$0 sm:$0xff] }
 0x17e   : > { %v1041_v57 = vpack.c.bf16 %v1040_v53, %v1040_v53  ;;  %v2990_v24 = vld [vmem:[%s3854_s10] sm:$0xff]  }
 0x17f   : > { %2773 = vmatpush3.bf16.msra.mxu0 %v2962_v37  ;;  %2793 = vmatpush3.bf16.msra.mxu1 %v2963_v38  ;;  %v1004_v58 = vpack.c.bf16 %v1003_v54, %v1003_v54 }
 0x180   : > { %2774 = vmatprep.subr.bf16.mxu0 %v3131_v13  ;;  %2794 = vmatprep.subr.bf16.mxu1 %v3131_v13 }
 0x183   : > { %2775 = vmatpush3.bf16.msra.mxu0 %v2964_v39  ;;  %2795 = vmatpush3.bf16.msra.mxu1 %v2965_v40 }
 0x184   : > { %2776 = vmatprep.subr.bf16.mxu0 %v3131_v13  ;;  %2796 = vmatprep.subr.bf16.mxu1 %v3131_v13 }
 0x187   : > { %2777 = vmatpush3.bf16.msra.mxu0 %v2966_v41  ;;  %2797 = vmatpush3.bf16.msra.mxu1 %v2967_v42 }
 0x188   : > { %2778 = vmatprep.subr.bf16.mxu0 %v3131_v13  ;;  %2798 = vmatprep.subr.bf16.mxu1 %v3131_v13 }
 0x18b   : > { %2779 = vmatpush3.bf16.msra.mxu0 %v2968_v45  ;;  %2799 = vmatpush3.bf16.msra.mxu1 %v2969_v46  ;;  %v2561_v46 = vld [vmem:[%s3851_s7] ss:$0 sm:$0xff] }
 0x18c   : > { %2780 = vmatprep.subr.bf16.mxu0 %v3131_v13  ;;  %2800 = vmatprep.subr.bf16.mxu1 %v3131_v13 }
 0x18f   : > { %2781 = vmatpush3.bf16.msra.mxu0 %v2970_v49  ;;  %2801 = vmatpush3.bf16.msra.mxu1 %v2971_v50 }
 0x190   : > { %2782 = vmatprep.subr.bf16.mxu0 %v3131_v13  ;;  %2802 = vmatprep.subr.bf16.mxu1 %v3131_v13 }
 0x193   : > { %2783 = vmatpush3.bf16.msra.mxu0 %v2972_v32  ;;  %2803 = vmatpush3.bf16.msra.mxu1 %v2973_v52  ;;  %v2991_v32 = vld [vmem:[%s3854_s10 + $0x8] sm:$0xff]  }
 0x194   : > { %2808 = vmatprep.subr.bf16.mxu0 %v3131_v13  ;;  %2828 = vmatprep.subr.bf16.mxu1 %v3131_v13 }
 0x196   : > { %2785 = vmatmul.mubr.bf16.vlgmr.msra.gmra.mrb[4].mxu0 %v1041_v57  ;;  %2805 = vmatmul.mubr.bf16.vlgmr.msra.gmra.mrb[4].mxu1 %v1004_v58  ;;  %v2992_v57 = vld [vmem:[%s3854_s10 + $0x10] sm:$0xff]   ;;  %v2993_v58 = vld [vmem:[%s3854_s10 + $0x18] sm:$0xff]  }
 0x197   : > { %2809 = vmatpush3.bf16.msra.mxu0 %v2974_v55  ;;  %2829 = vmatpush3.bf16.msra.mxu1 %v2975_v56 }
 0x198   : > { %2810 = vmatprep.subr.bf16.mxu0 %v3131_v13  ;;  %2830 = vmatprep.subr.bf16.mxu1 %v3131_v13 }
 0x199   : > { %2824 = vmatprep.mubr.msk.bf16.mxu0 %vm3132_vm1, %v3131_v13  ;;  %2844 = vmatprep.mubr.msk.bf16.mxu1 %vm3132_vm1, %v3131_v13 }
 0x19b   : > { %2811 = vmatpush3.bf16.msra.mxu0 %v2976_v59  ;;  %2831 = vmatpush3.bf16.msra.mxu1 %v2977_v60  ;;  %v2994_v59 = vld [vmem:[%s3854_s10 + $0x20] sm:$0xff]   ;;  %v2995_v60 = vld [vmem:[%s3854_s10 + $0x28] sm:$0xff]  }
 0x19c   : > { %2812 = vmatprep.subr.bf16.mxu0 %v3131_v13  ;;  %2832 = vmatprep.subr.bf16.mxu1 %v3131_v13 }
 0x19f   : > { %2813 = vmatpush3.bf16.msra.mxu0 %v2978_v61  ;;  %2833 = vmatpush3.bf16.msra.mxu1 %v2979_v62  ;;  %v2996_v61 = vld [vmem:[%s3854_s10 + $0x30] sm:$0xff]   ;;  %v2997_v62 = vld [vmem:[%s3854_s10 + $0x38] sm:$0xff]  }
 0x1a0   : > { %2814 = vmatprep.subr.bf16.mxu0 %v3131_v13  ;;  %2834 = vmatprep.subr.bf16.mxu1 %v3131_v13 }
 0x1a3   : > { %2815 = vmatpush3.bf16.msra.mxu0 %v2980_v63  ;;  %2835 = vmatpush3.bf16.msra.mxu1 %v2981_v0 }
 0x1a4   : > { %2816 = vmatprep.subr.bf16.mxu0 %v3131_v13  ;;  %2836 = vmatprep.subr.bf16.mxu1 %v3131_v13 }
 0x1a7   : > { %2817 = vmatpush3.bf16.msra.mxu0 %v2982_v1  ;;  %2837 = vmatpush3.bf16.msra.mxu1 %v2983_v2 }
 0x1a8   : > { %2818 = vmatprep.subr.bf16.mxu0 %v3131_v13  ;;  %2838 = vmatprep.subr.bf16.mxu1 %v3131_v13 }
 0x1ab   : > { %2819 = vmatpush3.bf16.msra.mxu0 %v2984_v3  ;;  %2839 = vmatpush3.bf16.msra.mxu1 %v2985_v4  ;;  %v2562_v3 = vld [vmem:[%s3852_s8] ss:$0 sm:$0xff] }
 0x1ac   : > { %2820 = vmatprep.subr.bf16.mxu0 %v3131_v13  ;;  %2840 = vmatprep.subr.bf16.mxu1 %v3131_v13 }
 0x1af   : > { %2821 = vmatpush3.bf16.msra.mxu0 %v2986_v5  ;;  %2841 = vmatpush3.bf16.msra.mxu1 %v2987_v6  ;;  %v2563_v5 = vld [vmem:[%s3853_s9] ss:$0 sm:$0xff] }
 0x1b0   : > { %2822 = vmatprep.subr.bf16.mxu0 %v3131_v13  ;;  %2842 = vmatprep.subr.bf16.mxu1 %v3131_v13 }
 0x1b3   : > { %2823 = vmatpush3.bf16.msra.mxu0 %v2988_v7  ;;  %2843 = vmatpush3.bf16.msra.mxu1 %v2989_v8 }
 0x1b4   : > { %2848 = vmatprep.subr.bf16.mxu0 %v3131_v13  ;;  %2868 = vmatprep.subr.bf16.mxu1 %v3131_v13 }
 0x1b6   : > { %2825 = vmatmul.mubr.bf16.vlgmr.msra.gmra.mrb[8].mxu0 %v1249_v9  ;;  %2845 = vmatmul.mubr.bf16.vlgmr.msra.gmra.mrb[8].mxu1 %v1375_v10  ;;  %v2564_v9 = vld [vmem:[%s3855_s11] ss:$0 sm:$0xff] }
 0x1b7   : > { %2864 = vmatprep.mubr.msk.bf16.mxu0 %vm3132_vm1, %v3131_v13  ;;  %2870 = vmatprep.mubr.msk.bf16.mxu1 %vm3132_vm1, %v3131_v13 }
 0x1b8   : > { %2849 = vmatpush3.bf16.msra.mxu0 %v2990_v24 }
 0x1b9   : > { %2850 = vmatprep.subr.bf16.mxu0 %v3131_v13 }
 0x1bc   : > { %2851 = vmatpush3.bf16.msra.mxu0 %v2991_v32 }
 0x1bd   : > { %2852 = vmatprep.subr.bf16.mxu0 %v3131_v13 }
 0x1c0   : > { %2853 = vmatpush3.bf16.msra.mxu0 %v2992_v57 }
 0x1c1   : > { %2854 = vmatprep.subr.bf16.mxu0 %v3131_v13 }
 0x1c4   : > { %2855 = vmatpush3.bf16.msra.mxu0 %v2993_v58 }
 0x1c5   : > { %2856 = vmatprep.subr.bf16.mxu0 %v3131_v13 }
 0x1c8   : > { %2857 = vmatpush3.bf16.msra.mxu0 %v2994_v59 }
 0x1c9   : > { %2858 = vmatprep.subr.bf16.mxu0 %v3131_v13 }
 0x1cc   : > { %2859 = vmatpush3.bf16.msra.mxu0 %v2995_v60 }
 0x1cd   : > { %2860 = vmatprep.subr.bf16.mxu0 %v3131_v13 }
 0x1d0   : > { %2861 = vmatpush3.bf16.msra.mxu0 %v2996_v61 }
 0x1d1   : > { %2862 = vmatprep.subr.bf16.mxu0 %v3131_v13 }
 0x1d4   : > { %2863 = vmatpush3.bf16.msra.mxu0 %v2997_v62 }
 0x1d5   : > { %2892 = vmatprep.subr.bf16.mxu0 %v3131_v13 }
 0x249   : > { %v867_v12 = vpop.f32.mrb[0].mxu0  ;;  %v979_v15 = vpop.f32.mrb[0].mxu1 }
 0x24a   : > { %v2746_v16 = vpop.f32.mrb[1].mxu0  ;;  %v2766_v17 = vpop.f32.mrb[1].mxu1  ;;  %v868_v20 = vadd.f32 %v2511_v11, %v867_v12  ;;  %v980_v21 = vadd.f32 %v2520_v14, %v979_v15 }
 0x24b   : > { %v870_v18 = vpop.f32.mrb[2].mxu0  ;;  %v982_v19 = vpop.f32.mrb[2].mxu1 }
 0x24c   : > { %v871_v22 = vadd.f32 %v2511_v11, %v870_v18  ;;  %v983_v23 = vadd.f32 %v2520_v14, %v982_v19  ;;  %v2747_v25 = vpop.f32.mrb[3].mxu0  ;;  %v2767_v26 = vpop.f32.mrb[3].mxu1 }
 0x24e   : > { %v3595_v27 = vpack.c.bf16 %v871_v22, %v868_v20  ;;  %v3597_v28 = vpack.c.bf16 %v983_v23, %v980_v21 }
 0x269   : > { %v1140_v29 = vpop.f32.mrb[4].mxu0  ;;  %v1228_v30 = vpop.f32.mrb[4].mxu1 }
 0x26a   : > { %v1229_v31 = vadd.f32 %v1228_v30, %v1140_v29  ;;  %v2786_v33 = vpop.f32.mrb[5].mxu0  ;;  %v2806_v34 = vpop.f32.mrb[5].mxu1 }
 0x26b   : > { %v1143_v35 = vpop.f32.mrb[6].mxu0  ;;  %v1231_v36 = vpop.f32.mrb[6].mxu1 }
 0x26c   : > { %v2787_v37 = vpop.f32.mrb[7].mxu0  ;;  %v2807_v38 = vpop.f32.mrb[7].mxu1 }
 0x289   : > { %v1348_v39 = vpop.f32.mrb[8].mxu0  ;;  %v1474_v40 = vpop.f32.mrb[8].mxu1 }
 0x28a   : > { %v1354_v41 = vadd.f32 %v1348_v39, %v1229_v31  ;;  %v2826_v42 = vpop.f32.mrb[9].mxu0  ;;  %v2846_v43 = vpop.f32.mrb[9].mxu1 }
 0x28b   : > { %v1351_v44 = vpop.f32.mrb[10].mxu0  ;;  %v1477_v45 = vpop.f32.mrb[10].mxu1 }
 0x28c   : > { %v1480_v47 = vadd.f32 %v1474_v40, %v1354_v41  ;;  %v2827_v48 = vpop.f32.mrb[11].mxu0  ;;  %v2847_v49 = vpop.f32.mrb[11].mxu1 }
 0x28e   : > { %v1488_v50 = vadd.f32 %v2561_v46, %v1480_v47 }
 0x290   : > { %v1491_v51 = vsel %vm988_vm0, %v1488_v50, 0.0 }
 0x291   : > { %1492 = vadd.xlane.f32.xlu0 %v1491_v51 }
 0x31e   : > { %v1493_v52 = vpop.xlane.xlu0 %1492 }
 0x31f   : > { %v1494_v53 = vmul.f32 0.0078125, %v1493_v52 }
 0x321   : > { %v1495_v54 = vsub.f32 %v1488_v50, %v1494_v53 }
 0x323   : > { %v1496_v55 = vmul.f32 %v1495_v54, %v1495_v54 }
 0x325   : > { %v1497_v56 = vsel %vm988_vm0, %v1496_v55, 0.0 }
 0x326   : > { %1498 = vadd.xlane.f32.xlu1 %v1497_v56 }
 0x3b3   : > { %v1499_v63 = vpop.xlane.xlu1 %1498 }
 0x3b4   : > { %v1500_v0 = vmul.f32 0.0078125, %v1499_v63 }
 0x3b6   : > { %v1501_v1 = vadd.f32 1e-05, %v1500_v0 }
 0x3b8   : > { %3058 = vrsqrt.f32 %v1501_v1  ;;  %v2998_v1 = vld [vmem:[%s3858_s14] sm:$0xff]  }
 0x3c2   : > { %v3059_v2 = vpop.eup %3058 }
 0x3c3   : > { %v1503_v4 = vmul.f32 %v3059_v2, %v1495_v54  ;;  %v2999_v2 = vld [vmem:[%s3858_s14 + $0x8] sm:$0xff]  }
 0x3c5   : > { %v1510_v6 = vmul.f32 %v2562_v3, %v1503_v4  ;;  %v3000_v3 = vld [vmem:[%s3858_s14 + $0x10] sm:$0xff]   ;;  %v3001_v4 = vld [vmem:[%s3858_s14 + $0x18] sm:$0xff]  }
 0x3c7   : > { %v1517_v7 = vadd.f32 %v2563_v5, %v1510_v6  ;;  %v3002_v5 = vld [vmem:[%s3858_s14 + $0x20] sm:$0xff]   ;;  %v3003_v6 = vld [vmem:[%s3858_s14 + $0x28] sm:$0xff]  }
 0x3c9   : > { %v1518_v8 = vpack.c.bf16 %v1517_v7, %v1517_v7  ;;  %v3004_v7 = vld [vmem:[%s3858_s14 + $0x30] sm:$0xff]  }
 0x3cb   : > { %2865 = vmatmul.mubr.bf16.vlgmr.msra.gmra.mrb[12].mxu0 %v1518_v8 }
 0x3cc   : > { %2908 = vmatprep.mubr.msk.bf16.mxu0 %vm3132_vm1, %v3131_v13  ;;  %2893 = vmatpush3.bf16.msra.mxu0 %v2998_v1  ;;  %v3029_v1 = vld [vmem:[%s3862_s18 + $0x74] ss:$8 sps:$4 sm:$0xff]  }
 0x3cd   : > { %2894 = vmatprep.subr.bf16.mxu0 %v3131_v13 }
 0x3d0   : > { %2895 = vmatpush3.bf16.msra.mxu0 %v2999_v2  ;;  %v3027_v2 = vld [vmem:[%s3862_s18 + $0x70] ss:$8 sps:$4 sm:$0xff]  }
 0x3d1   : > { %2896 = vmatprep.subr.bf16.mxu0 %v3131_v13 }
 0x3d4   : > { %2897 = vmatpush3.bf16.msra.mxu0 %v3000_v3  ;;  %v3134_v3 = vmov 0  }
 0x3d5   : > { %2898 = vmatprep.subr.bf16.mxu0 %v3131_v13 }
 0x3d8   : > { %2899 = vmatpush3.bf16.msra.mxu0 %v3001_v4 }
 0x3d9   : > { %2900 = vmatprep.subr.bf16.mxu0 %v3131_v13 }
 0x3dc   : > { %2901 = vmatpush3.bf16.msra.mxu0 %v3002_v5 }
 0x3dd   : > { %2902 = vmatprep.subr.bf16.mxu0 %v3131_v13 }
 0x3e0   : > { %2903 = vmatpush3.bf16.msra.mxu0 %v3003_v6 }
 0x3e1   : > { %2904 = vmatprep.subr.bf16.mxu0 %v3131_v13 }
 0x3e4   : > { %2905 = vmatpush3.bf16.msra.mxu0 %v3004_v7 }
 0x3e5   : > { %2906 = vmatprep.subr.bf16.mxu0 %v3131_v13 }
 0x49e   : > { %v1624_v10 = vpop.f32.mrb[12].mxu0 }
 0x49f   : > { %v1625_v11 = vadd.f32 %v2564_v9, %v1624_v10  ;;  %v2866_v12 = vpop.f32.mrb[13].mxu0  ;;  %v3005_v10 = vld [vmem:[%s3858_s14 + $0x38] sm:$0xff]  }
 0x4a0   : > { %v1627_v14 = vpop.f32.mrb[14].mxu0  ;;  %2907 = vmatpush3.bf16.msra.mxu0 %v3005_v10 }
 0x4a1   : > { %v1631_v15 = vpack.c.bf16 %v1625_v11, %v1625_v11  ;;  %v2867_v16 = vpop.f32.mrb[15].mxu0 }
 0x4a3   : > { %v1637_v17 = vsel %vm1632_vm2, %v1631_v15, 0 }
 0x4a4   : > { %2869 = vmatpush3.bf16.xpose.msra.mxu1 %v1637_v17 }
 0x4a5   : > { %2874 = vmatprep.subr.bf16.mxu1 %v3131_v13 }
 0x4ab   : > { %2871 = vmatmul.mubr.msk.bf16.vlgmr.msra.gmra.mrb[12].mxu1 %vm1632_vm2, %v3595_v27 }
 0x4ac   : > { %2876 = vmatprep.mubr.msk.bf16.mxu1 %vm3132_vm1, %v3131_v13 }
 0x57e   : > { %v1673_v18 = vpop.f32.mrb[12].mxu1 }
 0x57f   : > { %v1680_v19 = vmul.f32 0.125, %v1673_v18  ;;  %v2872_v20 = vpop.f32.mrb[13].mxu1 }
 0x580   : > { %v1676_v21 = vpop.f32.mrb[14].mxu1 }
 0x581   : > { %v1681_v22 = vmul.f32 0.125, %v1676_v21  ;;  %v2873_v23 = vpop.f32.mrb[15].mxu1  ;;  %v1683_v25 = vsel %vm1682_vm3, %v1680_v19, -inf }
 0x582   : > { %1684 = vmax.xlane.f32.xlu0 %v1683_v25 }
 0x583   : > { %v1686_v26 = vsel %vm1682_vm3, %v1681_v22, -inf }
 0x584   : > { %1687 = vmax.xlane.f32.xlu1 %v1686_v26 }
 0x595   : > { %1759 = vrot.lane.b32.xlu1 %v3595_v27, %s3133_s25  ;;  %v1765_v27 = vsel %vm1632_vm2, %v3597_v28, 0 }
 0x598   : > { %1703 = vrot.lane.b32.xlu0 %v1631_v15, %s3133_s25 }
 0x60f   : > { %v1685_v29 = vpop.xlane.xlu0 %1684 }
 0x610   : > { %v1689_v30 = vsub.f32 %v1680_v19, %v1685_v29 }
 0x611   : > { %v1688_v31 = vpop.xlane.xlu1 %1687 }
 0x612   : > { %v1691_v33 = vmul.f32 1.442695, %v1689_v30  ;;  %v1690_v34 = vsub.f32 %v1681_v22, %v1688_v31 }
 0x613   : > { %v1704_v35 = vpop.permute.xlu0 %1703 }
 0x614   : > { %v1693_v36 = vmul.f32 1.442695, %v1690_v34  ;;  %v1710_v37 = vsel %vm1708_vm4, %v1704_v35, 0  ;;  %3060 = vpow2.f32 %v1691_v33 }
 0x615   : > { %2875 = vmatpush3.bf16.msra.mxu1 %v1710_v37  ;;  %v1760_v41 = vpop.permute.xlu1 %1759 }
 0x616   : > { %3062 = vpow2.f32 %v1693_v36  ;;  %2880 = vmatprep.subr.bf16.mxu1 %v3131_v13  ;;  %v2577_v36 = vld [vmem:[%s3859_s15] ss:$0 sm:$0xff] }
 0x61e   : > { %v3061_v38 = vpop.eup %3060 }
 0x61f   : > { %v1695_v63 = vsel %vm1682_vm3, %v3061_v38, 0.0 }
 0x620   : > { %v3063_v39 = vpop.eup %3062 }
 0x621   : > { %v1701_v40 = vpack.c.bf16 %v3063_v39, %v3061_v38  ;;  %v1698_v0 = vsel %vm1682_vm3, %v3063_v39, 0.0 }
 0x623   : > { %2877 = vmatmul.mubr.msk.bf16.vlgmr.msra.gmra.mrb[16].mxu1 %vm1682_vm3, %v1701_v40 }
 0x624   : > { %2881 = vmatpush3.bf16.xpose.msra.mxu1 %v1765_v27  ;;  %2882 = vmatprep.mubr.msk.bf16.mxu1 %vm3132_vm1, %v3131_v13  ;;  %v3088_v27 = vld [vmem:[%s3303_s4] sm:$0xff] }
 0x625   : > { %2886 = vmatprep.subr.bf16.mxu1 %v3131_v13 }
 0x62b   : > { %2883 = vmatmul.mubr.msk.bf16.vlgmr.msra.gmra.mrb[20].mxu1 %vm1632_vm2, %v1760_v41 }
 0x62c   : > { %2888 = vmatprep.mubr.msk.bf16.mxu1 %vm3132_vm1, %v3131_v13 }
 0x6f6   : > { %v3668_v42 = vpop.f32.mrb[16].mxu1 }
 0x6f7   : > { %v2878_v43 = vpop.f32.mrb[17].mxu1 }
 0x6f8   : > { %v3670_v44 = vpop.f32.mrb[18].mxu1 }
 0x6f9   : > { %v2879_v45 = vpop.f32.mrb[19].mxu1 }
 0x6fe   : > { %v1801_v46 = vpop.f32.mrb[20].mxu1 }
 0x6ff   : > { %v1808_v47 = vmul.f32 0.125, %v1801_v46  ;;  %v2884_v48 = vpop.f32.mrb[21].mxu1  ;;  %v3006_v46 = vld [vmem:[%s3862_s18] ss:$8 sps:$4 sm:$0xff]  }
 0x700   : > { %v1804_v49 = vpop.f32.mrb[22].mxu1  ;;  %v3011_v48 = vld [vmem:[%s3862_s18 + $0x14] ss:$8 sps:$4 sm:$0xff]  }
 0x701   : > { %v1809_v50 = vmul.f32 0.125, %v1804_v49  ;;  %v2885_v51 = vpop.f32.mrb[23].mxu1  ;;  %v1811_v24 = vsel %vm1810_vm5, %v1808_v47, -inf  ;;  %v3009_v49 = vld [vmem:[%s3862_s18 + $0x10] ss:$8 sps:$4 sm:$0xff]  }
 0x702   : > { %1812 = vmax.xlane.f32.xlu1 %v1811_v24 }
 0x703   : > { %v1814_v32 = vsel %vm1810_vm5, %v1809_v50, -inf }
 0x704   : > { %1815 = vmax.xlane.f32.xlu0 %v1814_v32 }
 0x71a   : > { %1831 = vrot.lane.b32.xlu0 %v3597_v28, %s3133_s25 }
 0x78f   : > { %v1813_v52 = vpop.xlane.xlu1 %1812 }
 0x790   : > { %v1817_v53 = vsub.f32 %v1808_v47, %v1813_v52  ;;  %v3008_v47 = vld [vmem:[%s3862_s18 + $0x4] ss:$8 sps:$4 sm:$0xff]  }
 0x791   : > { %v1816_v54 = vpop.xlane.xlu0 %1815 }
 0x792   : > { %v1819_v55 = vmul.f32 1.442695, %v1817_v53  ;;  %v1818_v56 = vsub.f32 %v1809_v50, %v1816_v54 }
 0x794   : > { %3064 = vpow2.f32 %v1819_v55  ;;  %v1821_v57 = vmul.f32 1.442695, %v1818_v56  ;;  %v3014_v56 = vld [vmem:[%s3862_s18 + $0x24] ss:$8 sps:$4 sm:$0xff]  }
 0x795   : > { %v1832_v58 = vpop.permute.xlu0 %1831 }
 0x796   : > { %3066 = vpow2.f32 %v1821_v57  ;;  %2887 = vmatpush3.bf16.msra.mxu1 %v1832_v58  ;;  %v3012_v57 = vld [vmem:[%s3862_s18 + $0x20] ss:$8 sps:$4 sm:$0xff]   ;;  %v3017_v58 = vld [vmem:[%s3862_s18 + $0x34] ss:$8 sps:$4 sm:$0xff]  }
 0x797   : > { %2156 = vmatprep.subr.bf16.mxu1 %v3008_v47 }
 0x79e   : > { %v3065_v59 = vpop.eup %3064 }
 0x79f   : > { %v1823_v60 = vsel %vm1810_vm5, %v3065_v59, 0.0 }
 0x7a0   : > { %v3067_v61 = vpop.eup %3066  ;;  %1824 = vadd.xlane.f32.xlu1 %v1823_v60  ;;  %v3020_v60 = vld [vmem:[%s3862_s18 + $0x44] ss:$8 sps:$4 sm:$0xff]  }
 0x7a1   : > { %v1829_v62 = vpack.c.bf16 %v3067_v61, %v3065_v59  ;;  %v1826_v28 = vsel %vm1810_vm5, %v3067_v61, 0.0  ;;  %v3015_v59 = vld [vmem:[%s3862_s18 + $0x30] ss:$8 sps:$4 sm:$0xff]   ;;  %v3018_v61 = vld [vmem:[%s3862_s18 + $0x40] ss:$8 sps:$4 sm:$0xff]  }
 0x7a3   : > { %2889 = vmatmul.mubr.msk.bf16.vlgmr.msra.gmra.mrb[24].mxu1 %vm1810_vm5, %v1829_v62  ;;  %v3023_v62 = vld [vmem:[%s3862_s18 + $0x54] ss:$8 sps:$4 sm:$0xff]  }
 0x7a4   : > { %1827 = vadd.xlane.f32.xlu1 %v1826_v28  ;;  %2157 = vmatpush1.bf16.msra.mxu1 %v3006_v46  ;;  %v3021_v28 = vld [vmem:[%s3862_s18 + $0x50] ss:$8 sps:$4 sm:$0xff]  }
 0x7a5   : > { %2158 = vmatprep.subr.bf16.mxu1 %v3011_v48  ;;  %2188 = vmatprep.mubr.bf16.mxu1 %v3134_v3 }
 0x7a8   : > { %1696 = vadd.xlane.f32.xlu1 %v1695_v63  ;;  %2159 = vmatpush1.bf16.msra.mxu1 %v3009_v49  ;;  %v3026_v63 = vld [vmem:[%s3862_s18 + $0x64] ss:$8 sps:$4 sm:$0xff]  }
 0x7a9   : > { %2160 = vmatprep.subr.bf16.mxu1 %v3014_v56 }
 0x7ac   : > { %1699 = vadd.xlane.f32.xlu1 %v1698_v0  ;;  %2161 = vmatpush1.bf16.msra.mxu1 %v3012_v57  ;;  %v3024_v0 = vld [vmem:[%s3862_s18 + $0x60] ss:$8 sps:$4 sm:$0xff]  }
 0x7ad   : > { %2162 = vmatprep.subr.bf16.mxu1 %v3017_v58 }
 0x7b0   : > { %2163 = vmatpush1.bf16.msra.mxu1 %v3015_v59 }
 0x7b1   : > { %2164 = vmatprep.subr.bf16.mxu1 %v3020_v60 }
 0x7b4   : > { %2165 = vmatpush1.bf16.msra.mxu1 %v3018_v61 }
 0x7b5   : > { %2166 = vmatprep.subr.bf16.mxu1 %v3023_v62 }
 0x7b8   : > { %2167 = vmatpush1.bf16.msra.mxu1 %v3021_v28 }
 0x7b9   : > { %2168 = vmatprep.subr.bf16.mxu1 %v3026_v63 }
 0x7bc   : > { %2169 = vmatpush1.bf16.msra.mxu1 %v3024_v0 }
 0x7bd   : > { %2170 = vmatprep.subr.bf16.mxu1 %v3029_v1 }
 0x7c0   : > { %2171 = vmatpush1.bf16.msra.mxu1 %v3027_v2 }
 0x82d   : > { %v1825_v8 = vpop.xlane.xlu1 %1824 }
 0x82e   : > { %3068 = vrcp.f32 %v1825_v8 }
 0x831   : > { %v1828_v9 = vpop.xlane.xlu1 %1827 }
 0x832   : > { %3070 = vrcp.f32 %v1828_v9 }
 0x835   : > { %v1697_v13 = vpop.xlane.xlu1 %1696 }
 0x836   : > { %3072 = vrcp.f32 %v1697_v13 }
 0x838   : > { %v3069_v12 = vpop.eup %3068 }
 0x839   : > { %v1700_v21 = vpop.xlane.xlu1 %1699 }
 0x83a   : > { %3074 = vrcp.f32 %v1700_v21  ;;  %v3030_v21 = vld [vmem:[%s3864_s20 + $0x40] sm:$0xff]  }
 0x83b   : > { %2706 = vmatprep.subr.bf16.mxu0 %v3030_v21 }
 0x83c   : > { %v3071_v15 = vpop.eup %3070 }
 0x840   : > { %v3073_v22 = vpop.eup %3072 }
 0x841   : > { %v1755_v26 = vmul.f32 %v3073_v22, %v3668_v42  ;;  %v3031_v22 = vld [vmem:[%s3864_s20] sm:$0xff]  }
 0x844   : > { %v3075_v23 = vpop.eup %3074 }
 0x845   : > { %v1756_v29 = vmul.f32 %v3075_v23, %v3670_v44  ;;  %v3089_v44 = vld [vmem:[%s3303_s4 + $0x8] sm:$0xff]  ;;  %s716_s4 = scalar_lea.vmem %s3866_s22, %s3297_s1 }
 0x846   : > { %v3032_v23 = vld [vmem:[%s3864_s20 + $0x48] sm:$0xff]  }
 0x876   : > { %v1871_v11 = vpop.f32.mrb[24].mxu1 }
 0x877   : > { %v2890_v14 = vpop.f32.mrb[25].mxu1  ;;  %v1880_v17 = vmul.f32 %v3069_v12, %v1871_v11  ;;  %v2586_v12 = vld [vmem:[%s3860_s16] ss:$0 sm:$0xff] }
 0x878   : > { %v1874_v16 = vpop.f32.mrb[26].mxu1 }
 0x879   : > { %v1881_v18 = vmul.f32 %v3071_v15, %v1874_v16  ;;  %v2891_v19 = vpop.f32.mrb[27].mxu1 }
 0x87b   : > { %v2935_v20 = vpack.i.bf16 %v1881_v18, %v1880_v17  ;;  %v2587_v17 = vld [vmem:[%s3861_s17] ss:$0 sm:$0xff] }
 0x87d   : > { %2936 = vrot.lane.b32.xlu1 %v2935_v20, %s3133_s25 }
 0x8ef   : > { %v2937_v25 = vpop.permute.xlu1 %2936 }
 0x8f0   : > { %v2939_v30 = vunpack.i.h.bf16 %v2937_v25  ;;  %v2938_v31 = vunpack.i.l.bf16 %v2937_v25  ;;  %v3033_v25 = vld [vmem:[%s3864_s20 + $0x8] sm:$0xff]  }
 0x8f2   : > { %v1891_v33 = vsel %vm1632_vm2, %v1756_v29, %v2939_v30  ;;  %v1890_v34 = vsel %vm1632_vm2, %v1755_v26, %v2938_v31  ;;  %v3034_v26 = vld [vmem:[%s3864_s20 + $0x50] sm:$0xff]   ;;  %v3036_v30 = vld [vmem:[%s3864_s20 + $0x58] sm:$0xff]  }
 0x8f3   : > { %v1892_v35 = vpack.c.bf16 %v1891_v33, %v1890_v34  ;;  %v3035_v29 = vld [vmem:[%s3864_s20 + $0x10] sm:$0xff]   ;;  %v3037_v31 = vld [vmem:[%s3864_s20 + $0x18] sm:$0xff]   ;;  %v3038_v33 = vld [vmem:[%s3864_s20 + $0x60] sm:$0xff]  }
 0x8f4   : > { %v3039_v34 = vld [vmem:[%s3864_s20 + $0x20] sm:$0xff]  }
 0x8f5   : > { %2909 = vmatmul.mubr.bf16.vlgmr.msra.gmra.mrb[16].mxu0 %v1892_v35  ;;  %v3040_v35 = vld [vmem:[%s3864_s20 + $0x68] sm:$0xff]  }
 0x8f6   : > { %2707 = vmatpush3.bf16.msra.mxu0 %v3031_v22 }
 0x8f7   : > { %2708 = vmatprep.subr.bf16.mxu0 %v3032_v23 }
 0x8fa   : > { %2709 = vmatpush3.bf16.msra.mxu0 %v3033_v25 }
 0x8fb   : > { %2710 = vmatprep.subr.bf16.mxu0 %v3034_v26 }
 0x8fe   : > { %2711 = vmatpush3.bf16.msra.mxu0 %v3035_v29 }
 0x8ff   : > { %2712 = vmatprep.subr.bf16.mxu0 %v3036_v30 }
 0x902   : > { %2713 = vmatpush3.bf16.msra.mxu0 %v3037_v31 }
 0x903   : > { %2714 = vmatprep.subr.bf16.mxu0 %v3038_v33  ;;  %v2604_v33 = vld [vmem:[#allocation2] ss:$0 sm:$0xff] }
 0x906   : > { %2715 = vmatpush3.bf16.msra.mxu0 %v3039_v34 }
 0x907   : > { %2716 = vmatprep.subr.bf16.mxu0 %v3040_v35 }
 0x9c8   : > { %v1998_v37 = vpop.f32.mrb[16].mxu0 }
 0x9c9   : > { %v1999_v38 = vadd.f32 %v2577_v36, %v1998_v37  ;;  %v2910_v39 = vpop.f32.mrb[17].mxu0  ;;  %v3042_v37 = vld [vmem:[%s3864_s20 + $0x70] sm:$0xff]  }
 0x9ca   : > { %v2001_v40 = vpop.f32.mrb[18].mxu0  ;;  %v3044_v39 = vld [vmem:[%s3864_s20 + $0x78] sm:$0xff]  }
 0x9cb   : > { %v3721_v41 = vadd.f32 %v3088_v27, %v1999_v38  ;;  %v2002_v42 = vadd.f32 %v2577_v36, %v2001_v40  ;;  %v2911_v43 = vpop.f32.mrb[19].mxu0  ;;  %v3041_v36 = vld [vmem:[%s3864_s20 + $0x28] sm:$0xff]   ;;  %v3043_v38 = vld [vmem:[%s3864_s20 + $0x30] sm:$0xff]   ;;  %v3045_v40 = vld [vmem:[%s3864_s20 + $0x38] sm:$0xff]   ;;  %v2066_v27 = vlaneseq }
 0x9cc   : > { %2717 = vmatpush3.bf16.msra.mxu0 %v3041_v36 }
 0x9cd   : > { %v3724_v45 = vadd.f32 %v3089_v44, %v2002_v42  ;;  %2009 = vadd.xlane.f32.xlu0 %v3721_v41  ;;  %2718 = vmatprep.subr.bf16.mxu0 %v3042_v37  ;;  %v2067_v42 = vshrl.u32 %v2066_v27, 7  ;;  %v2064_v44 = vld [vmem:[%s3863_s19] sm:$0x3] }
 0x9cf   : > { %2011 = vadd.xlane.f32.xlu1 %v3724_v45  ;;  %v2068_v43 = vsub.s32 0, %v2067_v42  ;;  %v2072_v46 = vsub.s32 1, %v2067_v42 }
 0x9d0   : > { %2719 = vmatpush3.bf16.msra.mxu0 %v3043_v38 }
 0x9d1   : > { %2720 = vmatprep.subr.bf16.mxu0 %v3044_v39  ;;  %v2069_v47 = vrot.slane %v2064_v44, %v2068_v43  ;;  %v2073_v48 = vrot.slane %v2064_v44, %v2072_v46 }
 0x9d4   : > { %2721 = vmatpush3.bf16.msra.mxu0 %v3045_v40 }
 0xa5a   : > { %v2010_v50 = vpop.xlane.xlu0 %2009 }
 0xa5b   : > { %v2013_v51 = vmul.f32 0.0078125, %v2010_v50 }
 0xa5c   : > { %v2012_v24 = vpop.xlane.xlu1 %2011 }
 0xa5d   : > { %v2015_v32 = vsub.f32 %v3721_v41, %v2013_v51  ;;  %v2014_v52 = vmul.f32 0.0078125, %v2012_v24 }
 0xa5f   : > { %v2016_v53 = vsub.f32 %v3724_v45, %v2014_v52  ;;  %v2017_v54 = vmul.f32 %v2015_v32, %v2015_v32 }
 0xa61   : > { %2019 = vadd.xlane.f32.xlu0 %v2017_v54  ;;  %v2018_v55 = vmul.f32 %v2016_v53, %v2016_v53 }
 0xa65   : > { %2021 = vadd.xlane.f32.xlu0 %v2018_v55 }
 0xaee   : > { %v2020_v4 = vpop.xlane.xlu0 %2019 }
 0xaef   : > { %v2023_v5 = vmul.f32 0.0078125, %v2020_v4 }
 0xaf1   : > { %v2025_v6 = vadd.f32 1e-05, %v2023_v5 }
 0xaf2   : > { %v2022_v7 = vpop.xlane.xlu0 %2021 }
 0xaf3   : > { %3076 = vrsqrt.f32 %v2025_v6  ;;  %v2024_v8 = vmul.f32 0.0078125, %v2022_v7 }
 0xaf5   : > { %v2026_v9 = vadd.f32 1e-05, %v2024_v8 }
 0xaf7   : > { %3078 = vrsqrt.f32 %v2026_v9 }
 0xafd   : > { %v3077_v10 = vpop.eup %3076 }
 0xafe   : > { %v2029_v11 = vmul.f32 %v3077_v10, %v2015_v32 }
 0xb00   : > { %v2037_v16 = vmul.f32 %v2586_v12, %v2029_v11 }
 0xb01   : > { %v3079_v14 = vpop.eup %3078 }
 0xb02   : > { %v2030_v15 = vmul.f32 %v3079_v14, %v2016_v53  ;;  %v2045_v19 = vadd.f32 %v2587_v17, %v2037_v16 }
 0xb04   : > { %v2038_v18 = vmul.f32 %v2586_v12, %v2030_v15 }
 0xb06   : > { %v2046_v20 = vadd.f32 %v2587_v17, %v2038_v18 }
 0xb08   : > { %v2047_v13 = vpack.c.bf16 %v2046_v20, %v2045_v19 }
 0xb0a   : > { %2189 = vmatmul.mubr.bf16.vlgmr.msra.gmra.mrb[28].mxu1 %v2047_v13 }
 0xbdd   : > { %v2190_v49 = vpop.f32.mrb[28].mxu1 }
 0xbde   : > { %v2191_v50 = vadd.f32 %v2190_v49, %v2069_v47  ;;  %v2192_v51 = vpop.f32.mrb[29].mxu1 }
 0xbdf   : > { %v2193_v24 = vadd.f32 %v2192_v51, %v2073_v48  ;;  %v2194_v32 = vpop.f32.mrb[30].mxu1 }
 0xbe0   : > { %v2199_v52 = vmul.f32 %v2191_v50, %v2191_v50  ;;  %v2195_v53 = vadd.f32 %v2194_v32, %v2069_v47  ;;  %v2196_v54 = vpop.f32.mrb[31].mxu1 }
 0xbe1   : > { %v2200_v55 = vmul.f32 %v2193_v24, %v2193_v24  ;;  %v2197_v56 = vadd.f32 %v2196_v54, %v2073_v48 }
 0xbe2   : > { %v2203_v57 = vmul.f32 %v2199_v52, %v2191_v50  ;;  %v2201_v58 = vmul.f32 %v2195_v53, %v2195_v53 }
 0xbe3   : > { %v2204_v59 = vmul.f32 %v2200_v55, %v2193_v24  ;;  %v2202_v60 = vmul.f32 %v2197_v56, %v2197_v56 }
 0xbe4   : > { %v2207_v61 = vmul.f32 0.044715, %v2203_v57  ;;  %v2205_v62 = vmul.f32 %v2201_v58, %v2195_v53 }
 0xbe5   : > { %v2208_v28 = vmul.f32 0.044715, %v2204_v59  ;;  %v2206_v63 = vmul.f32 %v2202_v60, %v2197_v56 }
 0xbe6   : > { %v2211_v0 = vadd.f32 %v2207_v61, %v2191_v50  ;;  %v2209_v1 = vmul.f32 0.044715, %v2205_v62 }
 0xbe7   : > { %v2212_v2 = vadd.f32 %v2208_v28, %v2193_v24  ;;  %v2210_v3 = vmul.f32 0.044715, %v2206_v63 }
 0xbe8   : > { %v2215_v4 = vmul.f32 0.7978846, %v2211_v0  ;;  %v2213_v5 = vadd.f32 %v2209_v1, %v2195_v53 }
 0xbe9   : > { %v2216_v6 = vmul.f32 0.7978846, %v2212_v2  ;;  %v2214_v7 = vadd.f32 %v2210_v3, %v2197_v56 }
 0xbea   : > { %3080 = vtanh.f32 %v2215_v4  ;;  %v2217_v8 = vmul.f32 0.7978846, %v2213_v5 }
 0xbeb   : > { %3082 = vtanh.f32 %v2216_v6  ;;  %v2218_v9 = vmul.f32 0.7978846, %v2214_v7 }
 0xbec   : > { %3084 = vtanh.f32 %v2217_v8 }
 0xbed   : > { %3086 = vtanh.f32 %v2218_v9 }
 0xbf4   : > { %v3081_v10 = vpop.eup %3080 }
 0xbf5   : > { %v3083_v11 = vpop.eup %3082  ;;  %v2223_v12 = vadd.f32 1.0, %v3081_v10 }
 0xbf6   : > { %v3085_v14 = vpop.eup %3084  ;;  %v2224_v15 = vadd.f32 1.0, %v3083_v11 }
 0xbf7   : > { %v3087_v16 = vpop.eup %3086  ;;  %v2227_v17 = vmul.f32 0.5, %v2223_v12  ;;  %v2225_v18 = vadd.f32 1.0, %v3085_v14 }
 0xbf8   : > { %v2226_v19 = vadd.f32 1.0, %v3087_v16  ;;  %v2228_v20 = vmul.f32 0.5, %v2224_v15 }
 0xbf9   : > { %v2229_v13 = vmul.f32 0.5, %v2225_v18  ;;  %v2231_v22 = vmul.f32 %v2227_v17, %v2191_v50 }
 0xbfa   : > { %v2230_v21 = vmul.f32 0.5, %v2226_v19  ;;  %v2232_v25 = vmul.f32 %v2228_v20, %v2193_v24 }
 0xbfb   : > { %v2233_v23 = vmul.f32 %v2229_v13, %v2195_v53 }
 0xbfc   : > { %v2234_v26 = vmul.f32 %v2230_v21, %v2197_v56 }
 0xbfd   : > { %v2235_v29 = vpack.c.bf16 %v2233_v23, %v2231_v22 }
 0xbfe   : > { %v2236_v30 = vpack.c.bf16 %v2234_v26, %v2232_v25 }
 0xc00   : > { %2404 = vmatprep.mubr.bf16.mxu0 %v2236_v30 }
 0xc01   : > { %2405 = vmatmul.mubr.bf16.vlgmr.msra.gmra.mrb[20].mxu0 %v2235_v29 }
 0xcd4   : > { %v2722_v31 = vpop.f32.mrb[20].mxu0 }
 0xcd5   : > { %v2723_v34 = vpop.f32.mrb[21].mxu0 }
 0xcd6   : > { %v2724_v35 = vadd.f32 %v2723_v34, %v2722_v31  ;;  %v2725_v36 = vpop.f32.mrb[22].mxu0 }
 0xcd7   : > { %v2726_v37 = vpop.f32.mrb[23].mxu0 }
 0xcd8   : > { %v2407_v38 = vadd.f32 %v2724_v35, %v2604_v33  ;;  %v2727_v39 = vadd.f32 %v2726_v37, %v2725_v36 }
 0xcda   : > { %v2413_v40 = vadd.f32 %v2407_v38, %v3721_v41  ;;  %v2410_v27 = vadd.f32 %v2727_v39, %v2604_v33 }
 0xcdc   : > { %2415 = vst [vmem:[%s716_s4] sm:$0xff] %v2413_v40  ;;  %v2414_v42 = vadd.f32 %v2410_v27, %v3724_v45 }
 0xcde   : > { %2416 = vst [vmem:[%s716_s4 + $0x8] sm:$0xff] %v2414_v42 }
 0xcdf PF: > { %s33_s3 = sadd.s32 1, %s3128_s3  }
 0xce0   : > { %p30_p2 = scmp.ge.s32.totalorder %s33_s3, 4  }
 0xce2   :  { %32 = sbr.rel (!%p30_p2) target bundleno = 9 (0x9), region = 146 }
 0xce9   :  { %2438 = vsyncpa [#allocation3], 1 }
 0xcea   :  { %2440 = vsyncpa [#allocation3 + $0x1], 1 }

</bundles_post_ra>
